<compile_context>
chip_gen: v7x
topology: tpu7x:2x2x1
jax: 0.10.0
libtpu: 0.0.40
codegen_flags: <defaults>
</compile_context>

<pallas_src>
import jax
import jax.numpy as jnp
from jax.experimental import pallas as pl
from jax.experimental.pallas import tpu as pltpu

BN_EPS = 1e-5
BN_SCALE = 1.0 / (1.0 + BN_EPS) ** 0.5  # eval-mode BatchNorm with default buffers

_MAX_TM = 512                 # M tile (rows of the im2col matrix)
_MAX_TK = 512                 # K tile (reduction) -- only split when K > _MAX_TK
_VMEM_LIMIT = 32 * 1024 * 1024


def _round_up(v, m):
    return -(-v // m) * m


# ----------------------------------------------------------------------------
# Fused matmul kernel:  out = act( sum_i x_i @ w_i + b [+ residual] )
# Grid = (M tiles [parallel]) or (M tiles [parallel], K tiles [arbitrary]).
# ----------------------------------------------------------------------------
def _make_matmul_kernel(n_pairs, nk, has_residual, activation):
    n_inputs = 2 * n_pairs + 1 + (1 if has_residual else 0)

    def epilogue(acc, b_ref, r_ref):
        y = acc + b_ref[...]
        if r_ref is not None:
            y = y + r_ref[...].astype(jnp.float32)
        if activation == "relu":
            y = jnp.maximum(y, 0.0)
        return y

    def partial_dot(refs):
        acc = None
        for p in range(n_pairs):
            d = jnp.dot(refs[p][...], refs[n_pairs + p][...],
                        preferred_element_type=jnp.float32)
            acc = d if acc is None else acc + d
        return acc

    if nk == 1:
        def kernel(*refs):
            b_ref = refs[2 * n_pairs]
            r_ref = refs[2 * n_pairs + 1] if has_residual else None
            out_ref = refs[n_inputs]
            out_ref[...] = epilogue(partial_dot(refs), b_ref, r_ref).astype(
                out_ref.dtype)
    else:
        def kernel(*refs):
            b_ref = refs[2 * n_pairs]
            r_ref = refs[2 * n_pairs + 1] if has_residual else None
            out_ref = refs[n_inputs]
            acc_ref = refs[n_inputs + 1]
            k = pl.program_id(1)

            @pl.when(k == 0)
            def _init():
                acc_ref[...] = jnp.zeros_like(acc_ref)

            acc_ref[...] += partial_dot(refs)

            @pl.when(k == nk - 1)
            def _finalize():
                out_ref[...] = epilogue(acc_ref[...], b_ref, r_ref).astype(
                    out_ref.dtype)

    return kernel


def fused_matmul(pairs, bias, activation="none", residual=None,
                 out_dtype=jnp.bfloat16):
    """act(sum_i x_i @ w_i + b [+ residual]); x_i: (M, K_i), w_i: (K_i, N)."""
    m = pairs[0][0].shape[0]
    n_out = pairs[0][1].shape[1]
    n_pairs = len(pairs)

    # ---- M tiling (parallel axis; splits across TensorCores on v7x) --------
    nm = max(1, -(-m // _MAX_TM))
    tm = _round_up(-(-m // nm), 16)          # 16: bf16 sublane pack
    m_pad = nm * tm

    # ---- K tiling (reduction axis, only for single-source, large-K matmuls)
    nk = 1
    tk = k_pad = None
    if n_pairs == 1:
        k0 = pairs[0][0].shape[1]
        nk = max(1, k0 // _MAX_TK)
        if nk > 1:
            tk = _round_up(-(-k0 // nk), 128)   # lane-aligned K tiles
            k_pad = nk * tk

    if nk == 1:
        grid = (nm,)
        dims = ("parallel",)
        x_map = lambda i: (i, 0)
        w_map = lambda i: (0, 0)
        fix_map = lambda i: (0, 0)
        row_map = lambda i: (i, 0)
    else:
        grid = (nm, nk)
        dims = ("parallel", "arbitrary")
        x_map = lambda i, k: (i, k)
        w_map = lambda i, k: (k, 0)
        fix_map = lambda i, k: (0, 0)
        row_map = lambda i, k: (i, 0)

    xs, ws, x_specs, w_specs = [], [], [], []
    for (x, w) in pairs:
        x = x.astype(jnp.bfloat16)
        w = w.astype(jnp.bfloat16)
        if x.shape[0] != m_pad:
            x = jnp.pad(x, ((0, m_pad - x.shape[0]), (0, 0)))
        if nk > 1 and x.shape[1] != k_pad:
            x = jnp.pad(x, ((0, 0), (0, k_pad - x.shape[1])))
            w = jnp.pad(w, ((0, k_pad - w.shape[0]), (0, 0)))
        blk_k = tk if nk > 1 else x.shape[1]
        xs.append(x)
        ws.append(w)
        x_specs.append(pl.BlockSpec((tm, blk_k), x_map))
        w_specs.append(pl.BlockSpec((blk_k, n_out), w_map))

    bias2d = bias.reshape(1, n_out).astype(jnp.float32)
    args = xs + ws + [bias2d]
    in_specs = x_specs + w_specs + [pl.BlockSpec((1, n_out), fix_map)]

    has_residual = residual is not None
    if has_residual:
        rm = residual.astype(jnp.bfloat16)
        if rm.shape[0] != m_pad:
            rm = jnp.pad(rm, ((0, m_pad - rm.shape[0]), (0, 0)))
        args.append(rm)
        in_specs.append(pl.BlockSpec((tm, n_out), row_map))

    scratch = [pltpu.VMEM((tm, n_out), jnp.float32)] if nk > 1 else []

    out = pl.pallas_call(
        _make_matmul_kernel(n_pairs, nk, has_residual, activation),
        grid=grid,
        in_specs=in_specs,
        out_specs=pl.BlockSpec((tm, n_out), row_map),
        out_shape=jax.ShapeDtypeStruct((m_pad, n_out), out_dtype),
        scratch_shapes=scratch,
        compiler_params=pltpu.CompilerParams(
            dimension_semantics=dims,
            vmem_limit_bytes=_VMEM_LIMIT),
    )(*args)

    return out[:m] if m_pad != m else out


# ----------------------------------------------------------------------------
# Vector-quantization kernel (tiled over M, codebook resident, per-row SSE
# emitted so the M axis is fully parallel; reduction to MSE done outside).
# ----------------------------------------------------------------------------
def _vq_kernel(ze_ref, ew_ref, zq_ref, idx_ref, sse_ref):
    ze = ze_ref[...].astype(jnp.float32)                  # (tm, D)
    ew = ew_ref[...].astype(jnp.float32)                  # (K, D)
    ze_sq = jnp.sum(ze * ze, axis=-1, keepdims=True)      # (tm, 1)
    ew_sq = jnp.sum(ew * ew, axis=-1, keepdims=True)      # (K, 1)
    cross = jnp.dot(ze, ew.T, preferred_element_type=jnp.float32)
    dist = ze_sq - 2.0 * cross + ew_sq.T                  # (tm, K)
    min_d = jnp.min(dist, axis=-1, keepdims=True)
    iota_k = jax.lax.broadcasted_iota(jnp.int32, dist.shape, 1)
    big = jnp.int32(2 ** 30)
    # first index achieving the minimum (matches torch.min tie-breaking)
    idx = jnp.min(jnp.where(dist <= min_d, iota_k, big), axis=-1)     # (tm,)
    onehot = (iota_k == idx[:, None]).astype(jnp.float32)
    zq = jnp.dot(onehot, ew, preferred_element_type=jnp.float32)      # (tm, D)
    zq_ref[...] = zq.astype(zq_ref.dtype)
    idx_ref[...] = idx[:, None]
    diff = zq - ze
    sse_ref[...] = jnp.sum(diff * diff, axis=-1, keepdims=True)       # (tm, 1)


def quantize(ze_nhwc, embed_w):
    """QuantizedEmbedding.forward (inference): returns (zq, mse, idx)."""
    n, h, w, d = ze_nhwc.shape
    m = n * h * w
    ze_flat = ze_nhwc.reshape(m, d)

    nm = max(1, -(-m // _MAX_TM))
    tm = _round_up(-(-m // nm), 16)
    m_pad = nm * tm
    if m_pad != m:
        ze_flat = jnp.pad(ze_flat, ((0, m_pad - m), (0, 0)))

    zq, idx, sse = pl.pallas_call(
        _vq_kernel,
        grid=(nm,),
        in_specs=[pl.BlockSpec((tm, d), lambda i: (i, 0)),
                  pl.BlockSpec(embed_w.shape, lambda i: (0, 0))],
        out_specs=(pl.BlockSpec((tm, d), lambda i: (i, 0)),
                   pl.BlockSpec((tm, 1), lambda i: (i, 0)),
                   pl.BlockSpec((tm, 1), lambda i: (i, 0))),
        out_shape=(jax.ShapeDtypeStruct((m_pad, d), jnp.bfloat16),
                   jax.ShapeDtypeStruct((m_pad, 1), jnp.int32),
                   jax.ShapeDtypeStruct((m_pad, 1), jnp.float32)),
        compiler_params=pltpu.CompilerParams(
            dimension_semantics=("parallel",),
            vmem_limit_bytes=_VMEM_LIMIT),
    )(ze_flat, embed_w)

    mse = jnp.sum(sse[:m, 0]) / float(m * d)
    zq = zq[:m].reshape(n, h, w, d)
    idx = idx[:m, 0].reshape(n, h, w)
    # straight-through: zq = ze + stop_grad(zq - ze) == zq numerically (inference)
    return zq, mse, idx


# ----------------------------------------------------------------------------
# Conv / ConvTranspose wrappers (im2col glue in plain JAX)
# ----------------------------------------------------------------------------
def _im2col(x, kh, kw, stride, padding):
    n, h, w, c = x.shape
    if kh == 1 and kw == 1 and stride == 1 and padding == 0:
        return x.reshape(n * h * w, c)
    xp = x
    if padding:
        xp = jnp.pad(x, ((0, 0), (padding, padding), (padding, padding), (0, 0)))
    ho = (h + 2 * padding - kh) // stride + 1
    wo = (w + 2 * padding - kw) // stride + 1
    cols = []
    for i in range(kh):
        for j in range(kw):
            cols.append(xp[:, i:i + stride * (ho - 1) + 1:stride,
                              j:j + stride * (wo - 1) + 1:stride, :])
    return jnp.concatenate(cols, axis=-1).reshape(n * ho * wo, kh * kw * c)


def conv2d(x, p, kh, kw, stride=1, padding=0, activation="none",
           residual=None, out_dtype=jnp.bfloat16):
    """x: array or list of arrays (virtual channel-concat).  p: {"w","b"}."""
    xs = list(x) if isinstance(x, (list, tuple)) else [x]
    ws = list(p["w"]) if isinstance(p["w"], (list, tuple)) else [p["w"]]
    assert len(xs) == len(ws)
    n, h, w_, _ = xs[0].shape
    ho = (h + 2 * padding - kh) // stride + 1
    wo = (w_ + 2 * padding - kw) // stride + 1
    cout = ws[0].shape[1]

    pairs = [(_im2col(xi, kh, kw, stride, padding), wi) for xi, wi in zip(xs, ws)]
    rm = residual.reshape(n * ho * wo, cout) if residual is not None else None
    out = fused_matmul(pairs, p["b"], activation=activation, residual=rm,
                       out_dtype=out_dtype)
    return out.reshape(n, ho, wo, cout)


def conv_transpose2d(x, p, activation="none"):
    """ConvTranspose2d(k=4,s=2,p=1) via equivalent 3x3 conv + depth-to-space."""
    n, h, w, _ = x.shape
    cout = p["w"].shape[1] // 4
    y = conv2d(x, p, 3, 3, stride=1, padding=1, activation=activation)  # 4*cout
    y = y.reshape(n, h, w, 2, 2, cout)
    y = jnp.transpose(y, (0, 1, 3, 2, 4, 5)).reshape(n, 2 * h, 2 * w, cout)
    return y


# ----------------------------------------------------------------------------
# Network blocks
# ----------------------------------------------------------------------------
def resblock_fwd(x, p):
    # conv3x3 -> BN(eval, pre-folded) -> Dropout(identity) -> ReLU -> conv1x1
    h = conv2d(x, p["c1"], 3, 3, stride=1, padding=1, activation="relu")
    # out = relu(conv1x1(h) + x): residual add + relu fused in the kernel
    return conv2d(h, p["c2"], 1, 1, activation="relu", residual=x)


def bottom_encoder(x, p):  # downsample_ratio=4
    h = conv2d(x, p["c1"], 4, 4, stride=2, padding=1, activation="relu")
    h = conv2d(h, p["c2"], 4, 4, stride=2, padding=1, activation="relu")
    h = conv2d(h, p["c3"], 3, 3, stride=1, padding=1, activation="relu")
    for rp in p["rb"]:
        h = resblock_fwd(h, rp)
    return h


def top_encoder(x, p):  # downsample_ratio=2
    h = conv2d(x, p["c1"], 4, 4, stride=2, padding=1, activation="relu")
    h = conv2d(h, p["c2"], 3, 3, stride=1, padding=1, activation="relu")
    for rp in p["rb"]:
        h = resblock_fwd(h, rp)
    return h


def top_decoder(x, p):  # upsample_ratio=2
    h = conv2d(x, p["c1"], 3, 3, stride=1, padding=1, activation="relu")
    for rp in p["rb"]:
        h = resblock_fwd(h, rp)
    return conv_transpose2d(h, p["ct"])


def bottom_decoder(xs, p):  # upsample_ratio=4; xs is the (virtual) concat input
    h = conv2d(xs, p["c1"], 3, 3, stride=1, padding=1, activation="relu")
    for rp in p["rb"]:
        h = resblock_fwd(h, rp)
    h = conv_transpose2d(h, p["ct1"], activation="relu")
    return conv_transpose2d(h, p["ct2"], activation="relu")


def vqvae_forward(params, x_nchw):
    x = jnp.transpose(x_nchw, (0, 2, 3, 1)).astype(jnp.bfloat16)  # NCHW -> NHWC
    b_enc = bottom_encoder(x, params["bot_enc"])
    t_enc = top_encoder(b_enc, params["top_enc"])

    t_ze = conv2d(t_enc, params["top_qconv"], 1, 1, out_dtype=jnp.float32)
    t_q, t_dist, t_idx = quantize(t_ze, params["top_embedW"])

    t_dec = top_decoder(t_q, params["top_dec"])
    # bottom quantize conv fused over the virtual concat [t_dec, b_enc]
    b_ze = conv2d([t_dec, b_enc], params["bot_qconv"], 1, 1,
                  out_dtype=jnp.float32)
    b_q, b_dist, b_idx = quantize(b_ze, params["bot_embedW"])
    latent_loss = b_dist + t_dist

    # VQVAE.decode: upsample top codes, concat with bottom codes (fused)
    upsampled = conv_transpose2d(t_q, params["upsample"])
    b_decoded = bottom_decoder([upsampled, b_q], params["bot_dec"])

    # TODO(synk): the reference `decode` has no return statement (returns None)
    # and `forward` uses an invalid `.view(-1, -1, H, W)`; we implement the
    # evident intent and return the decoded image + latent loss.
    return (jnp.transpose(b_decoded, (0, 3, 1, 2)).astype(jnp.float32),
            latent_loss)


# ----------------------------------------------------------------------------
# Deterministic parameter initialization (PyTorch layouts) + preparation
# ----------------------------------------------------------------------------
class ParamGen:
    def __init__(self, key):
        self.key = key
        self.i = 0

    def __call__(self, shape, scale=0.1):
        k = jax.random.fold_in(self.key, self.i)
        self.i += 1
        return scale * jax.random.normal(k, shape, dtype=jnp.float32)


def init_raw_params(in_channels, hidden, embed, n_embed, n_res):
    pg = ParamGen(jax.random.PRNGKey(42))

    def conv(cout, cin, k):
        return {"w": pg((cout, cin, k, k)), "b": pg((cout,), 0.05)}

    def convT(cin, cout, k):
        return {"w": pg((cin, cout, k, k)), "b": pg((cout,), 0.05)}

    def resblock(in_ch, ch):
        return {"c1": conv(ch, in_ch, 3), "c2": conv(in_ch, ch, 1)}

    h2 = hidden // 2
    return {
        "bot_enc": {"c1": conv(h2, in_channels, 4), "c2": conv(hidden, h2, 4),
                    "c3": conv(hidden, hidden, 3),
                    "rb": [resblock(hidden, h2) for _ in range(n_res)]},
        "top_enc": {"c1": conv(h2, hidden, 4), "c2": conv(hidden, h2, 3),
                    "rb": [resblock(hidden, h2) for _ in range(n_res)]},
        "top_qconv": conv(embed, hidden, 1),
        "top_embedW": pg((n_embed, embed), 1.0),
        "top_dec": {"c1": conv(hidden, embed, 3),
                    "rb": [resblock(hidden, h2) for _ in range(n_res)],
                    "ct": convT(hidden, embed, 4)},
        "bot_qconv": conv(embed, embed + hidden, 1),
        "bot_embedW": pg((n_embed, embed), 1.0),
        "upsample": convT(embed, embed, 4),
        "bot_dec": {"c1": conv(hidden, embed + embed, 3),
                    "rb": [resblock(hidden, h2) for _ in range(n_res)],
                    "ct1": convT(hidden, h2, 4),
                    "ct2": convT(h2, in_channels, 4)},
    }


def _conv_wm(w_oihw, bn_fold=False):
    cout, cin, kh, kw = w_oihw.shape
    w = w_oihw * BN_SCALE if bn_fold else w_oihw
    return jnp.transpose(w, (2, 3, 1, 0)).reshape(kh * kw * cin, cout).astype(
        jnp.bfloat16)


def _prep_conv(p, bn_fold=False):
    b = p["b"] * BN_SCALE if bn_fold else p["b"]
    return {"w": _conv_wm(p["w"], bn_fold), "b": b.astype(jnp.float32)}


def _prep_conv_split(p, splits):
    """Split a conv's input channels so the preceding concat can be fused."""
    ws = []
    start = 0
    for c in splits:
        ws.append(_conv_wm(p["w"][:, start:start + c]))
        start += c
    return {"w": tuple(ws), "b": p["b"].astype(jnp.float32)}


def _prep_convT(p):
    """ConvTranspose2d(k=4,s=2,p=1) -> equivalent 3x3 conv with 4*Cout outputs.

    out[n, 2i+r, 2j+s, co] = sum_{a,b,ci} x_pad[n, i+a, j+b, ci] *
                             W_T[ci, co, 3+r-2a, 3+s-2b]   (valid kh/kw only)
    followed by a depth-to-space shuffle.
    """
    wT, b = p["w"], p["b"]                      # (cin, cout, 4, 4)
    cin, cout = wT.shape[0], wT.shape[1]
    w_eq = jnp.zeros((3, 3, cin, 4 * cout), jnp.float32)
    for r in range(2):
        for s in range(2):
            q = r * 2 + s
            for a in range(3):
                kh = 3 + r - 2 * a
                if kh < 0 or kh > 3:
                    continue
                for c in range(3):
                    kw = 3 + s - 2 * c
                    if kw < 0 or kw > 3:
                        continue
                    w_eq = w_eq.at[a, c, :, q * cout:(q + 1) * cout].set(
                        wT[:, :, kh, kw])
    return {"w": w_eq.reshape(9 * cin, 4 * cout).astype(jnp.bfloat16),
            "b": jnp.tile(b, 4).astype(jnp.float32)}


def prepare_params(raw, hidden, embed):
    """Fold BN, convert to matmul layouts, build convT equivalents (outside jit)."""
    def rbs(lst):
        return [{"c1": _prep_conv(r["c1"], bn_fold=True),
                 "c2": _prep_conv(r["c2"])} for r in lst]

    return {
        "bot_enc": {"c1": _prep_conv(raw["bot_enc"]["c1"], bn_fold=True),
                    "c2": _prep_conv(raw["bot_enc"]["c2"], bn_fold=True),
                    "c3": _prep_conv(raw["bot_enc"]["c3"]),
                    "rb": rbs(raw["bot_enc"]["rb"])},
        "top_enc": {"c1": _prep_conv(raw["top_enc"]["c1"]),
                    "c2": _prep_conv(raw["top_enc"]["c2"]),
                    "rb": rbs(raw["top_enc"]["rb"])},
        "top_qconv": _prep_conv(raw["top_qconv"]),
        "top_embedW": raw["top_embedW"].astype(jnp.float32),
        "top_dec": {"c1": _prep_conv(raw["top_dec"]["c1"]),
                    "rb": rbs(raw["top_dec"]["rb"]),
                    "ct": _prep_convT(raw["top_dec"]["ct"])},
        "bot_qconv": _prep_conv_split(raw["bot_qconv"], (embed, hidden)),
        "bot_embedW": raw["bot_embedW"].astype(jnp.float32),
        "upsample": _prep_convT(raw["upsample"]),
        "bot_dec": {"c1": _prep_conv_split(raw["bot_dec"]["c1"], (embed, embed)),
                    "rb": rbs(raw["bot_dec"]["rb"]),
                    "ct1": _prep_convT(raw["bot_dec"]["ct1"]),
                    "ct2": _prep_convT(raw["bot_dec"]["ct2"])},
    }


if __name__ == "__main__":
    in_channels, hidden, embed, n_embed, n_res = 3, 32, 16, 32, 2
    raw = init_raw_params(in_channels, hidden, embed, n_embed, n_res)
    params = prepare_params(raw, hidden, embed)   # one-time, outside jit

    x = jax.random.normal(jax.random.PRNGKey(0), (2, in_channels, 16, 16),
                          dtype=jnp.float32)

    fwd = jax.jit(vqvae_forward)
    decoded, latent_loss = fwd(params, x)
    jax.block_until_ready((decoded, latent_loss))

    assert decoded.shape == (2, in_channels, 16, 16), decoded.shape
    assert latent_loss.shape == (), latent_loss.shape
    assert jnp.isfinite(decoded).all() and jnp.isfinite(latent_loss)
    print("KERNEL_OK")
</pallas_src>

<mosaic_0001>
module attributes {stable_mosaic.version = 11 : i64} {
  func.func @kernel(%arg0: i32, %arg1: memref<128x48xbf16, #tpu.memory_space<vmem>>, %arg2: memref<48x16xbf16, #tpu.memory_space<vmem>>, %arg3: memref<1x16xf32, #tpu.memory_space<vmem>>, %arg4: memref<128x16xbf16, #tpu.memory_space<vmem>>) attributes {dimension_semantics = [#tpu.dimension_semantics<parallel>], iteration_bounds = array<i64: 1>, scalar_prefetch = 0 : i64, scratch_operands = 0 : i64, tpu.core_type = #tpu.core_type<tc>, window_params = [{transform_indices = @transform_0, window_bounds = array<i64: 128, 48>}, {pipeline_mode = #tpu.pipeline_mode<synchronous>, transform_indices = @transform_1, window_bounds = array<i64: 48, 16>}, {pipeline_mode = #tpu.pipeline_mode<synchronous>, transform_indices = @transform_2, window_bounds = array<i64: 1, 16>}, {transform_indices = @transform_3, window_bounds = array<i64: 128, 16>}]} {
    %c0 = arith.constant 0 : index
    %c0_0 = arith.constant 0 : index
    %0 = vector.load %arg1[%c0, %c0_0] : memref<128x48xbf16, #tpu.memory_space<vmem>>, vector<128x48xbf16>
    %c0_1 = arith.constant 0 : index
    %c0_2 = arith.constant 0 : index
    %1 = vector.load %arg2[%c0_1, %c0_2] : memref<48x16xbf16, #tpu.memory_space<vmem>>, vector<48x16xbf16>
    %cst = arith.constant dense<0.000000e+00> : vector<128x16xf32>
    %2 = tpu.matmul %0, %1, %cst {dimension_numbers = #tpu.dot_dimension_numbers<[1], [0], [0], [1], [0, 0, 1, 1], [], []>} : vector<128x48xbf16>, vector<48x16xbf16>, vector<128x16xf32> -> vector<128x16xf32>
    %c0_3 = arith.constant 0 : index
    %c0_4 = arith.constant 0 : index
    %3 = vector.load %arg3[%c0_3, %c0_4] : memref<1x16xf32, #tpu.memory_space<vmem>>, vector<1x16xf32>
    %4 = vector.broadcast %3 : vector<1x16xf32> to vector<128x16xf32>
    %5 = arith.addf %2, %4 : vector<128x16xf32>
    %cst_5 = arith.constant 0.000000e+00 : f32
    %6 = vector.broadcast %cst_5 : f32 to vector<128x16xf32>
    %7 = arith.maximumf %5, %6 : vector<128x16xf32>
    %8 = arith.truncf %7 : vector<128x16xf32> to vector<128x16xbf16>
    %c0_6 = arith.constant 0 : index
    %c0_7 = arith.constant 0 : index
    %9 = vector.load %arg4[%c0_6, %c0_7] : memref<128x16xbf16, #tpu.memory_space<vmem>>, vector<128x16xbf16>
    tpu.vector_store %arg4[%c0_6, %c0_7], %8 {strides = array<i32>} : memref<128x16xbf16, #tpu.memory_space<vmem>>, vector<128x16xbf16>,
    return
  }
  func.func @transform_0(%arg0: i32) -> (i32, i32) {
    %c0_i32 = arith.constant 0 : i32
    %c0_i32_0 = arith.constant 0 : i32
    return %arg0, %c0_i32 : i32, i32
  }
  func.func @transform_1(%arg0: i32) -> (i32, i32) {
    %c0_i32 = arith.constant 0 : i32
    %c0_i32_0 = arith.constant 0 : i32
    %c0_i32_1 = arith.constant 0 : i32
    return %c0_i32, %c0_i32_0 : i32, i32
  }
  func.func @transform_2(%arg0: i32) -> (i32, i32) {
    %c0_i32 = arith.constant 0 : i32
    %c0_i32_0 = arith.constant 0 : i32
    %c0_i32_1 = arith.constant 0 : i32
    return %c0_i32, %c0_i32_0 : i32, i32
  }
  func.func @transform_3(%arg0: i32) -> (i32, i32) {
    %c0_i32 = arith.constant 0 : i32
    %c0_i32_0 = arith.constant 0 : i32
    return %arg0, %c0_i32 : i32, i32
  }
}

module attributes {stable_mosaic.version = 11 : i64} {
  func.func @kernel(%arg0: i32, %arg1: memref<32x256xbf16, #tpu.memory_space<vmem>>, %arg2: memref<256x32xbf16, #tpu.memory_space<vmem>>, %arg3: memref<1x32xf32, #tpu.memory_space<vmem>>, %arg4: memref<32x32xbf16, #tpu.memory_space<vmem>>) attributes {dimension_semantics = [#tpu.dimension_semantics<parallel>], iteration_bounds = array<i64: 1>, scalar_prefetch = 0 : i64, scratch_operands = 0 : i64, tpu.core_type = #tpu.core_type<tc>, window_params = [{transform_indices = @transform_0, window_bounds = array<i64: 32, 256>}, {pipeline_mode = #tpu.pipeline_mode<synchronous>, transform_indices = @transform_1, window_bounds = array<i64: 256, 32>}, {pipeline_mode = #tpu.pipeline_mode<synchronous>, transform_indices = @transform_2, window_bounds = array<i64: 1, 32>}, {transform_indices = @transform_3, window_bounds = array<i64: 32, 32>}]} {
    %c0 = arith.constant 0 : index
    %c0_0 = arith.constant 0 : index
    %0 = vector.load %arg1[%c0, %c0_0] : memref<32x256xbf16, #tpu.memory_space<vmem>>, vector<32x256xbf16>
    %c0_1 = arith.constant 0 : index
    %c0_2 = arith.constant 0 : index
    %1 = vector.load %arg2[%c0_1, %c0_2] : memref<256x32xbf16, #tpu.memory_space<vmem>>, vector<256x32xbf16>
    %cst = arith.constant dense<0.000000e+00> : vector<32x32xf32>
    %2 = tpu.matmul %0, %1, %cst {dimension_numbers = #tpu.dot_dimension_numbers<[1], [0], [0], [1], [0, 0, 1, 1], [], []>} : vector<32x256xbf16>, vector<256x32xbf16>, vector<32x32xf32> -> vector<32x32xf32>
    %c0_3 = arith.constant 0 : index
    %c0_4 = arith.constant 0 : index
    %3 = vector.load %arg3[%c0_3, %c0_4] : memref<1x32xf32, #tpu.memory_space<vmem>>, vector<1x32xf32>
    %4 = vector.broadcast %3 : vector<1x32xf32> to vector<32x32xf32>
    %5 = arith.addf %2, %4 : vector<32x32xf32>
    %cst_5 = arith.constant 0.000000e+00 : f32
    %6 = vector.broadcast %cst_5 : f32 to vector<32x32xf32>
    %7 = arith.maximumf %5, %6 : vector<32x32xf32>
    %8 = arith.truncf %7 : vector<32x32xf32> to vector<32x32xbf16>
    %c0_6 = arith.constant 0 : index
    %c0_7 = arith.constant 0 : index
    %9 = vector.load %arg4[%c0_6, %c0_7] : memref<32x32xbf16, #tpu.memory_space<vmem>>, vector<32x32xbf16>
    tpu.vector_store %arg4[%c0_6, %c0_7], %8 {strides = array<i32>} : memref<32x32xbf16, #tpu.memory_space<vmem>>, vector<32x32xbf16>,
    return
  }
  func.func @transform_0(%arg0: i32) -> (i32, i32) {
    %c0_i32 = arith.constant 0 : i32
    %c0_i32_0 = arith.constant 0 : i32
    return %arg0, %c0_i32 : i32, i32
  }
  func.func @transform_1(%arg0: i32) -> (i32, i32) {
    %c0_i32 = arith.constant 0 : i32
    %c0_i32_0 = arith.constant 0 : i32
    %c0_i32_1 = arith.constant 0 : i32
    return %c0_i32, %c0_i32_0 : i32, i32
  }
  func.func @transform_2(%arg0: i32) -> (i32, i32) {
    %c0_i32 = arith.constant 0 : i32
    %c0_i32_0 = arith.constant 0 : i32
    %c0_i32_1 = arith.constant 0 : i32
    return %c0_i32, %c0_i32_0 : i32, i32
  }
  func.func @transform_3(%arg0: i32) -> (i32, i32) {
    %c0_i32 = arith.constant 0 : i32
    %c0_i32_0 = arith.constant 0 : i32
    return %arg0, %c0_i32 : i32, i32
  }
}

module attributes {stable_mosaic.version = 11 : i64} {
  func.func @kernel(%arg0: i32, %arg1: memref<32x288xbf16, #tpu.memory_space<vmem>>, %arg2: memref<288x32xbf16, #tpu.memory_space<vmem>>, %arg3: memref<1x32xf32, #tpu.memory_space<vmem>>, %arg4: memref<32x32xbf16, #tpu.memory_space<vmem>>) attributes {dimension_semantics = [#tpu.dimension_semantics<parallel>], iteration_bounds = array<i64: 1>, scalar_prefetch = 0 : i64, scratch_operands = 0 : i64, tpu.core_type = #tpu.core_type<tc>, window_params = [{transform_indices = @transform_0, window_bounds = array<i64: 32, 288>}, {pipeline_mode = #tpu.pipeline_mode<synchronous>, transform_indices = @transform_1, window_bounds = array<i64: 288, 32>}, {pipeline_mode = #tpu.pipeline_mode<synchronous>, transform_indices = @transform_2, window_bounds = array<i64: 1, 32>}, {transform_indices = @transform_3, window_bounds = array<i64: 32, 32>}]} {
    %c0 = arith.constant 0 : index
    %c0_0 = arith.constant 0 : index
    %0 = vector.load %arg1[%c0, %c0_0] : memref<32x288xbf16, #tpu.memory_space<vmem>>, vector<32x288xbf16>
    %c0_1 = arith.constant 0 : index
    %c0_2 = arith.constant 0 : index
    %1 = vector.load %arg2[%c0_1, %c0_2] : memref<288x32xbf16, #tpu.memory_space<vmem>>, vector<288x32xbf16>
    %cst = arith.constant dense<0.000000e+00> : vector<32x32xf32>
    %2 = tpu.matmul %0, %1, %cst {dimension_numbers = #tpu.dot_dimension_numbers<[1], [0], [0], [1], [0, 0, 1, 1], [], []>} : vector<32x288xbf16>, vector<288x32xbf16>, vector<32x32xf32> -> vector<32x32xf32>
    %c0_3 = arith.constant 0 : index
    %c0_4 = arith.constant 0 : index
    %3 = vector.load %arg3[%c0_3, %c0_4] : memref<1x32xf32, #tpu.memory_space<vmem>>, vector<1x32xf32>
    %4 = vector.broadcast %3 : vector<1x32xf32> to vector<32x32xf32>
    %5 = arith.addf %2, %4 : vector<32x32xf32>
    %cst_5 = arith.constant 0.000000e+00 : f32
    %6 = vector.broadcast %cst_5 : f32 to vector<32x32xf32>
    %7 = arith.maximumf %5, %6 : vector<32x32xf32>
    %8 = arith.truncf %7 : vector<32x32xf32> to vector<32x32xbf16>
    %c0_6 = arith.constant 0 : index
    %c0_7 = arith.constant 0 : index
    %9 = vector.load %arg4[%c0_6, %c0_7] : memref<32x32xbf16, #tpu.memory_space<vmem>>, vector<32x32xbf16>
    tpu.vector_store %arg4[%c0_6, %c0_7], %8 {strides = array<i32>} : memref<32x32xbf16, #tpu.memory_space<vmem>>, vector<32x32xbf16>,
    return
  }
  func.func @transform_0(%arg0: i32) -> (i32, i32) {
    %c0_i32 = arith.constant 0 : i32
    %c0_i32_0 = arith.constant 0 : i32
    return %arg0, %c0_i32 : i32, i32
  }
  func.func @transform_1(%arg0: i32) -> (i32, i32) {
    %c0_i32 = arith.constant 0 : i32
    %c0_i32_0 = arith.constant 0 : i32
    %c0_i32_1 = arith.constant 0 : i32
    return %c0_i32, %c0_i32_0 : i32, i32
  }
  func.func @transform_2(%arg0: i32) -> (i32, i32) {
    %c0_i32 = arith.constant 0 : i32
    %c0_i32_0 = arith.constant 0 : i32
    %c0_i32_1 = arith.constant 0 : i32
    return %c0_i32, %c0_i32_0 : i32, i32
  }
  func.func @transform_3(%arg0: i32) -> (i32, i32) {
    %c0_i32 = arith.constant 0 : i32
    %c0_i32_0 = arith.constant 0 : i32
    return %arg0, %c0_i32 : i32, i32
  }
}

module attributes {stable_mosaic.version = 11 : i64} {
  func.func @kernel(%arg0: i32, %arg1: memref<32x16xbf16, #tpu.memory_space<vmem>>, %arg2: memref<16x32xbf16, #tpu.memory_space<vmem>>, %arg3: memref<1x32xf32, #tpu.memory_space<vmem>>, %arg4: memref<32x32xbf16, #tpu.memory_space<vmem>>, %arg5: memref<32x32xbf16, #tpu.memory_space<vmem>>) attributes {dimension_semantics = [#tpu.dimension_semantics<parallel>], iteration_bounds = array<i64: 1>, scalar_prefetch = 0 : i64, scratch_operands = 0 : i64, tpu.core_type = #tpu.core_type<tc>, window_params = [{transform_indices = @transform_0, window_bounds = array<i64: 32, 16>}, {pipeline_mode = #tpu.pipeline_mode<synchronous>, transform_indices = @transform_1, window_bounds = array<i64: 16, 32>}, {pipeline_mode = #tpu.pipeline_mode<synchronous>, transform_indices = @transform_2, window_bounds = array<i64: 1, 32>}, {transform_indices = @transform_3, window_bounds = array<i64: 32, 32>}, {transform_indices = @transform_4, window_bounds = array<i64: 32, 32>}]} {
    %c0 = arith.constant 0 : index
    %c0_0 = arith.constant 0 : index
    %0 = vector.load %arg1[%c0, %c0_0] : memref<32x16xbf16, #tpu.memory_space<vmem>>, vector<32x16xbf16>
    %c0_1 = arith.constant 0 : index
    %c0_2 = arith.constant 0 : index
    %1 = vector.load %arg2[%c0_1, %c0_2] : memref<16x32xbf16, #tpu.memory_space<vmem>>, vector<16x32xbf16>
    %cst = arith.constant dense<0.000000e+00> : vector<32x32xf32>
    %2 = tpu.matmul %0, %1, %cst {dimension_numbers = #tpu.dot_dimension_numbers<[1], [0], [0], [1], [0, 0, 1, 1], [], []>} : vector<32x16xbf16>, vector<16x32xbf16>, vector<32x32xf32> -> vector<32x32xf32>
    %c0_3 = arith.constant 0 : index
    %c0_4 = arith.constant 0 : index
    %3 = vector.load %arg3[%c0_3, %c0_4] : memref<1x32xf32, #tpu.memory_space<vmem>>, vector<1x32xf32>
    %4 = vector.broadcast %3 : vector<1x32xf32> to vector<32x32xf32>
    %5 = arith.addf %2, %4 : vector<32x32xf32>
    %c0_5 = arith.constant 0 : index
    %c0_6 = arith.constant 0 : index
    %6 = vector.load %arg4[%c0_5, %c0_6] : memref<32x32xbf16, #tpu.memory_space<vmem>>, vector<32x32xbf16>
    %7 = arith.extf %6 : vector<32x32xbf16> to vector<32x32xf32>
    %8 = arith.addf %5, %7 : vector<32x32xf32>
    %cst_7 = arith.constant 0.000000e+00 : f32
    %9 = vector.broadcast %cst_7 : f32 to vector<32x32xf32>
    %10 = arith.maximumf %8, %9 : vector<32x32xf32>
    %11 = arith.truncf %10 : vector<32x32xf32> to vector<32x32xbf16>
    %c0_8 = arith.constant 0 : index
    %c0_9 = arith.constant 0 : index
    %12 = vector.load %arg5[%c0_8, %c0_9] : memref<32x32xbf16, #tpu.memory_space<vmem>>, vector<32x32xbf16>
    tpu.vector_store %arg5[%c0_8, %c0_9], %11 {strides = array<i32>} : memref<32x32xbf16, #tpu.memory_space<vmem>>, vector<32x32xbf16>,
    return
  }
  func.func @transform_0(%arg0: i32) -> (i32, i32) {
    %c0_i32 = arith.constant 0 : i32
    %c0_i32_0 = arith.constant 0 : i32
    return %arg0, %c0_i32 : i32, i32
  }
  func.func @transform_1(%arg0: i32) -> (i32, i32) {
    %c0_i32 = arith.constant 0 : i32
    %c0_i32_0 = arith.constant 0 : i32
    %c0_i32_1 = arith.constant 0 : i32
    return %c0_i32, %c0_i32_0 : i32, i32
  }
  func.func @transform_2(%arg0: i32) -> (i32, i32) {
    %c0_i32 = arith.constant 0 : i32
    %c0_i32_0 = arith.constant 0 : i32
    %c0_i32_1 = arith.constant 0 : i32
    return %c0_i32, %c0_i32_0 : i32, i32
  }
  func.func @transform_3(%arg0: i32) -> (i32, i32) {
    %c0_i32 = arith.constant 0 : i32
    %c0_i32_0 = arith.constant 0 : i32
    return %arg0, %c0_i32 : i32, i32
  }
  func.func @transform_4(%arg0: i32) -> (i32, i32) {
    %c0_i32 = arith.constant 0 : i32
    %c0_i32_0 = arith.constant 0 : i32
    return %arg0, %c0_i32 : i32, i32
  }
}

module attributes {stable_mosaic.version = 11 : i64} {
  func.func @kernel(%arg0: i32, %arg1: memref<32x288xbf16, #tpu.memory_space<vmem>>, %arg2: memref<288x16xbf16, #tpu.memory_space<vmem>>, %arg3: memref<1x16xf32, #tpu.memory_space<vmem>>, %arg4: memref<32x16xbf16, #tpu.memory_space<vmem>>) attributes {dimension_semantics = [#tpu.dimension_semantics<parallel>], iteration_bounds = array<i64: 1>, scalar_prefetch = 0 : i64, scratch_operands = 0 : i64, tpu.core_type = #tpu.core_type<tc>, window_params = [{transform_indices = @transform_0, window_bounds = array<i64: 32, 288>}, {pipeline_mode = #tpu.pipeline_mode<synchronous>, transform_indices = @transform_1, window_bounds = array<i64: 288, 16>}, {pipeline_mode = #tpu.pipeline_mode<synchronous>, transform_indices = @transform_2, window_bounds = array<i64: 1, 16>}, {transform_indices = @transform_3, window_bounds = array<i64: 32, 16>}]} {
    %c0 = arith.constant 0 : index
    %c0_0 = arith.constant 0 : index
    %0 = vector.load %arg1[%c0, %c0_0] : memref<32x288xbf16, #tpu.memory_space<vmem>>, vector<32x288xbf16>
    %c0_1 = arith.constant 0 : index
    %c0_2 = arith.constant 0 : index
    %1 = vector.load %arg2[%c0_1, %c0_2] : memref<288x16xbf16, #tpu.memory_space<vmem>>, vector<288x16xbf16>
    %cst = arith.constant dense<0.000000e+00> : vector<32x16xf32>
    %2 = tpu.matmul %0, %1, %cst {dimension_numbers = #tpu.dot_dimension_numbers<[1], [0], [0], [1], [0, 0, 1, 1], [], []>} : vector<32x288xbf16>, vector<288x16xbf16>, vector<32x16xf32> -> vector<32x16xf32>
    %c0_3 = arith.constant 0 : index
    %c0_4 = arith.constant 0 : index
    %3 = vector.load %arg3[%c0_3, %c0_4] : memref<1x16xf32, #tpu.memory_space<vmem>>, vector<1x16xf32>
    %4 = vector.broadcast %3 : vector<1x16xf32> to vector<32x16xf32>
    %5 = arith.addf %2, %4 : vector<32x16xf32>
    %cst_5 = arith.constant 0.000000e+00 : f32
    %6 = vector.broadcast %cst_5 : f32 to vector<32x16xf32>
    %7 = arith.maximumf %5, %6 : vector<32x16xf32>
    %8 = arith.truncf %7 : vector<32x16xf32> to vector<32x16xbf16>
    %c0_6 = arith.constant 0 : index
    %c0_7 = arith.constant 0 : index
    %9 = vector.load %arg4[%c0_6, %c0_7] : memref<32x16xbf16, #tpu.memory_space<vmem>>, vector<32x16xbf16>
    tpu.vector_store %arg4[%c0_6, %c0_7], %8 {strides = array<i32>} : memref<32x16xbf16, #tpu.memory_space<vmem>>, vector<32x16xbf16>,
    return
  }
  func.func @transform_0(%arg0: i32) -> (i32, i32) {
    %c0_i32 = arith.constant 0 : i32
    %c0_i32_0 = arith.constant 0 : i32
    return %arg0, %c0_i32 : i32, i32
  }
  func.func @transform_1(%arg0: i32) -> (i32, i32) {
    %c0_i32 = arith.constant 0 : i32
    %c0_i32_0 = arith.constant 0 : i32
    %c0_i32_1 = arith.constant 0 : i32
    return %c0_i32, %c0_i32_0 : i32, i32
  }
  func.func @transform_2(%arg0: i32) -> (i32, i32) {
    %c0_i32 = arith.constant 0 : i32
    %c0_i32_0 = arith.constant 0 : i32
    %c0_i32_1 = arith.constant 0 : i32
    return %c0_i32, %c0_i32_0 : i32, i32
  }
  func.func @transform_3(%arg0: i32) -> (i32, i32) {
    %c0_i32 = arith.constant 0 : i32
    %c0_i32_0 = arith.constant 0 : i32
    return %arg0, %c0_i32 : i32, i32
  }
}

module attributes {stable_mosaic.version = 11 : i64} {
  func.func @kernel(%arg0: i32, %arg1: memref<16x512xbf16, #tpu.memory_space<vmem>>, %arg2: memref<512x16xbf16, #tpu.memory_space<vmem>>, %arg3: memref<1x16xf32, #tpu.memory_space<vmem>>, %arg4: memref<16x16xbf16, #tpu.memory_space<vmem>>) attributes {dimension_semantics = [#tpu.dimension_semantics<parallel>], iteration_bounds = array<i64: 1>, scalar_prefetch = 0 : i64, scratch_operands = 0 : i64, tpu.core_type = #tpu.core_type<tc>, window_params = [{transform_indices = @transform_0, window_bounds = array<i64: 16, 512>}, {pipeline_mode = #tpu.pipeline_mode<synchronous>, transform_indices = @transform_1, window_bounds = array<i64: 512, 16>}, {pipeline_mode = #tpu.pipeline_mode<synchronous>, transform_indices = @transform_2, window_bounds = array<i64: 1, 16>}, {transform_indices = @transform_3, window_bounds = array<i64: 16, 16>}]} {
    %c0 = arith.constant 0 : index
    %c0_0 = arith.constant 0 : index
    %0 = vector.load %arg1[%c0, %c0_0] : memref<16x512xbf16, #tpu.memory_space<vmem>>, vector<16x512xbf16>
    %c0_1 = arith.constant 0 : index
    %c0_2 = arith.constant 0 : index
    %1 = vector.load %arg2[%c0_1, %c0_2] : memref<512x16xbf16, #tpu.memory_space<vmem>>, vector<512x16xbf16>
    %cst = arith.constant dense<0.000000e+00> : vector<16x16xf32>
    %2 = tpu.matmul %0, %1, %cst {dimension_numbers = #tpu.dot_dimension_numbers<[1], [0], [0], [1], [0, 0, 1, 1], [], []>} : vector<16x512xbf16>, vector<512x16xbf16>, vector<16x16xf32> -> vector<16x16xf32>
    %c0_3 = arith.constant 0 : index
    %c0_4 = arith.constant 0 : index
    %3 = vector.load %arg3[%c0_3, %c0_4] : memref<1x16xf32, #tpu.memory_space<vmem>>, vector<1x16xf32>
    %4 = vector.broadcast %3 : vector<1x16xf32> to vector<16x16xf32>
    %5 = arith.addf %2, %4 : vector<16x16xf32>
    %cst_5 = arith.constant 0.000000e+00 : f32
    %6 = vector.broadcast %cst_5 : f32 to vector<16x16xf32>
    %7 = arith.maximumf %5, %6 : vector<16x16xf32>
    %8 = arith.truncf %7 : vector<16x16xf32> to vector<16x16xbf16>
    %c0_6 = arith.constant 0 : index
    %c0_7 = arith.constant 0 : index
    %9 = vector.load %arg4[%c0_6, %c0_7] : memref<16x16xbf16, #tpu.memory_space<vmem>>, vector<16x16xbf16>
    tpu.vector_store %arg4[%c0_6, %c0_7], %8 {strides = array<i32>} : memref<16x16xbf16, #tpu.memory_space<vmem>>, vector<16x16xbf16>,
    return
  }
  func.func @transform_0(%arg0: i32) -> (i32, i32) {
    %c0_i32 = arith.constant 0 : i32
    %c0_i32_0 = arith.constant 0 : i32
    return %arg0, %c0_i32 : i32, i32
  }
  func.func @transform_1(%arg0: i32) -> (i32, i32) {
    %c0_i32 = arith.constant 0 : i32
    %c0_i32_0 = arith.constant 0 : i32
    %c0_i32_1 = arith.constant 0 : i32
    return %c0_i32, %c0_i32_0 : i32, i32
  }
  func.func @transform_2(%arg0: i32) -> (i32, i32) {
    %c0_i32 = arith.constant 0 : i32
    %c0_i32_0 = arith.constant 0 : i32
    %c0_i32_1 = arith.constant 0 : i32
    return %c0_i32, %c0_i32_0 : i32, i32
  }
  func.func @transform_3(%arg0: i32) -> (i32, i32) {
    %c0_i32 = arith.constant 0 : i32
    %c0_i32_0 = arith.constant 0 : i32
    return %arg0, %c0_i32 : i32, i32
  }
}

module attributes {stable_mosaic.version = 11 : i64} {
  func.func @kernel(%arg0: i32, %arg1: memref<16x144xbf16, #tpu.memory_space<vmem>>, %arg2: memref<144x32xbf16, #tpu.memory_space<vmem>>, %arg3: memref<1x32xf32, #tpu.memory_space<vmem>>, %arg4: memref<16x32xbf16, #tpu.memory_space<vmem>>) attributes {dimension_semantics = [#tpu.dimension_semantics<parallel>], iteration_bounds = array<i64: 1>, scalar_prefetch = 0 : i64, scratch_operands = 0 : i64, tpu.core_type = #tpu.core_type<tc>, window_params = [{transform_indices = @transform_0, window_bounds = array<i64: 16, 144>}, {pipeline_mode = #tpu.pipeline_mode<synchronous>, transform_indices = @transform_1, window_bounds = array<i64: 144, 32>}, {pipeline_mode = #tpu.pipeline_mode<synchronous>, transform_indices = @transform_2, window_bounds = array<i64: 1, 32>}, {transform_indices = @transform_3, window_bounds = array<i64: 16, 32>}]} {
    %c0 = arith.constant 0 : index
    %c0_0 = arith.constant 0 : index
    %0 = vector.load %arg1[%c0, %c0_0] : memref<16x144xbf16, #tpu.memory_space<vmem>>, vector<16x144xbf16>
    %c0_1 = arith.constant 0 : index
    %c0_2 = arith.constant 0 : index
    %1 = vector.load %arg2[%c0_1, %c0_2] : memref<144x32xbf16, #tpu.memory_space<vmem>>, vector<144x32xbf16>
    %cst = arith.constant dense<0.000000e+00> : vector<16x32xf32>
    %2 = tpu.matmul %0, %1, %cst {dimension_numbers = #tpu.dot_dimension_numbers<[1], [0], [0], [1], [0, 0, 1, 1], [], []>} : vector<16x144xbf16>, vector<144x32xbf16>, vector<16x32xf32> -> vector<16x32xf32>
    %c0_3 = arith.constant 0 : index
    %c0_4 = arith.constant 0 : index
    %3 = vector.load %arg3[%c0_3, %c0_4] : memref<1x32xf32, #tpu.memory_space<vmem>>, vector<1x32xf32>
    %4 = vector.broadcast %3 : vector<1x32xf32> to vector<16x32xf32>
    %5 = arith.addf %2, %4 : vector<16x32xf32>
    %cst_5 = arith.constant 0.000000e+00 : f32
    %6 = vector.broadcast %cst_5 : f32 to vector<16x32xf32>
    %7 = arith.maximumf %5, %6 : vector<16x32xf32>
    %8 = arith.truncf %7 : vector<16x32xf32> to vector<16x32xbf16>
    %c0_6 = arith.constant 0 : index
    %c0_7 = arith.constant 0 : index
    %9 = vector.load %arg4[%c0_6, %c0_7] : memref<16x32xbf16, #tpu.memory_space<vmem>>, vector<16x32xbf16>
    tpu.vector_store %arg4[%c0_6, %c0_7], %8 {strides = array<i32>} : memref<16x32xbf16, #tpu.memory_space<vmem>>, vector<16x32xbf16>,
    return
  }
  func.func @transform_0(%arg0: i32) -> (i32, i32) {
    %c0_i32 = arith.constant 0 : i32
    %c0_i32_0 = arith.constant 0 : i32
    return %arg0, %c0_i32 : i32, i32
  }
  func.func @transform_1(%arg0: i32) -> (i32, i32) {
    %c0_i32 = arith.constant 0 : i32
    %c0_i32_0 = arith.constant 0 : i32
    %c0_i32_1 = arith.constant 0 : i32
    return %c0_i32, %c0_i32_0 : i32, i32
  }
  func.func @transform_2(%arg0: i32) -> (i32, i32) {
    %c0_i32 = arith.constant 0 : i32
    %c0_i32_0 = arith.constant 0 : i32
    %c0_i32_1 = arith.constant 0 : i32
    return %c0_i32, %c0_i32_0 : i32, i32
  }
  func.func @transform_3(%arg0: i32) -> (i32, i32) {
    %c0_i32 = arith.constant 0 : i32
    %c0_i32_0 = arith.constant 0 : i32
    return %arg0, %c0_i32 : i32, i32
  }
}

module attributes {stable_mosaic.version = 11 : i64} {
  func.func @kernel(%arg0: i32, %arg1: memref<16x288xbf16, #tpu.memory_space<vmem>>, %arg2: memref<288x16xbf16, #tpu.memory_space<vmem>>, %arg3: memref<1x16xf32, #tpu.memory_space<vmem>>, %arg4: memref<16x16xbf16, #tpu.memory_space<vmem>>) attributes {dimension_semantics = [#tpu.dimension_semantics<parallel>], iteration_bounds = array<i64: 1>, scalar_prefetch = 0 : i64, scratch_operands = 0 : i64, tpu.core_type = #tpu.core_type<tc>, window_params = [{transform_indices = @transform_0, window_bounds = array<i64: 16, 288>}, {pipeline_mode = #tpu.pipeline_mode<synchronous>, transform_indices = @transform_1, window_bounds = array<i64: 288, 16>}, {pipeline_mode = #tpu.pipeline_mode<synchronous>, transform_indices = @transform_2, window_bounds = array<i64: 1, 16>}, {transform_indices = @transform_3, window_bounds = array<i64: 16, 16>}]} {
    %c0 = arith.constant 0 : index
    %c0_0 = arith.constant 0 : index
    %0 = vector.load %arg1[%c0, %c0_0] : memref<16x288xbf16, #tpu.memory_space<vmem>>, vector<16x288xbf16>
    %c0_1 = arith.constant 0 : index
    %c0_2 = arith.constant 0 : index
    %1 = vector.load %arg2[%c0_1, %c0_2] : memref<288x16xbf16, #tpu.memory_space<vmem>>, vector<288x16xbf16>
    %cst = arith.constant dense<0.000000e+00> : vector<16x16xf32>
    %2 = tpu.matmul %0, %1, %cst {dimension_numbers = #tpu.dot_dimension_numbers<[1], [0], [0], [1], [0, 0, 1, 1], [], []>} : vector<16x288xbf16>, vector<288x16xbf16>, vector<16x16xf32> -> vector<16x16xf32>
    %c0_3 = arith.constant 0 : index
    %c0_4 = arith.constant 0 : index
    %3 = vector.load %arg3[%c0_3, %c0_4] : memref<1x16xf32, #tpu.memory_space<vmem>>, vector<1x16xf32>
    %4 = vector.broadcast %3 : vector<1x16xf32> to vector<16x16xf32>
    %5 = arith.addf %2, %4 : vector<16x16xf32>
    %cst_5 = arith.constant 0.000000e+00 : f32
    %6 = vector.broadcast %cst_5 : f32 to vector<16x16xf32>
    %7 = arith.maximumf %5, %6 : vector<16x16xf32>
    %8 = arith.truncf %7 : vector<16x16xf32> to vector<16x16xbf16>
    %c0_6 = arith.constant 0 : index
    %c0_7 = arith.constant 0 : index
    %9 = vector.load %arg4[%c0_6, %c0_7] : memref<16x16xbf16, #tpu.memory_space<vmem>>, vector<16x16xbf16>
    tpu.vector_store %arg4[%c0_6, %c0_7], %8 {strides = array<i32>} : memref<16x16xbf16, #tpu.memory_space<vmem>>, vector<16x16xbf16>,
    return
  }
  func.func @transform_0(%arg0: i32) -> (i32, i32) {
    %c0_i32 = arith.constant 0 : i32
    %c0_i32_0 = arith.constant 0 : i32
    return %arg0, %c0_i32 : i32, i32
  }
  func.func @transform_1(%arg0: i32) -> (i32, i32) {
    %c0_i32 = arith.constant 0 : i32
    %c0_i32_0 = arith.constant 0 : i32
    %c0_i32_1 = arith.constant 0 : i32
    return %c0_i32, %c0_i32_0 : i32, i32
  }
  func.func @transform_2(%arg0: i32) -> (i32, i32) {
    %c0_i32 = arith.constant 0 : i32
    %c0_i32_0 = arith.constant 0 : i32
    %c0_i32_1 = arith.constant 0 : i32
    return %c0_i32, %c0_i32_0 : i32, i32
  }
  func.func @transform_3(%arg0: i32) -> (i32, i32) {
    %c0_i32 = arith.constant 0 : i32
    %c0_i32_0 = arith.constant 0 : i32
    return %arg0, %c0_i32 : i32, i32
  }
}

module attributes {stable_mosaic.version = 11 : i64} {
  func.func @kernel(%arg0: i32, %arg1: memref<16x16xbf16, #tpu.memory_space<vmem>>, %arg2: memref<16x32xbf16, #tpu.memory_space<vmem>>, %arg3: memref<1x32xf32, #tpu.memory_space<vmem>>, %arg4: memref<16x32xbf16, #tpu.memory_space<vmem>>, %arg5: memref<16x32xbf16, #tpu.memory_space<vmem>>) attributes {dimension_semantics = [#tpu.dimension_semantics<parallel>], iteration_bounds = array<i64: 1>, scalar_prefetch = 0 : i64, scratch_operands = 0 : i64, tpu.core_type = #tpu.core_type<tc>, window_params = [{transform_indices = @transform_0, window_bounds = array<i64: 16, 16>}, {pipeline_mode = #tpu.pipeline_mode<synchronous>, transform_indices = @transform_1, window_bounds = array<i64: 16, 32>}, {pipeline_mode = #tpu.pipeline_mode<synchronous>, transform_indices = @transform_2, window_bounds = array<i64: 1, 32>}, {transform_indices = @transform_3, window_bounds = array<i64: 16, 32>}, {transform_indices = @transform_4, window_bounds = array<i64: 16, 32>}]} {
    %c0 = arith.constant 0 : index
    %c0_0 = arith.constant 0 : index
    %0 = vector.load %arg1[%c0, %c0_0] : memref<16x16xbf16, #tpu.memory_space<vmem>>, vector<16x16xbf16>
    %c0_1 = arith.constant 0 : index
    %c0_2 = arith.constant 0 : index
    %1 = vector.load %arg2[%c0_1, %c0_2] : memref<16x32xbf16, #tpu.memory_space<vmem>>, vector<16x32xbf16>
    %cst = arith.constant dense<0.000000e+00> : vector<16x32xf32>
    %2 = tpu.matmul %0, %1, %cst {dimension_numbers = #tpu.dot_dimension_numbers<[1], [0], [0], [1], [0, 0, 1, 1], [], []>} : vector<16x16xbf16>, vector<16x32xbf16>, vector<16x32xf32> -> vector<16x32xf32>
    %c0_3 = arith.constant 0 : index
    %c0_4 = arith.constant 0 : index
    %3 = vector.load %arg3[%c0_3, %c0_4] : memref<1x32xf32, #tpu.memory_space<vmem>>, vector<1x32xf32>
    %4 = vector.broadcast %3 : vector<1x32xf32> to vector<16x32xf32>
    %5 = arith.addf %2, %4 : vector<16x32xf32>
    %c0_5 = arith.constant 0 : index
    %c0_6 = arith.constant 0 : index
    %6 = vector.load %arg4[%c0_5, %c0_6] : memref<16x32xbf16, #tpu.memory_space<vmem>>, vector<16x32xbf16>
    %7 = arith.extf %6 : vector<16x32xbf16> to vector<16x32xf32>
    %8 = arith.addf %5, %7 : vector<16x32xf32>
    %cst_7 = arith.constant 0.000000e+00 : f32
    %9 = vector.broadcast %cst_7 : f32 to vector<16x32xf32>
    %10 = arith.maximumf %8, %9 : vector<16x32xf32>
    %11 = arith.truncf %10 : vector<16x32xf32> to vector<16x32xbf16>
    %c0_8 = arith.constant 0 : index
    %c0_9 = arith.constant 0 : index
    %12 = vector.load %arg5[%c0_8, %c0_9] : memref<16x32xbf16, #tpu.memory_space<vmem>>, vector<16x32xbf16>
    tpu.vector_store %arg5[%c0_8, %c0_9], %11 {strides = array<i32>} : memref<16x32xbf16, #tpu.memory_space<vmem>>, vector<16x32xbf16>,
    return
  }
  func.func @transform_0(%arg0: i32) -> (i32, i32) {
    %c0_i32 = arith.constant 0 : i32
    %c0_i32_0 = arith.constant 0 : i32
    return %arg0, %c0_i32 : i32, i32
  }
  func.func @transform_1(%arg0: i32) -> (i32, i32) {
    %c0_i32 = arith.constant 0 : i32
    %c0_i32_0 = arith.constant 0 : i32
    %c0_i32_1 = arith.constant 0 : i32
    return %c0_i32, %c0_i32_0 : i32, i32
  }
  func.func @transform_2(%arg0: i32) -> (i32, i32) {
    %c0_i32 = arith.constant 0 : i32
    %c0_i32_0 = arith.constant 0 : i32
    %c0_i32_1 = arith.constant 0 : i32
    return %c0_i32, %c0_i32_0 : i32, i32
  }
  func.func @transform_3(%arg0: i32) -> (i32, i32) {
    %c0_i32 = arith.constant 0 : i32
    %c0_i32_0 = arith.constant 0 : i32
    return %arg0, %c0_i32 : i32, i32
  }
  func.func @transform_4(%arg0: i32) -> (i32, i32) {
    %c0_i32 = arith.constant 0 : i32
    %c0_i32_0 = arith.constant 0 : i32
    return %arg0, %c0_i32 : i32, i32
  }
}

module attributes {stable_mosaic.version = 11 : i64} {
  func.func @kernel(%arg0: i32, %arg1: memref<16x32xbf16, #tpu.memory_space<vmem>>, %arg2: memref<32x16xbf16, #tpu.memory_space<vmem>>, %arg3: memref<1x16xf32, #tpu.memory_space<vmem>>, %arg4: memref<16x16xf32, #tpu.memory_space<vmem>>) attributes {dimension_semantics = [#tpu.dimension_semantics<parallel>], iteration_bounds = array<i64: 1>, scalar_prefetch = 0 : i64, scratch_operands = 0 : i64, tpu.core_type = #tpu.core_type<tc>, window_params = [{transform_indices = @transform_0, window_bounds = array<i64: 16, 32>}, {pipeline_mode = #tpu.pipeline_mode<synchronous>, transform_indices = @transform_1, window_bounds = array<i64: 32, 16>}, {pipeline_mode = #tpu.pipeline_mode<synchronous>, transform_indices = @transform_2, window_bounds = array<i64: 1, 16>}, {transform_indices = @transform_3, window_bounds = array<i64: 16, 16>}]} {
    %c0 = arith.constant 0 : index
    %c0_0 = arith.constant 0 : index
    %0 = vector.load %arg1[%c0, %c0_0] : memref<16x32xbf16, #tpu.memory_space<vmem>>, vector<16x32xbf16>
    %c0_1 = arith.constant 0 : index
    %c0_2 = arith.constant 0 : index
    %1 = vector.load %arg2[%c0_1, %c0_2] : memref<32x16xbf16, #tpu.memory_space<vmem>>, vector<32x16xbf16>
    %cst = arith.constant dense<0.000000e+00> : vector<16x16xf32>
    %2 = tpu.matmul %0, %1, %cst {dimension_numbers = #tpu.dot_dimension_numbers<[1], [0], [0], [1], [0, 0, 1, 1], [], []>} : vector<16x32xbf16>, vector<32x16xbf16>, vector<16x16xf32> -> vector<16x16xf32>
    %c0_3 = arith.constant 0 : index
    %c0_4 = arith.constant 0 : index
    %3 = vector.load %arg3[%c0_3, %c0_4] : memref<1x16xf32, #tpu.memory_space<vmem>>, vector<1x16xf32>
    %4 = vector.broadcast %3 : vector<1x16xf32> to vector<16x16xf32>
    %5 = arith.addf %2, %4 : vector<16x16xf32>
    %c0_5 = arith.constant 0 : index
    %c0_6 = arith.constant 0 : index
    %6 = vector.load %arg4[%c0_5, %c0_6] : memref<16x16xf32, #tpu.memory_space<vmem>>, vector<16x16xf32>
    tpu.vector_store %arg4[%c0_5, %c0_6], %5 {strides = array<i32>} : memref<16x16xf32, #tpu.memory_space<vmem>>, vector<16x16xf32>,
    return
  }
  func.func @transform_0(%arg0: i32) -> (i32, i32) {
    %c0_i32 = arith.constant 0 : i32
    %c0_i32_0 = arith.constant 0 : i32
    return %arg0, %c0_i32 : i32, i32
  }
  func.func @transform_1(%arg0: i32) -> (i32, i32) {
    %c0_i32 = arith.constant 0 : i32
    %c0_i32_0 = arith.constant 0 : i32
    %c0_i32_1 = arith.constant 0 : i32
    return %c0_i32, %c0_i32_0 : i32, i32
  }
  func.func @transform_2(%arg0: i32) -> (i32, i32) {
    %c0_i32 = arith.constant 0 : i32
    %c0_i32_0 = arith.constant 0 : i32
    %c0_i32_1 = arith.constant 0 : i32
    return %c0_i32, %c0_i32_0 : i32, i32
  }
  func.func @transform_3(%arg0: i32) -> (i32, i32) {
    %c0_i32 = arith.constant 0 : i32
    %c0_i32_0 = arith.constant 0 : i32
    return %arg0, %c0_i32 : i32, i32
  }
}

module attributes {stable_mosaic.version = 11 : i64} {
  func.func @_vq_kernel(%arg0: i32, %arg1: memref<16x16xf32, #tpu.memory_space<vmem>>, %arg2: memref<32x16xf32, #tpu.memory_space<vmem>>, %arg3: memref<16x16xbf16, #tpu.memory_space<vmem>>, %arg4: memref<16x1xi32, #tpu.memory_space<vmem>>, %arg5: memref<16x1xf32, #tpu.memory_space<vmem>>) attributes {dimension_semantics = [#tpu.dimension_semantics<parallel>], iteration_bounds = array<i64: 1>, scalar_prefetch = 0 : i64, scratch_operands = 0 : i64, tpu.core_type = #tpu.core_type<tc>, window_params = [{transform_indices = @transform_0, window_bounds = array<i64: 16, 16>}, {pipeline_mode = #tpu.pipeline_mode<synchronous>, transform_indices = @transform_1, window_bounds = array<i64: 32, 16>}, {transform_indices = @transform_2, window_bounds = array<i64: 16, 16>}, {transform_indices = @transform_3, window_bounds = array<i64: 16, 1>}, {transform_indices = @transform_4, window_bounds = array<i64: 16, 1>}]} {
    %c0 = arith.constant 0 : index
    %c0_0 = arith.constant 0 : index
    %0 = vector.load %arg1[%c0, %c0_0] : memref<16x16xf32, #tpu.memory_space<vmem>>, vector<16x16xf32>
    %c0_1 = arith.constant 0 : index
    %c0_2 = arith.constant 0 : index
    %1 = vector.load %arg2[%c0_1, %c0_2] : memref<32x16xf32, #tpu.memory_space<vmem>>, vector<32x16xf32>
    %2 = arith.mulf %0, %0 : vector<16x16xf32>
    %cst = arith.constant dense<0.000000e+00> : vector<16xf32>
    %3 = vector.multi_reduction <add>, %2, %cst [1] : vector<16x16xf32> to vector<16xf32>
    %4 = vector.shape_cast %3 : vector<16xf32> to vector<16x1xf32>
    %5 = arith.mulf %1, %1 : vector<32x16xf32>
    %cst_3 = arith.constant dense<0.000000e+00> : vector<32xf32>
    %6 = vector.multi_reduction <add>, %5, %cst_3 [1] : vector<32x16xf32> to vector<32xf32>
    %7 = vector.shape_cast %6 : vector<32xf32> to vector<32x1xf32>
    %8 = tpu.transpose %1, [1, 0] : vector<32x16xf32> -> vector<16x32xf32>
    %cst_4 = arith.constant dense<0.000000e+00> : vector<16x32xf32>
    %9 = tpu.matmul %0, %8, %cst_4 {dimension_numbers = #tpu.dot_dimension_numbers<[1], [0], [0], [1], [0, 0, 1, 1], [], []>} : vector<16x16xf32>, vector<16x32xf32>, vector<16x32xf32> -> vector<16x32xf32>
    %cst_5 = arith.constant 2.000000e+00 : f32
    %10 = vector.broadcast %cst_5 : f32 to vector<16x32xf32>
    %11 = arith.mulf %10, %9 : vector<16x32xf32>
    %12 = vector.broadcast %4 : vector<16x1xf32> to vector<16x32xf32>
    %13 = arith.subf %12, %11 : vector<16x32xf32>
    %14 = tpu.transpose %7, [1, 0] : vector<32x1xf32> -> vector<1x32xf32>
    %15 = vector.broadcast %14 : vector<1x32xf32> to vector<16x32xf32>
    %16 = arith.addf %13, %15 : vector<16x32xf32>
    %cst_6 = arith.constant dense<0x7F800000> : vector<16xf32>
    %17 = vector.multi_reduction <minimumf>, %16, %cst_6 [1] : vector<16x32xf32> to vector<16xf32>
    %18 = vector.shape_cast %17 : vector<16xf32> to vector<16x1xf32>
    %19 = tpu.iota {dimensions = array<i32: 1>} : vector<16x32xi32>
    %20 = vector.broadcast %18 : vector<16x1xf32> to vector<16x32xf32>
    %21 = arith.cmpf ole, %16, %20 : vector<16x32xf32>
    %c1073741824_i32 = arith.constant 1073741824 : i32
    %22 = vector.broadcast %c1073741824_i32 : i32 to vector<16x32xi32>
    %23 = arith.select %21, %19, %22 : vector<16x32xi1>, vector<16x32xi32>
    %cst_7 = arith.constant dense<2147483647> : vector<16xi32>
    %24 = vector.multi_reduction <minsi>, %23, %cst_7 [1] : vector<16x32xi32> to vector<16xi32>
    %25 = vector.shape_cast %24 : vector<16xi32> to vector<16x1xi32>
    %26 = vector.broadcast %25 : vector<16x1xi32> to vector<16x32xi32>
    %27 = arith.cmpi eq, %19, %26 : vector<16x32xi32>
    %28 = arith.extui %27 : vector<16x32xi1> to vector<16x32xi32>
    %29 = arith.sitofp %28 : vector<16x32xi32> to vector<16x32xf32>
    %cst_8 = arith.constant dense<0.000000e+00> : vector<16x16xf32>
    %30 = tpu.matmul %29, %1, %cst_8 {dimension_numbers = #tpu.dot_dimension_numbers<[1], [0], [0], [1], [0, 0, 1, 1], [], []>} : vector<16x32xf32>, vector<32x16xf32>, vector<16x16xf32> -> vector<16x16xf32>
    %31 = arith.truncf %30 : vector<16x16xf32> to vector<16x16xbf16>
    %c0_9 = arith.constant 0 : index
    %c0_10 = arith.constant 0 : index
    %32 = vector.load %arg3[%c0_9, %c0_10] : memref<16x16xbf16, #tpu.memory_space<vmem>>, vector<16x16xbf16>
    tpu.vector_store %arg3[%c0_9, %c0_10], %31 {strides = array<i32>} : memref<16x16xbf16, #tpu.memory_space<vmem>>, vector<16x16xbf16>,
    %33 = vector.shape_cast %24 : vector<16xi32> to vector<16x1xi32>
    %c0_11 = arith.constant 0 : index
    %c0_12 = arith.constant 0 : index
    %34 = vector.load %arg4[%c0_11, %c0_12] : memref<16x1xi32, #tpu.memory_space<vmem>>, vector<16x1xi32>
    tpu.vector_store %arg4[%c0_11, %c0_12], %33 {strides = array<i32>} : memref<16x1xi32, #tpu.memory_space<vmem>>, vector<16x1xi32>,
    %35 = arith.subf %30, %0 : vector<16x16xf32>
    %36 = arith.mulf %35, %35 : vector<16x16xf32>
    %cst_13 = arith.constant dense<0.000000e+00> : vector<16xf32>
    %37 = vector.multi_reduction <add>, %36, %cst_13 [1] : vector<16x16xf32> to vector<16xf32>
    %38 = vector.shape_cast %37 : vector<16xf32> to vector<16x1xf32>
    %c0_14 = arith.constant 0 : index
    %c0_15 = arith.constant 0 : index
    %39 = vector.load %arg5[%c0_14, %c0_15] : memref<16x1xf32, #tpu.memory_space<vmem>>, vector<16x1xf32>
    tpu.vector_store %arg5[%c0_14, %c0_15], %38 {strides = array<i32>} : memref<16x1xf32, #tpu.memory_space<vmem>>, vector<16x1xf32>,
    return
  }
  func.func @transform_0(%arg0: i32) -> (i32, i32) {
    %c0_i32 = arith.constant 0 : i32
    %c0_i32_0 = arith.constant 0 : i32
    return %arg0, %c0_i32 : i32, i32
  }
  func.func @transform_1(%arg0: i32) -> (i32, i32) {
    %c0_i32 = arith.constant 0 : i32
    %c0_i32_0 = arith.constant 0 : i32
    %c0_i32_1 = arith.constant 0 : i32
    return %c0_i32, %c0_i32_0 : i32, i32
  }
  func.func @transform_2(%arg0: i32) -> (i32, i32) {
    %c0_i32 = arith.constant 0 : i32
    %c0_i32_0 = arith.constant 0 : i32
    return %arg0, %c0_i32 : i32, i32
  }
  func.func @transform_3(%arg0: i32) -> (i32, i32) {
    %c0_i32 = arith.constant 0 : i32
    %c0_i32_0 = arith.constant 0 : i32
    return %arg0, %c0_i32 : i32, i32
  }
  func.func @transform_4(%arg0: i32) -> (i32, i32) {
    %c0_i32 = arith.constant 0 : i32
    %c0_i32_0 = arith.constant 0 : i32
    return %arg0, %c0_i32 : i32, i32
  }
}

module attributes {stable_mosaic.version = 11 : i64} {
  func.func @kernel(%arg0: i32, %arg1: memref<16x288xbf16, #tpu.memory_space<vmem>>, %arg2: memref<288x64xbf16, #tpu.memory_space<vmem>>, %arg3: memref<1x64xf32, #tpu.memory_space<vmem>>, %arg4: memref<16x64xbf16, #tpu.memory_space<vmem>>) attributes {dimension_semantics = [#tpu.dimension_semantics<parallel>], iteration_bounds = array<i64: 1>, scalar_prefetch = 0 : i64, scratch_operands = 0 : i64, tpu.core_type = #tpu.core_type<tc>, window_params = [{transform_indices = @transform_0, window_bounds = array<i64: 16, 288>}, {pipeline_mode = #tpu.pipeline_mode<synchronous>, transform_indices = @transform_1, window_bounds = array<i64: 288, 64>}, {pipeline_mode = #tpu.pipeline_mode<synchronous>, transform_indices = @transform_2, window_bounds = array<i64: 1, 64>}, {transform_indices = @transform_3, window_bounds = array<i64: 16, 64>}]} {
    %c0 = arith.constant 0 : index
    %c0_0 = arith.constant 0 : index
    %0 = vector.load %arg1[%c0, %c0_0] : memref<16x288xbf16, #tpu.memory_space<vmem>>, vector<16x288xbf16>
    %c0_1 = arith.constant 0 : index
    %c0_2 = arith.constant 0 : index
    %1 = vector.load %arg2[%c0_1, %c0_2] : memref<288x64xbf16, #tpu.memory_space<vmem>>, vector<288x64xbf16>
    %cst = arith.constant dense<0.000000e+00> : vector<16x64xf32>
    %2 = tpu.matmul %0, %1, %cst {dimension_numbers = #tpu.dot_dimension_numbers<[1], [0], [0], [1], [0, 0, 1, 1], [], []>} : vector<16x288xbf16>, vector<288x64xbf16>, vector<16x64xf32> -> vector<16x64xf32>
    %c0_3 = arith.constant 0 : index
    %c0_4 = arith.constant 0 : index
    %3 = vector.load %arg3[%c0_3, %c0_4] : memref<1x64xf32, #tpu.memory_space<vmem>>, vector<1x64xf32>
    %4 = vector.broadcast %3 : vector<1x64xf32> to vector<16x64xf32>
    %5 = arith.addf %2, %4 : vector<16x64xf32>
    %6 = arith.truncf %5 : vector<16x64xf32> to vector<16x64xbf16>
    %c0_5 = arith.constant 0 : index
    %c0_6 = arith.constant 0 : index
    %7 = vector.load %arg4[%c0_5, %c0_6] : memref<16x64xbf16, #tpu.memory_space<vmem>>, vector<16x64xbf16>
    tpu.vector_store %arg4[%c0_5, %c0_6], %6 {strides = array<i32>} : memref<16x64xbf16, #tpu.memory_space<vmem>>, vector<16x64xbf16>,
    return
  }
  func.func @transform_0(%arg0: i32) -> (i32, i32) {
    %c0_i32 = arith.constant 0 : i32
    %c0_i32_0 = arith.constant 0 : i32
    return %arg0, %c0_i32 : i32, i32
  }
  func.func @transform_1(%arg0: i32) -> (i32, i32) {
    %c0_i32 = arith.constant 0 : i32
    %c0_i32_0 = arith.constant 0 : i32
    %c0_i32_1 = arith.constant 0 : i32
    return %c0_i32, %c0_i32_0 : i32, i32
  }
  func.func @transform_2(%arg0: i32) -> (i32, i32) {
    %c0_i32 = arith.constant 0 : i32
    %c0_i32_0 = arith.constant 0 : i32
    %c0_i32_1 = arith.constant 0 : i32
    return %c0_i32, %c0_i32_0 : i32, i32
  }
  func.func @transform_3(%arg0: i32) -> (i32, i32) {
    %c0_i32 = arith.constant 0 : i32
    %c0_i32_0 = arith.constant 0 : i32
    return %arg0, %c0_i32 : i32, i32
  }
}

module attributes {stable_mosaic.version = 11 : i64} {
  func.func @_vq_kernel(%arg0: i32, %arg1: memref<32x16xf32, #tpu.memory_space<vmem>>, %arg2: memref<32x16xf32, #tpu.memory_space<vmem>>, %arg3: memref<32x16xbf16, #tpu.memory_space<vmem>>, %arg4: memref<32x1xi32, #tpu.memory_space<vmem>>, %arg5: memref<32x1xf32, #tpu.memory_space<vmem>>) attributes {dimension_semantics = [#tpu.dimension_semantics<parallel>], iteration_bounds = array<i64: 1>, scalar_prefetch = 0 : i64, scratch_operands = 0 : i64, tpu.core_type = #tpu.core_type<tc>, window_params = [{transform_indices = @transform_0, window_bounds = array<i64: 32, 16>}, {pipeline_mode = #tpu.pipeline_mode<synchronous>, transform_indices = @transform_1, window_bounds = array<i64: 32, 16>}, {transform_indices = @transform_2, window_bounds = array<i64: 32, 16>}, {transform_indices = @transform_3, window_bounds = array<i64: 32, 1>}, {transform_indices = @transform_4, window_bounds = array<i64: 32, 1>}]} {
    %c0 = arith.constant 0 : index
    %c0_0 = arith.constant 0 : index
    %0 = vector.load %arg1[%c0, %c0_0] : memref<32x16xf32, #tpu.memory_space<vmem>>, vector<32x16xf32>
    %c0_1 = arith.constant 0 : index
    %c0_2 = arith.constant 0 : index
    %1 = vector.load %arg2[%c0_1, %c0_2] : memref<32x16xf32, #tpu.memory_space<vmem>>, vector<32x16xf32>
    %2 = arith.mulf %0, %0 : vector<32x16xf32>
    %cst = arith.constant dense<0.000000e+00> : vector<32xf32>
    %3 = vector.multi_reduction <add>, %2, %cst [1] : vector<32x16xf32> to vector<32xf32>
    %4 = vector.shape_cast %3 : vector<32xf32> to vector<32x1xf32>
    %5 = arith.mulf %1, %1 : vector<32x16xf32>
    %cst_3 = arith.constant dense<0.000000e+00> : vector<32xf32>
    %6 = vector.multi_reduction <add>, %5, %cst_3 [1] : vector<32x16xf32> to vector<32xf32>
    %7 = vector.shape_cast %6 : vector<32xf32> to vector<32x1xf32>
    %8 = tpu.transpose %1, [1, 0] : vector<32x16xf32> -> vector<16x32xf32>
    %cst_4 = arith.constant dense<0.000000e+00> : vector<32x32xf32>
    %9 = tpu.matmul %0, %8, %cst_4 {dimension_numbers = #tpu.dot_dimension_numbers<[1], [0], [0], [1], [0, 0, 1, 1], [], []>} : vector<32x16xf32>, vector<16x32xf32>, vector<32x32xf32> -> vector<32x32xf32>
    %cst_5 = arith.constant 2.000000e+00 : f32
    %10 = vector.broadcast %cst_5 : f32 to vector<32x32xf32>
    %11 = arith.mulf %10, %9 : vector<32x32xf32>
    %12 = vector.broadcast %4 : vector<32x1xf32> to vector<32x32xf32>
    %13 = arith.subf %12, %11 : vector<32x32xf32>
    %14 = tpu.transpose %7, [1, 0] : vector<32x1xf32> -> vector<1x32xf32>
    %15 = vector.broadcast %14 : vector<1x32xf32> to vector<32x32xf32>
    %16 = arith.addf %13, %15 : vector<32x32xf32>
    %cst_6 = arith.constant dense<0x7F800000> : vector<32xf32>
    %17 = vector.multi_reduction <minimumf>, %16, %cst_6 [1] : vector<32x32xf32> to vector<32xf32>
    %18 = vector.shape_cast %17 : vector<32xf32> to vector<32x1xf32>
    %19 = tpu.iota {dimensions = array<i32: 1>} : vector<32x32xi32>
    %20 = vector.broadcast %18 : vector<32x1xf32> to vector<32x32xf32>
    %21 = arith.cmpf ole, %16, %20 : vector<32x32xf32>
    %c1073741824_i32 = arith.constant 1073741824 : i32
    %22 = vector.broadcast %c1073741824_i32 : i32 to vector<32x32xi32>
    %23 = arith.select %21, %19, %22 : vector<32x32xi1>, vector<32x32xi32>
    %cst_7 = arith.constant dense<2147483647> : vector<32xi32>
    %24 = vector.multi_reduction <minsi>, %23, %cst_7 [1] : vector<32x32xi32> to vector<32xi32>
    %25 = vector.shape_cast %24 : vector<32xi32> to vector<32x1xi32>
    %26 = vector.broadcast %25 : vector<32x1xi32> to vector<32x32xi32>
    %27 = arith.cmpi eq, %19, %26 : vector<32x32xi32>
    %28 = arith.extui %27 : vector<32x32xi1> to vector<32x32xi32>
    %29 = arith.sitofp %28 : vector<32x32xi32> to vector<32x32xf32>
    %cst_8 = arith.constant dense<0.000000e+00> : vector<32x16xf32>
    %30 = tpu.matmul %29, %1, %cst_8 {dimension_numbers = #tpu.dot_dimension_numbers<[1], [0], [0], [1], [0, 0, 1, 1], [], []>} : vector<32x32xf32>, vector<32x16xf32>, vector<32x16xf32> -> vector<32x16xf32>
    %31 = arith.truncf %30 : vector<32x16xf32> to vector<32x16xbf16>
    %c0_9 = arith.constant 0 : index
    %c0_10 = arith.constant 0 : index
    %32 = vector.load %arg3[%c0_9, %c0_10] : memref<32x16xbf16, #tpu.memory_space<vmem>>, vector<32x16xbf16>
    tpu.vector_store %arg3[%c0_9, %c0_10], %31 {strides = array<i32>} : memref<32x16xbf16, #tpu.memory_space<vmem>>, vector<32x16xbf16>,
    %33 = vector.shape_cast %24 : vector<32xi32> to vector<32x1xi32>
    %c0_11 = arith.constant 0 : index
    %c0_12 = arith.constant 0 : index
    %34 = vector.load %arg4[%c0_11, %c0_12] : memref<32x1xi32, #tpu.memory_space<vmem>>, vector<32x1xi32>
    tpu.vector_store %arg4[%c0_11, %c0_12], %33 {strides = array<i32>} : memref<32x1xi32, #tpu.memory_space<vmem>>, vector<32x1xi32>,
    %35 = arith.subf %30, %0 : vector<32x16xf32>
    %36 = arith.mulf %35, %35 : vector<32x16xf32>
    %cst_13 = arith.constant dense<0.000000e+00> : vector<32xf32>
    %37 = vector.multi_reduction <add>, %36, %cst_13 [1] : vector<32x16xf32> to vector<32xf32>
    %38 = vector.shape_cast %37 : vector<32xf32> to vector<32x1xf32>
    %c0_14 = arith.constant 0 : index
    %c0_15 = arith.constant 0 : index
    %39 = vector.load %arg5[%c0_14, %c0_15] : memref<32x1xf32, #tpu.memory_space<vmem>>, vector<32x1xf32>
    tpu.vector_store %arg5[%c0_14, %c0_15], %38 {strides = array<i32>} : memref<32x1xf32, #tpu.memory_space<vmem>>, vector<32x1xf32>,
    return
  }
  func.func @transform_0(%arg0: i32) -> (i32, i32) {
    %c0_i32 = arith.constant 0 : i32
    %c0_i32_0 = arith.constant 0 : i32
    return %arg0, %c0_i32 : i32, i32
  }
  func.func @transform_1(%arg0: i32) -> (i32, i32) {
    %c0_i32 = arith.constant 0 : i32
    %c0_i32_0 = arith.constant 0 : i32
    %c0_i32_1 = arith.constant 0 : i32
    return %c0_i32, %c0_i32_0 : i32, i32
  }
  func.func @transform_2(%arg0: i32) -> (i32, i32) {
    %c0_i32 = arith.constant 0 : i32
    %c0_i32_0 = arith.constant 0 : i32
    return %arg0, %c0_i32 : i32, i32
  }
  func.func @transform_3(%arg0: i32) -> (i32, i32) {
    %c0_i32 = arith.constant 0 : i32
    %c0_i32_0 = arith.constant 0 : i32
    return %arg0, %c0_i32 : i32, i32
  }
  func.func @transform_4(%arg0: i32) -> (i32, i32) {
    %c0_i32 = arith.constant 0 : i32
    %c0_i32_0 = arith.constant 0 : i32
    return %arg0, %c0_i32 : i32, i32
  }
}

module attributes {stable_mosaic.version = 11 : i64} {
  func.func @kernel(%arg0: i32, %arg1: memref<32x16xbf16, #tpu.memory_space<vmem>>, %arg2: memref<32x32xbf16, #tpu.memory_space<vmem>>, %arg3: memref<16x16xbf16, #tpu.memory_space<vmem>>, %arg4: memref<32x16xbf16, #tpu.memory_space<vmem>>, %arg5: memref<1x16xf32, #tpu.memory_space<vmem>>, %arg6: memref<32x16xf32, #tpu.memory_space<vmem>>) attributes {dimension_semantics = [#tpu.dimension_semantics<parallel>], iteration_bounds = array<i64: 1>, scalar_prefetch = 0 : i64, scratch_operands = 0 : i64, tpu.core_type = #tpu.core_type<tc>, window_params = [{transform_indices = @transform_0, window_bounds = array<i64: 32, 16>}, {transform_indices = @transform_1, window_bounds = array<i64: 32, 32>}, {pipeline_mode = #tpu.pipeline_mode<synchronous>, transform_indices = @transform_2, window_bounds = array<i64: 16, 16>}, {pipeline_mode = #tpu.pipeline_mode<synchronous>, transform_indices = @transform_3, window_bounds = array<i64: 32, 16>}, {pipeline_mode = #tpu.pipeline_mode<synchronous>, transform_indices = @transform_4, window_bounds = array<i64: 1, 16>}, {transform_indices = @transform_5, window_bounds = array<i64: 32, 16>}]} {
    %c0 = arith.constant 0 : index
    %c0_0 = arith.constant 0 : index
    %0 = vector.load %arg1[%c0, %c0_0] : memref<32x16xbf16, #tpu.memory_space<vmem>>, vector<32x16xbf16>
    %c0_1 = arith.constant 0 : index
    %c0_2 = arith.constant 0 : index
    %1 = vector.load %arg3[%c0_1, %c0_2] : memref<16x16xbf16, #tpu.memory_space<vmem>>, vector<16x16xbf16>
    %cst = arith.constant dense<0.000000e+00> : vector<32x16xf32>
    %2 = tpu.matmul %0, %1, %cst {dimension_numbers = #tpu.dot_dimension_numbers<[1], [0], [0], [1], [0, 0, 1, 1], [], []>} : vector<32x16xbf16>, vector<16x16xbf16>, vector<32x16xf32> -> vector<32x16xf32>
    %c0_3 = arith.constant 0 : index
    %c0_4 = arith.constant 0 : index
    %3 = vector.load %arg2[%c0_3, %c0_4] : memref<32x32xbf16, #tpu.memory_space<vmem>>, vector<32x32xbf16>
    %c0_5 = arith.constant 0 : index
    %c0_6 = arith.constant 0 : index
    %4 = vector.load %arg4[%c0_5, %c0_6] : memref<32x16xbf16, #tpu.memory_space<vmem>>, vector<32x16xbf16>
    %cst_7 = arith.constant dense<0.000000e+00> : vector<32x16xf32>
    %5 = tpu.matmul %3, %4, %cst_7 {dimension_numbers = #tpu.dot_dimension_numbers<[1], [0], [0], [1], [0, 0, 1, 1], [], []>} : vector<32x32xbf16>, vector<32x16xbf16>, vector<32x16xf32> -> vector<32x16xf32>
    %6 = arith.addf %2, %5 : vector<32x16xf32>
    %c0_8 = arith.constant 0 : index
    %c0_9 = arith.constant 0 : index
    %7 = vector.load %arg5[%c0_8, %c0_9] : memref<1x16xf32, #tpu.memory_space<vmem>>, vector<1x16xf32>
    %8 = vector.broadcast %7 : vector<1x16xf32> to vector<32x16xf32>
    %9 = arith.addf %6, %8 : vector<32x16xf32>
    %c0_10 = arith.constant 0 : index
    %c0_11 = arith.constant 0 : index
    %10 = vector.load %arg6[%c0_10, %c0_11] : memref<32x16xf32, #tpu.memory_space<vmem>>, vector<32x16xf32>
    tpu.vector_store %arg6[%c0_10, %c0_11], %9 {strides = array<i32>} : memref<32x16xf32, #tpu.memory_space<vmem>>, vector<32x16xf32>,
    return
  }
  func.func @transform_0(%arg0: i32) -> (i32, i32) {
    %c0_i32 = arith.constant 0 : i32
    %c0_i32_0 = arith.constant 0 : i32
    return %arg0, %c0_i32 : i32, i32
  }
  func.func @transform_1(%arg0: i32) -> (i32, i32) {
    %c0_i32 = arith.constant 0 : i32
    %c0_i32_0 = arith.constant 0 : i32
    return %arg0, %c0_i32 : i32, i32
  }
  func.func @transform_2(%arg0: i32) -> (i32, i32) {
    %c0_i32 = arith.constant 0 : i32
    %c0_i32_0 = arith.constant 0 : i32
    %c0_i32_1 = arith.constant 0 : i32
    return %c0_i32, %c0_i32_0 : i32, i32
  }
  func.func @transform_3(%arg0: i32) -> (i32, i32) {
    %c0_i32 = arith.constant 0 : i32
    %c0_i32_0 = arith.constant 0 : i32
    %c0_i32_1 = arith.constant 0 : i32
    return %c0_i32, %c0_i32_0 : i32, i32
  }
  func.func @transform_4(%arg0: i32) -> (i32, i32) {
    %c0_i32 = arith.constant 0 : i32
    %c0_i32_0 = arith.constant 0 : i32
    %c0_i32_1 = arith.constant 0 : i32
    return %c0_i32, %c0_i32_0 : i32, i32
  }
  func.func @transform_5(%arg0: i32) -> (i32, i32) {
    %c0_i32 = arith.constant 0 : i32
    %c0_i32_0 = arith.constant 0 : i32
    return %arg0, %c0_i32 : i32, i32
  }
}

module attributes {stable_mosaic.version = 11 : i64} {
  func.func @kernel(%arg0: i32, %arg1: memref<16x144xbf16, #tpu.memory_space<vmem>>, %arg2: memref<144x64xbf16, #tpu.memory_space<vmem>>, %arg3: memref<1x64xf32, #tpu.memory_space<vmem>>, %arg4: memref<16x64xbf16, #tpu.memory_space<vmem>>) attributes {dimension_semantics = [#tpu.dimension_semantics<parallel>], iteration_bounds = array<i64: 1>, scalar_prefetch = 0 : i64, scratch_operands = 0 : i64, tpu.core_type = #tpu.core_type<tc>, window_params = [{transform_indices = @transform_0, window_bounds = array<i64: 16, 144>}, {pipeline_mode = #tpu.pipeline_mode<synchronous>, transform_indices = @transform_1, window_bounds = array<i64: 144, 64>}, {pipeline_mode = #tpu.pipeline_mode<synchronous>, transform_indices = @transform_2, window_bounds = array<i64: 1, 64>}, {transform_indices = @transform_3, window_bounds = array<i64: 16, 64>}]} {
    %c0 = arith.constant 0 : index
    %c0_0 = arith.constant 0 : index
    %0 = vector.load %arg1[%c0, %c0_0] : memref<16x144xbf16, #tpu.memory_space<vmem>>, vector<16x144xbf16>
    %c0_1 = arith.constant 0 : index
    %c0_2 = arith.constant 0 : index
    %1 = vector.load %arg2[%c0_1, %c0_2] : memref<144x64xbf16, #tpu.memory_space<vmem>>, vector<144x64xbf16>
    %cst = arith.constant dense<0.000000e+00> : vector<16x64xf32>
    %2 = tpu.matmul %0, %1, %cst {dimension_numbers = #tpu.dot_dimension_numbers<[1], [0], [0], [1], [0, 0, 1, 1], [], []>} : vector<16x144xbf16>, vector<144x64xbf16>, vector<16x64xf32> -> vector<16x64xf32>
    %c0_3 = arith.constant 0 : index
    %c0_4 = arith.constant 0 : index
    %3 = vector.load %arg3[%c0_3, %c0_4] : memref<1x64xf32, #tpu.memory_space<vmem>>, vector<1x64xf32>
    %4 = vector.broadcast %3 : vector<1x64xf32> to vector<16x64xf32>
    %5 = arith.addf %2, %4 : vector<16x64xf32>
    %6 = arith.truncf %5 : vector<16x64xf32> to vector<16x64xbf16>
    %c0_5 = arith.constant 0 : index
    %c0_6 = arith.constant 0 : index
    %7 = vector.load %arg4[%c0_5, %c0_6] : memref<16x64xbf16, #tpu.memory_space<vmem>>, vector<16x64xbf16>
    tpu.vector_store %arg4[%c0_5, %c0_6], %6 {strides = array<i32>} : memref<16x64xbf16, #tpu.memory_space<vmem>>, vector<16x64xbf16>,
    return
  }
  func.func @transform_0(%arg0: i32) -> (i32, i32) {
    %c0_i32 = arith.constant 0 : i32
    %c0_i32_0 = arith.constant 0 : i32
    return %arg0, %c0_i32 : i32, i32
  }
  func.func @transform_1(%arg0: i32) -> (i32, i32) {
    %c0_i32 = arith.constant 0 : i32
    %c0_i32_0 = arith.constant 0 : i32
    %c0_i32_1 = arith.constant 0 : i32
    return %c0_i32, %c0_i32_0 : i32, i32
  }
  func.func @transform_2(%arg0: i32) -> (i32, i32) {
    %c0_i32 = arith.constant 0 : i32
    %c0_i32_0 = arith.constant 0 : i32
    %c0_i32_1 = arith.constant 0 : i32
    return %c0_i32, %c0_i32_0 : i32, i32
  }
  func.func @transform_3(%arg0: i32) -> (i32, i32) {
    %c0_i32 = arith.constant 0 : i32
    %c0_i32_0 = arith.constant 0 : i32
    return %arg0, %c0_i32 : i32, i32
  }
}

module attributes {stable_mosaic.version = 11 : i64} {
  func.func @kernel(%arg0: i32, %arg1: memref<32x288xbf16, #tpu.memory_space<vmem>>, %arg2: memref<288x64xbf16, #tpu.memory_space<vmem>>, %arg3: memref<1x64xf32, #tpu.memory_space<vmem>>, %arg4: memref<32x64xbf16, #tpu.memory_space<vmem>>) attributes {dimension_semantics = [#tpu.dimension_semantics<parallel>], iteration_bounds = array<i64: 1>, scalar_prefetch = 0 : i64, scratch_operands = 0 : i64, tpu.core_type = #tpu.core_type<tc>, window_params = [{transform_indices = @transform_0, window_bounds = array<i64: 32, 288>}, {pipeline_mode = #tpu.pipeline_mode<synchronous>, transform_indices = @transform_1, window_bounds = array<i64: 288, 64>}, {pipeline_mode = #tpu.pipeline_mode<synchronous>, transform_indices = @transform_2, window_bounds = array<i64: 1, 64>}, {transform_indices = @transform_3, window_bounds = array<i64: 32, 64>}]} {
    %c0 = arith.constant 0 : index
    %c0_0 = arith.constant 0 : index
    %0 = vector.load %arg1[%c0, %c0_0] : memref<32x288xbf16, #tpu.memory_space<vmem>>, vector<32x288xbf16>
    %c0_1 = arith.constant 0 : index
    %c0_2 = arith.constant 0 : index
    %1 = vector.load %arg2[%c0_1, %c0_2] : memref<288x64xbf16, #tpu.memory_space<vmem>>, vector<288x64xbf16>
    %cst = arith.constant dense<0.000000e+00> : vector<32x64xf32>
    %2 = tpu.matmul %0, %1, %cst {dimension_numbers = #tpu.dot_dimension_numbers<[1], [0], [0], [1], [0, 0, 1, 1], [], []>} : vector<32x288xbf16>, vector<288x64xbf16>, vector<32x64xf32> -> vector<32x64xf32>
    %c0_3 = arith.constant 0 : index
    %c0_4 = arith.constant 0 : index
    %3 = vector.load %arg3[%c0_3, %c0_4] : memref<1x64xf32, #tpu.memory_space<vmem>>, vector<1x64xf32>
    %4 = vector.broadcast %3 : vector<1x64xf32> to vector<32x64xf32>
    %5 = arith.addf %2, %4 : vector<32x64xf32>
    %cst_5 = arith.constant 0.000000e+00 : f32
    %6 = vector.broadcast %cst_5 : f32 to vector<32x64xf32>
    %7 = arith.maximumf %5, %6 : vector<32x64xf32>
    %8 = arith.truncf %7 : vector<32x64xf32> to vector<32x64xbf16>
    %c0_6 = arith.constant 0 : index
    %c0_7 = arith.constant 0 : index
    %9 = vector.load %arg4[%c0_6, %c0_7] : memref<32x64xbf16, #tpu.memory_space<vmem>>, vector<32x64xbf16>
    tpu.vector_store %arg4[%c0_6, %c0_7], %8 {strides = array<i32>} : memref<32x64xbf16, #tpu.memory_space<vmem>>, vector<32x64xbf16>,
    return
  }
  func.func @transform_0(%arg0: i32) -> (i32, i32) {
    %c0_i32 = arith.constant 0 : i32
    %c0_i32_0 = arith.constant 0 : i32
    return %arg0, %c0_i32 : i32, i32
  }
  func.func @transform_1(%arg0: i32) -> (i32, i32) {
    %c0_i32 = arith.constant 0 : i32
    %c0_i32_0 = arith.constant 0 : i32
    %c0_i32_1 = arith.constant 0 : i32
    return %c0_i32, %c0_i32_0 : i32, i32
  }
  func.func @transform_2(%arg0: i32) -> (i32, i32) {
    %c0_i32 = arith.constant 0 : i32
    %c0_i32_0 = arith.constant 0 : i32
    %c0_i32_1 = arith.constant 0 : i32
    return %c0_i32, %c0_i32_0 : i32, i32
  }
  func.func @transform_3(%arg0: i32) -> (i32, i32) {
    %c0_i32 = arith.constant 0 : i32
    %c0_i32_0 = arith.constant 0 : i32
    return %arg0, %c0_i32 : i32, i32
  }
}

module attributes {stable_mosaic.version = 11 : i64} {
  func.func @kernel(%arg0: i32, %arg1: memref<32x144xbf16, #tpu.memory_space<vmem>>, %arg2: memref<32x144xbf16, #tpu.memory_space<vmem>>, %arg3: memref<144x32xbf16, #tpu.memory_space<vmem>>, %arg4: memref<144x32xbf16, #tpu.memory_space<vmem>>, %arg5: memref<1x32xf32, #tpu.memory_space<vmem>>, %arg6: memref<32x32xbf16, #tpu.memory_space<vmem>>) attributes {dimension_semantics = [#tpu.dimension_semantics<parallel>], iteration_bounds = array<i64: 1>, scalar_prefetch = 0 : i64, scratch_operands = 0 : i64, tpu.core_type = #tpu.core_type<tc>, window_params = [{transform_indices = @transform_0, window_bounds = array<i64: 32, 144>}, {transform_indices = @transform_1, window_bounds = array<i64: 32, 144>}, {pipeline_mode = #tpu.pipeline_mode<synchronous>, transform_indices = @transform_2, window_bounds = array<i64: 144, 32>}, {pipeline_mode = #tpu.pipeline_mode<synchronous>, transform_indices = @transform_3, window_bounds = array<i64: 144, 32>}, {pipeline_mode = #tpu.pipeline_mode<synchronous>, transform_indices = @transform_4, window_bounds = array<i64: 1, 32>}, {transform_indices = @transform_5, window_bounds = array<i64: 32, 32>}]} {
    %c0 = arith.constant 0 : index
    %c0_0 = arith.constant 0 : index
    %0 = vector.load %arg1[%c0, %c0_0] : memref<32x144xbf16, #tpu.memory_space<vmem>>, vector<32x144xbf16>
    %c0_1 = arith.constant 0 : index
    %c0_2 = arith.constant 0 : index
    %1 = vector.load %arg3[%c0_1, %c0_2] : memref<144x32xbf16, #tpu.memory_space<vmem>>, vector<144x32xbf16>
    %cst = arith.constant dense<0.000000e+00> : vector<32x32xf32>
    %2 = tpu.matmul %0, %1, %cst {dimension_numbers = #tpu.dot_dimension_numbers<[1], [0], [0], [1], [0, 0, 1, 1], [], []>} : vector<32x144xbf16>, vector<144x32xbf16>, vector<32x32xf32> -> vector<32x32xf32>
    %c0_3 = arith.constant 0 : index
    %c0_4 = arith.constant 0 : index
    %3 = vector.load %arg2[%c0_3, %c0_4] : memref<32x144xbf16, #tpu.memory_space<vmem>>, vector<32x144xbf16>
    %c0_5 = arith.constant 0 : index
    %c0_6 = arith.constant 0 : index
    %4 = vector.load %arg4[%c0_5, %c0_6] : memref<144x32xbf16, #tpu.memory_space<vmem>>, vector<144x32xbf16>
    %cst_7 = arith.constant dense<0.000000e+00> : vector<32x32xf32>
    %5 = tpu.matmul %3, %4, %cst_7 {dimension_numbers = #tpu.dot_dimension_numbers<[1], [0], [0], [1], [0, 0, 1, 1], [], []>} : vector<32x144xbf16>, vector<144x32xbf16>, vector<32x32xf32> -> vector<32x32xf32>
    %6 = arith.addf %2, %5 : vector<32x32xf32>
    %c0_8 = arith.constant 0 : index
    %c0_9 = arith.constant 0 : index
    %7 = vector.load %arg5[%c0_8, %c0_9] : memref<1x32xf32, #tpu.memory_space<vmem>>, vector<1x32xf32>
    %8 = vector.broadcast %7 : vector<1x32xf32> to vector<32x32xf32>
    %9 = arith.addf %6, %8 : vector<32x32xf32>
    %cst_10 = arith.constant 0.000000e+00 : f32
    %10 = vector.broadcast %cst_10 : f32 to vector<32x32xf32>
    %11 = arith.maximumf %9, %10 : vector<32x32xf32>
    %12 = arith.truncf %11 : vector<32x32xf32> to vector<32x32xbf16>
    %c0_11 = arith.constant 0 : index
    %c0_12 = arith.constant 0 : index
    %13 = vector.load %arg6[%c0_11, %c0_12] : memref<32x32xbf16, #tpu.memory_space<vmem>>, vector<32x32xbf16>
    tpu.vector_store %arg6[%c0_11, %c0_12], %12 {strides = array<i32>} : memref<32x32xbf16, #tpu.memory_space<vmem>>, vector<32x32xbf16>,
    return
  }
  func.func @transform_0(%arg0: i32) -> (i32, i32) {
    %c0_i32 = arith.constant 0 : i32
    %c0_i32_0 = arith.constant 0 : i32
    return %arg0, %c0_i32 : i32, i32
  }
  func.func @transform_1(%arg0: i32) -> (i32, i32) {
    %c0_i32 = arith.constant 0 : i32
    %c0_i32_0 = arith.constant 0 : i32
    return %arg0, %c0_i32 : i32, i32
  }
  func.func @transform_2(%arg0: i32) -> (i32, i32) {
    %c0_i32 = arith.constant 0 : i32
    %c0_i32_0 = arith.constant 0 : i32
    %c0_i32_1 = arith.constant 0 : i32
    return %c0_i32, %c0_i32_0 : i32, i32
  }
  func.func @transform_3(%arg0: i32) -> (i32, i32) {
    %c0_i32 = arith.constant 0 : i32
    %c0_i32_0 = arith.constant 0 : i32
    %c0_i32_1 = arith.constant 0 : i32
    return %c0_i32, %c0_i32_0 : i32, i32
  }
  func.func @transform_4(%arg0: i32) -> (i32, i32) {
    %c0_i32 = arith.constant 0 : i32
    %c0_i32_0 = arith.constant 0 : i32
    %c0_i32_1 = arith.constant 0 : i32
    return %c0_i32, %c0_i32_0 : i32, i32
  }
  func.func @transform_5(%arg0: i32) -> (i32, i32) {
    %c0_i32 = arith.constant 0 : i32
    %c0_i32_0 = arith.constant 0 : i32
    return %arg0, %c0_i32 : i32, i32
  }
}

module attributes {stable_mosaic.version = 11 : i64} {
  func.func @kernel(%arg0: i32, %arg1: memref<128x144xbf16, #tpu.memory_space<vmem>>, %arg2: memref<144x12xbf16, #tpu.memory_space<vmem>>, %arg3: memref<1x12xf32, #tpu.memory_space<vmem>>, %arg4: memref<128x12xbf16, #tpu.memory_space<vmem>>) attributes {dimension_semantics = [#tpu.dimension_semantics<parallel>], iteration_bounds = array<i64: 1>, scalar_prefetch = 0 : i64, scratch_operands = 0 : i64, tpu.core_type = #tpu.core_type<tc>, window_params = [{transform_indices = @transform_0, window_bounds = array<i64: 128, 144>}, {pipeline_mode = #tpu.pipeline_mode<synchronous>, transform_indices = @transform_1, window_bounds = array<i64: 144, 12>}, {pipeline_mode = #tpu.pipeline_mode<synchronous>, transform_indices = @transform_2, window_bounds = array<i64: 1, 12>}, {transform_indices = @transform_3, window_bounds = array<i64: 128, 12>}]} {
    %c0 = arith.constant 0 : index
    %c0_0 = arith.constant 0 : index
    %0 = vector.load %arg1[%c0, %c0_0] : memref<128x144xbf16, #tpu.memory_space<vmem>>, vector<128x144xbf16>
    %c0_1 = arith.constant 0 : index
    %c0_2 = arith.constant 0 : index
    %1 = vector.load %arg2[%c0_1, %c0_2] : memref<144x12xbf16, #tpu.memory_space<vmem>>, vector<144x12xbf16>
    %cst = arith.constant dense<0.000000e+00> : vector<128x12xf32>
    %2 = tpu.matmul %0, %1, %cst {dimension_numbers = #tpu.dot_dimension_numbers<[1], [0], [0], [1], [0, 0, 1, 1], [], []>} : vector<128x144xbf16>, vector<144x12xbf16>, vector<128x12xf32> -> vector<128x12xf32>
    %c0_3 = arith.constant 0 : index
    %c0_4 = arith.constant 0 : index
    %3 = vector.load %arg3[%c0_3, %c0_4] : memref<1x12xf32, #tpu.memory_space<vmem>>, vector<1x12xf32>
    %4 = vector.broadcast %3 : vector<1x12xf32> to vector<128x12xf32>
    %5 = arith.addf %2, %4 : vector<128x12xf32>
    %cst_5 = arith.constant 0.000000e+00 : f32
    %6 = vector.broadcast %cst_5 : f32 to vector<128x12xf32>
    %7 = arith.maximumf %5, %6 : vector<128x12xf32>
    %8 = arith.truncf %7 : vector<128x12xf32> to vector<128x12xbf16>
    %c0_6 = arith.constant 0 : index
    %c0_7 = arith.constant 0 : index
    %9 = vector.load %arg4[%c0_6, %c0_7] : memref<128x12xbf16, #tpu.memory_space<vmem>>, vector<128x12xbf16>
    tpu.vector_store %arg4[%c0_6, %c0_7], %8 {strides = array<i32>} : memref<128x12xbf16, #tpu.memory_space<vmem>>, vector<128x12xbf16>,
    return
  }
  func.func @transform_0(%arg0: i32) -> (i32, i32) {
    %c0_i32 = arith.constant 0 : i32
    %c0_i32_0 = arith.constant 0 : i32
    return %arg0, %c0_i32 : i32, i32
  }
  func.func @transform_1(%arg0: i32) -> (i32, i32) {
    %c0_i32 = arith.constant 0 : i32
    %c0_i32_0 = arith.constant 0 : i32
    %c0_i32_1 = arith.constant 0 : i32
    return %c0_i32, %c0_i32_0 : i32, i32
  }
  func.func @transform_2(%arg0: i32) -> (i32, i32) {
    %c0_i32 = arith.constant 0 : i32
    %c0_i32_0 = arith.constant 0 : i32
    %c0_i32_1 = arith.constant 0 : i32
    return %c0_i32, %c0_i32_0 : i32, i32
  }
  func.func @transform_3(%arg0: i32) -> (i32, i32) {
    %c0_i32 = arith.constant 0 : i32
    %c0_i32_0 = arith.constant 0 : i32
    return %arg0, %c0_i32 : i32, i32
  }
}

</mosaic_0001>

<bundles_post_ra>
// kernel: vqvae_forward.31
= control target key start
LH: loop header
LB: loop body
LE: loop exit
PB: predicated region body
PF: predicated region fallthrough
CT: control target
= control target key end

     0   :  { %vm102_vm0 = vcmask 392192   ;;  %vm304_vm1 = vcmask 125952   ;;  %s555_s1 = inlined_call_operand.vmem [shape: bf16[48,16], index: 1, kind: input, shape index: {}]   ;;  %s556_s0 = inlined_call_operand.vmem [shape: bf16[128,48], index: 0, kind: input, shape index: {}]   ;;  %s557_s2 = inlined_call_operand.vmem [shape: f32[1,16], index: 2, kind: input, shape index: {}]   ;;  %s558_s3 = inlined_call_operand.vmem [shape: bf16[128,16], index: 3, kind: output, shape index: {}]  }
   0x1   :  { %v416_v0 = vld [vmem:[%s555_s1] sm:$0xff]   ;;  %v417_v1 = vld [vmem:[%s555_s1 + $0x8] sm:$0xff]   ;;  %v418_v2 = vld [vmem:[%s555_s1 + $0x10] sm:$0xff]  }
   0x2   :  { %388 = vmatprep.subr.bf16.mxu0 %v416_v0  ;;  %410 = vmatprep.subr.bf16.mxu1 %v416_v0  ;;  %v419_v3 = vld [vmem:[%s556_s0] sm:$0xff]   ;;  %v421_v5 = vld [vmem:[%s556_s0 + $0x8] sm:$0xff]   ;;  %v423_v7 = vld [vmem:[%s556_s0 + $0x10] sm:$0xff]  }
   0x3   :  { %389 = vmatpush3.bf16.msra.mxu0 %v416_v0  ;;  %413 = vmatpush3.bf16.msra.mxu1 %v416_v0  ;;  %v420_v4 = vld [vmem:[%s556_s0 + $0x20] sm:$0xff]   ;;  %v422_v6 = vld [vmem:[%s556_s0 + $0x28] sm:$0xff]   ;;  %v424_v8 = vld [vmem:[%s556_s0 + $0x30] sm:$0xff]  }
   0x4   :  { %390 = vmatprep.subr.bf16.mxu0 %v417_v1  ;;  %411 = vmatprep.subr.bf16.mxu1 %v417_v1  ;;  %v425_v9 = vld [vmem:[%s556_s0 + $0x18] sm:$0xff]   ;;  %v325_v11 = vld [vmem:[%s557_s2] ss:$0 sm:$0xff] }
   0x5   :  { %394 = vmatprep.mubr.msk.bf16.mxu0 %vm102_vm0, %v419_v3  ;;  %402 = vmatprep.mubr.msk.bf16.mxu1 %vm102_vm0, %v420_v4  ;;  %v426_v10 = vld [vmem:[%s556_s0 + $0x38] sm:$0xff]  }
   0x7   :  { %391 = vmatpush3.bf16.msra.mxu0 %v417_v1  ;;  %414 = vmatpush3.bf16.msra.mxu1 %v417_v1 }
   0x8   :  { %392 = vmatprep.subr.bf16.mxu0 %v418_v2  ;;  %412 = vmatprep.subr.bf16.mxu1 %v418_v2 }
   0xb   :  { %393 = vmatpush3.bf16.msra.mxu0 %v418_v2  ;;  %415 = vmatpush3.bf16.msra.mxu1 %v418_v2 }
   0xe   :  { %395 = vmatmul.mubr.msk.bf16.vlgmr.msra.gmra.mrb[0].mxu0 %vm102_vm0, %v421_v5  ;;  %403 = vmatmul.mubr.msk.bf16.vlgmr.msra.gmra.mrb[0].mxu1 %vm102_vm0, %v422_v6 }
   0xf   :  { %398 = vmatprep.mubr.msk.bf16.mxu0 %vm102_vm0, %v423_v7  ;;  %406 = vmatprep.mubr.msk.bf16.mxu1 %vm102_vm0, %v424_v8 }
  0x16   :  { %399 = vmatmul.mubr.msk.bf16.gmra.mrb[4].mxu0 %vm102_vm0, %v425_v9  ;;  %407 = vmatmul.mubr.msk.bf16.gmra.mrb[4].mxu1 %vm102_vm0, %v426_v10 }
  0xe1   :  { %v396_v12 = vpop.f32.mrb[0].mxu0  ;;  %v404_v13 = vpop.f32.mrb[0].mxu1 }
  0xe2   :  { %v170_v14 = vadd.f32 %v396_v12, %v325_v11  ;;  %v202_v15 = vadd.f32 %v404_v13, %v325_v11  ;;  %v161_v16 = vpop.f32.mrb[1].mxu0  ;;  %v193_v17 = vpop.f32.mrb[1].mxu1 }
  0xe3   :  { %v162_v18 = vadd.f32 %v325_v11, %v161_v16  ;;  %v194_v19 = vadd.f32 %v325_v11, %v193_v17  ;;  %v397_v20 = vpop.f32.mrb[2].mxu0  ;;  %v405_v21 = vpop.f32.mrb[2].mxu1 }
  0xe4   :  { %v226_v22 = vmax.f32 %v170_v14, 0.0  ;;  %v234_v23 = vmax.f32 %v202_v15, 0.0  ;;  %v173_v24 = vadd.f32 %v397_v20, %v325_v11  ;;  %v205_v25 = vadd.f32 %v405_v21, %v325_v11  ;;  %v164_v26 = vpop.f32.mrb[3].mxu0  ;;  %v196_v27 = vpop.f32.mrb[3].mxu1 }
  0xe5   :  { %v224_v28 = vmax.f32 %v162_v18, 0.0  ;;  %v232_v29 = vmax.f32 %v194_v19, 0.0  ;;  %v165_v30 = vadd.f32 %v325_v11, %v164_v26  ;;  %v197_v31 = vadd.f32 %v325_v11, %v196_v27 }
  0xe6   :  { %v363_v32 = vpack.c.bf16 %v226_v22, %v226_v22  ;;  %v371_v33 = vpack.c.bf16 %v234_v23, %v234_v23  ;;  %v227_v34 = vmax.f32 %v173_v24, 0.0  ;;  %v235_v35 = vmax.f32 %v205_v25, 0.0 }
  0xe7   :  { %v361_v36 = vpack.c.bf16 %v224_v28, %v224_v28  ;;  %v369_v37 = vpack.c.bf16 %v232_v29, %v232_v29  ;;  %v225_v38 = vmax.f32 %v165_v30, 0.0  ;;  %v233_v39 = vmax.f32 %v197_v31, 0.0 }
  0xe8   :  { %307 = vst.msk [vmem:[%s558_s3 + $0x8] sm:$0xf] %vm304_vm1, %v363_v32  ;;  %315 = vst.msk [vmem:[%s558_s3 + $0x28] sm:$0xf] %vm304_vm1, %v371_v33  ;;  %v364_v40 = vpack.c.bf16 %v227_v34, %v227_v34  ;;  %v372_v41 = vpack.c.bf16 %v235_v35, %v235_v35 }
  0xe9   :  { %305 = vst.msk [vmem:[%s558_s3] sm:$0xf] %vm304_vm1, %v361_v36  ;;  %313 = vst.msk [vmem:[%s558_s3 + $0x20] sm:$0xf] %vm304_vm1, %v369_v37  ;;  %v362_v42 = vpack.c.bf16 %v225_v38, %v225_v38  ;;  %v370_v43 = vpack.c.bf16 %v233_v39, %v233_v39  ;;  %v400_v44 = vpop.f32.mrb[4].mxu0  ;;  %v408_v45 = vpop.f32.mrb[4].mxu1 }
  0xea   :  { %308 = vst.msk [vmem:[%s558_s3 + $0xc] sm:$0xf] %vm304_vm1, %v364_v40  ;;  %316 = vst.msk [vmem:[%s558_s3 + $0x2c] sm:$0xf] %vm304_vm1, %v372_v41  ;;  %v186_v46 = vadd.f32 %v400_v44, %v325_v11  ;;  %v218_v47 = vadd.f32 %v408_v45, %v325_v11  ;;  %v177_v48 = vpop.f32.mrb[5].mxu0  ;;  %v209_v49 = vpop.f32.mrb[5].mxu1 }
  0xeb   :  { %306 = vst.msk [vmem:[%s558_s3 + $0x4] sm:$0xf] %vm304_vm1, %v362_v42  ;;  %314 = vst.msk [vmem:[%s558_s3 + $0x24] sm:$0xf] %vm304_vm1, %v370_v43  ;;  %v178_v50 = vadd.f32 %v325_v11, %v177_v48  ;;  %v210_v51 = vadd.f32 %v325_v11, %v209_v49  ;;  %v401_v52 = vpop.f32.mrb[6].mxu0  ;;  %v409_v53 = vpop.f32.mrb[6].mxu1 }
  0xec   :  { %v230_v54 = vmax.f32 %v186_v46, 0.0  ;;  %v238_v55 = vmax.f32 %v218_v47, 0.0  ;;  %v189_v56 = vadd.f32 %v401_v52, %v325_v11  ;;  %v221_v57 = vadd.f32 %v409_v53, %v325_v11  ;;  %v180_v58 = vpop.f32.mrb[7].mxu0  ;;  %v212_v59 = vpop.f32.mrb[7].mxu1 }
  0xed   :  { %v228_v60 = vmax.f32 %v178_v50, 0.0  ;;  %v236_v61 = vmax.f32 %v210_v51, 0.0  ;;  %v181_v62 = vadd.f32 %v325_v11, %v180_v58  ;;  %v213_v63 = vadd.f32 %v325_v11, %v212_v59 }
  0xee   :  { %v367_v0 = vpack.c.bf16 %v230_v54, %v230_v54  ;;  %v375_v1 = vpack.c.bf16 %v238_v55, %v238_v55  ;;  %v231_v2 = vmax.f32 %v189_v56, 0.0  ;;  %v239_v3 = vmax.f32 %v221_v57, 0.0 }
  0xef   :  { %v365_v4 = vpack.c.bf16 %v228_v60, %v228_v60  ;;  %v373_v5 = vpack.c.bf16 %v236_v61, %v236_v61  ;;  %v229_v6 = vmax.f32 %v181_v62, 0.0  ;;  %v237_v7 = vmax.f32 %v213_v63, 0.0 }
  0xf0   :  { %311 = vst.msk [vmem:[%s558_s3 + $0x18] sm:$0xf] %vm304_vm1, %v367_v0  ;;  %319 = vst.msk [vmem:[%s558_s3 + $0x38] sm:$0xf] %vm304_vm1, %v375_v1  ;;  %v368_v8 = vpack.c.bf16 %v231_v2, %v231_v2  ;;  %v376_v9 = vpack.c.bf16 %v239_v3, %v239_v3 }
  0xf1   :  { %309 = vst.msk [vmem:[%s558_s3 + $0x10] sm:$0xf] %vm304_vm1, %v365_v4  ;;  %317 = vst.msk [vmem:[%s558_s3 + $0x30] sm:$0xf] %vm304_vm1, %v373_v5  ;;  %v366_v10 = vpack.c.bf16 %v229_v6, %v229_v6  ;;  %v374_v11 = vpack.c.bf16 %v237_v7, %v237_v7 }
  0xf2   :  { %312 = vst.msk [vmem:[%s558_s3 + $0x1c] sm:$0xf] %vm304_vm1, %v368_v8  ;;  %320 = vst.msk [vmem:[%s558_s3 + $0x3c] sm:$0xf] %vm304_vm1, %v376_v9 }
  0xf3   :  { %310 = vst.msk [vmem:[%s558_s3 + $0x14] sm:$0xf] %vm304_vm1, %v366_v10  ;;  %318 = vst.msk [vmem:[%s558_s3 + $0x34] sm:$0xf] %vm304_vm1, %v374_v11 }

// kernel: vqvae_forward.32
= control target key start
LH: loop header
LB: loop body
LE: loop exit
PB: predicated region body
PF: predicated region fallthrough
CT: control target
= control target key end

     0   :  { %vm243_vm0 = vcmask 257024   ;;  %s442_s1 = inlined_call_operand.vmem [shape: bf16[256,32], index: 1, kind: input, shape index: {}]   ;;  %s443_s0 = inlined_call_operand.vmem [shape: bf16[32,256], index: 0, kind: input, shape index: {}]   ;;  %s444_s2 = inlined_call_operand.vmem [shape: f32[1,32], index: 2, kind: input, shape index: {}]   ;;  %s445_s3 = inlined_call_operand.vmem [shape: bf16[32,32], index: 3, kind: output, shape index: {}]  }
   0x1   :  { %v325_v0 = vld [vmem:[%s442_s1 + $0x40] sm:$0xff]   ;;  %v327_v2 = vld [vmem:[%s442_s1 + $0x48] sm:$0xff]   ;;  %v329_v4 = vld [vmem:[%s442_s1 + $0x50] sm:$0xff]  }
   0x2   :  { %v326_v1 = vld [vmem:[%s442_s1] sm:$0xff]   ;;  %281 = vmatprep.subr.bf16.mxu0 %v325_v0  ;;  %309 = vmatprep.subr.bf16.mxu1 %v325_v0  ;;  %v328_v3 = vld [vmem:[%s442_s1 + $0x8] sm:$0xff]   ;;  %v330_v5 = vld [vmem:[%s442_s1 + $0x10] sm:$0xff]  }
   0x3   :  { %282 = vmatpush3.bf16.msra.mxu0 %v326_v1  ;;  %317 = vmatpush3.bf16.msra.mxu1 %v326_v1  ;;  %v331_v6 = vld [vmem:[%s442_s1 + $0x58] sm:$0xff]   ;;  %v333_v8 = vld [vmem:[%s442_s1 + $0x60] sm:$0xff]   ;;  %v335_v10 = vld [vmem:[%s442_s1 + $0x68] sm:$0xff]  }
   0x4   :  { %283 = vmatprep.subr.bf16.mxu0 %v327_v2  ;;  %310 = vmatprep.subr.bf16.mxu1 %v327_v2  ;;  %v332_v7 = vld [vmem:[%s442_s1 + $0x18] sm:$0xff]   ;;  %v334_v9 = vld [vmem:[%s442_s1 + $0x20] sm:$0xff]   ;;  %v336_v13 = vld [vmem:[%s442_s1 + $0x28] sm:$0xff]  }
   0x5   :  { %v343_v11 = vld [vmem:[%s443_s0 + $0x4] ss:$8 sps:$4 sm:$0xff]   ;;  %v346_v12 = vld [vmem:[%s443_s0 + $0x14] ss:$8 sps:$4 sm:$0xff]   ;;  %v341_v18 = vld [vmem:[%s443_s0] ss:$8 sps:$4 sm:$0xff]  }
   0x6   :  { %v337_v14 = vld [vmem:[%s442_s1 + $0x70] sm:$0xff]   ;;  %206 = vmatprep.mubr.bf16.mxu0 %v343_v11  ;;  %214 = vmatprep.mubr.bf16.mxu1 %v346_v12  ;;  %v339_v16 = vld [vmem:[%s442_s1 + $0x78] sm:$0xff]   ;;  %v252_v22 = vld [vmem:[%s444_s2] ss:$0 sm:$0xff] }
   0x7   :  { %284 = vmatpush3.bf16.msra.mxu0 %v328_v3  ;;  %318 = vmatpush3.bf16.msra.mxu1 %v328_v3  ;;  %v338_v15 = vld [vmem:[%s442_s1 + $0x30] sm:$0xff]   ;;  %v340_v17 = vld [vmem:[%s442_s1 + $0x38] sm:$0xff]  }
   0x8   :  { %285 = vmatprep.subr.bf16.mxu0 %v329_v4  ;;  %311 = vmatprep.subr.bf16.mxu1 %v329_v4  ;;  %v344_v19 = vld [vmem:[%s443_s0 + $0x10] ss:$8 sps:$4 sm:$0xff]  }
   0xb   :  { %286 = vmatpush3.bf16.msra.mxu0 %v330_v5  ;;  %319 = vmatpush3.bf16.msra.mxu1 %v330_v5 }
   0xc   :  { %287 = vmatprep.subr.bf16.mxu0 %v331_v6  ;;  %312 = vmatprep.subr.bf16.mxu1 %v331_v6 }
   0xf   :  { %288 = vmatpush3.bf16.msra.mxu0 %v332_v7  ;;  %320 = vmatpush3.bf16.msra.mxu1 %v332_v7 }
  0x10   :  { %289 = vmatprep.subr.bf16.mxu0 %v333_v8  ;;  %313 = vmatprep.subr.bf16.mxu1 %v333_v8 }
  0x13   :  { %290 = vmatpush3.bf16.msra.mxu0 %v334_v9  ;;  %321 = vmatpush3.bf16.msra.mxu1 %v334_v9 }
  0x14   :  { %291 = vmatprep.subr.bf16.mxu0 %v335_v10  ;;  %314 = vmatprep.subr.bf16.mxu1 %v335_v10 }
  0x17   :  { %292 = vmatpush3.bf16.msra.mxu0 %v336_v13  ;;  %322 = vmatpush3.bf16.msra.mxu1 %v336_v13 }
  0x18   :  { %293 = vmatprep.subr.bf16.mxu0 %v337_v14  ;;  %315 = vmatprep.subr.bf16.mxu1 %v337_v14 }
  0x1b   :  { %294 = vmatpush3.bf16.msra.mxu0 %v338_v15  ;;  %323 = vmatpush3.bf16.msra.mxu1 %v338_v15 }
  0x1c   :  { %295 = vmatprep.subr.bf16.mxu0 %v339_v16  ;;  %316 = vmatprep.subr.bf16.mxu1 %v339_v16 }
  0x1f   :  { %296 = vmatpush3.bf16.msra.mxu0 %v340_v17  ;;  %324 = vmatpush3.bf16.msra.mxu1 %v340_v17 }
  0x22   :  { %207 = vmatmul.mubr.bf16.vlgmr.msra.gmra.mrb[0].mxu0 %v341_v18  ;;  %215 = vmatmul.mubr.bf16.vlgmr.msra.gmra.mrb[0].mxu1 %v344_v19 }
  0xf5   :  { %v297_v20 = vpop.f32.mrb[0].mxu0  ;;  %v303_v21 = vpop.f32.mrb[0].mxu1 }
  0xf6   :  { %v298_v23 = vpop.f32.mrb[1].mxu0  ;;  %v304_v24 = vpop.f32.mrb[1].mxu1 }
  0xf7   :  { %v299_v25 = vadd.f32 %v298_v23, %v297_v20  ;;  %v305_v26 = vadd.f32 %v304_v24, %v303_v21  ;;  %v300_v27 = vpop.f32.mrb[2].mxu0  ;;  %v306_v28 = vpop.f32.mrb[2].mxu1 }
  0xf8   :  { %v301_v29 = vpop.f32.mrb[3].mxu0  ;;  %v307_v30 = vpop.f32.mrb[3].mxu1 }
  0xf9   :  { %v209_v31 = vadd.f32 %v299_v25, %v252_v22  ;;  %v217_v32 = vadd.f32 %v305_v26, %v252_v22  ;;  %v302_v33 = vadd.f32 %v301_v29, %v300_v27  ;;  %v308_v34 = vadd.f32 %v307_v30, %v306_v28 }
  0xfb   :  { %v223_v35 = vmax.f32 %v209_v31, 0.0  ;;  %v225_v36 = vmax.f32 %v217_v32, 0.0  ;;  %v212_v37 = vadd.f32 %v302_v33, %v252_v22  ;;  %v220_v38 = vadd.f32 %v308_v34, %v252_v22 }
  0xfd   :  { %v277_v39 = vpack.c.bf16 %v223_v35, %v223_v35  ;;  %v279_v40 = vpack.c.bf16 %v225_v36, %v225_v36  ;;  %v224_v41 = vmax.f32 %v212_v37, 0.0  ;;  %v226_v42 = vmax.f32 %v220_v38, 0.0 }
  0xff   :  { %244 = vst.msk [vmem:[%s445_s3] sm:$0xf] %vm243_vm0, %v277_v39  ;;  %246 = vst.msk [vmem:[%s445_s3 + $0x8] sm:$0xf] %vm243_vm0, %v279_v40  ;;  %v278_v43 = vpack.c.bf16 %v224_v41, %v224_v41  ;;  %v280_v44 = vpack.c.bf16 %v226_v42, %v226_v42 }
 0x101   :  { %245 = vst.msk [vmem:[%s445_s3 + $0x4] sm:$0xf] %vm243_vm0, %v278_v43  ;;  %247 = vst.msk [vmem:[%s445_s3 + $0xc] sm:$0xf] %vm243_vm0, %v280_v44 }

// kernel: vqvae_forward.33
= control target key start
LH: loop header
LB: loop body
LE: loop exit
PB: predicated region body
PF: predicated region fallthrough
CT: control target
= control target key end

     0   :  { %vm204_vm0 = vcmask 261120   ;;  %vm329_vm1 = vcmask 257024   ;;  %s550_s1 = inlined_call_operand.vmem [shape: bf16[288,32], index: 1, kind: input, shape index: {}]   ;;  %s551_s0 = inlined_call_operand.vmem [shape: bf16[32,288], index: 0, kind: input, shape index: {}]   ;;  %s552_s2 = inlined_call_operand.vmem [shape: f32[1,32], index: 2, kind: input, shape index: {}]   ;;  %s553_s3 = inlined_call_operand.vmem [shape: bf16[32,32], index: 3, kind: output, shape index: {}]  }
   0x1   :  { %v413_v0 = vld [vmem:[%s550_s1 + $0x40] sm:$0xff]   ;;  %v415_v2 = vld [vmem:[%s550_s1 + $0x48] sm:$0xff]   ;;  %v417_v4 = vld [vmem:[%s550_s1 + $0x50] sm:$0xff]  }
   0x2   :  { %v414_v1 = vld [vmem:[%s550_s1] sm:$0xff]   ;;  %373 = vmatprep.subr.bf16.mxu0 %v413_v0  ;;  %v416_v3 = vld [vmem:[%s550_s1 + $0x8] sm:$0xff]   ;;  %v418_v5 = vld [vmem:[%s550_s1 + $0x10] sm:$0xff]  }
   0x3   :  { %374 = vmatpush3.bf16.msra.mxu0 %v414_v1  ;;  %v419_v6 = vld [vmem:[%s550_s1 + $0x58] sm:$0xff]   ;;  %v421_v8 = vld [vmem:[%s550_s1 + $0x60] sm:$0xff]   ;;  %v423_v11 = vld [vmem:[%s550_s1 + $0x68] sm:$0xff]  }
   0x4   :  { %375 = vmatprep.subr.bf16.mxu0 %v415_v2  ;;  %v420_v7 = vld [vmem:[%s550_s1 + $0x18] sm:$0xff]   ;;  %v422_v9 = vld [vmem:[%s550_s1 + $0x20] sm:$0xff]   ;;  %v424_v12 = vld [vmem:[%s550_s1 + $0x28] sm:$0xff]  }
   0x5   :  { %v428_v10 = vld [vmem:[%s550_s1 + $0x80] sm:$0xff]   ;;  %v425_v13 = vld [vmem:[%s550_s1 + $0x70] sm:$0xff]   ;;  %v433_v15 = vld [vmem:[%s550_s1 + $0x88] sm:$0xff]  }
   0x6   :  { %405 = vmatprep.subr.bf16.mxu1 %v428_v10  ;;  %v432_v14 = vld [vmem:[%s551_s0 + $0x4] ss:$12 sps:$4 sm:$0xff]   ;;  %v434_v16 = vld [vmem:[%s551_s0 + $0x8] ss:$12 sps:$4 sm:$0xff]   ;;  %v435_v17 = vld [vmem:[%s551_s0 + $0x20] ss:$12 sps:$4 sm:$0xff]  }
   0x7   :  { %376 = vmatpush3.bf16.msra.mxu0 %v416_v3  ;;  %406 = vmatpush3.bf16.msra.mxu1 %v428_v10  ;;  %v426_v18 = vld [vmem:[%s550_s1 + $0x30] sm:$0xff]   ;;  %v427_v19 = vld [vmem:[%s550_s1 + $0x78] sm:$0xff]   ;;  %v430_v21 = vld [vmem:[%s551_s0] ss:$12 sps:$4 sm:$0xff]  }
   0x8   :  { %377 = vmatprep.subr.bf16.mxu0 %v417_v4  ;;  %243 = vmatprep.mubr.bf16.mxu0 %v432_v14  ;;  %v429_v20 = vld [vmem:[%s550_s1 + $0x38] sm:$0xff]   ;;  %v338_v30 = vld [vmem:[%s552_s2] ss:$0 sm:$0xff] }
   0x9   :  { %407 = vmatprep.subr.bf16.mxu1 %v433_v15  ;;  %409 = vmatprep.mubr.msk.bf16.mxu1 %vm204_vm0, %v434_v16  ;;  %v436_v22 = vld [vmem:[%s551_s0 + $0x1c] ss:$12 sps:$4 sm:$0xff]   ;;  %v438_v23 = vld [vmem:[%s551_s0 + $0x18] ss:$12 sps:$4 sm:$0xff]  }
   0xb   :  { %378 = vmatpush3.bf16.msra.mxu0 %v418_v5  ;;  %408 = vmatpush3.bf16.msra.mxu1 %v433_v15 }
   0xc   :  { %379 = vmatprep.subr.bf16.mxu0 %v419_v6 }
   0xe   :  { %410 = vmatmul.mubr.msk.bf16.vlgmr.msra.gmra.mrb[0].mxu1 %vm204_vm0, %v435_v17 }
   0xf   :  { %380 = vmatpush3.bf16.msra.mxu0 %v420_v7 }
  0x10   :  { %381 = vmatprep.subr.bf16.mxu0 %v421_v8 }
  0x13   :  { %382 = vmatpush3.bf16.msra.mxu0 %v422_v9 }
  0x14   :  { %383 = vmatprep.subr.bf16.mxu0 %v423_v11 }
  0x17   :  { %384 = vmatpush3.bf16.msra.mxu0 %v424_v12 }
  0x18   :  { %385 = vmatprep.subr.bf16.mxu0 %v425_v13 }
  0x1b   :  { %386 = vmatpush3.bf16.msra.mxu0 %v426_v18 }
  0x1c   :  { %387 = vmatprep.subr.bf16.mxu0 %v427_v19 }
  0x1f   :  { %388 = vmatpush3.bf16.msra.mxu0 %v429_v20 }
  0x22   :  { %244 = vmatmul.mubr.bf16.vlgmr.msra.gmra.mrb[0].mxu0 %v430_v21 }
  0x23   :  { %251 = vmatprep.mubr.bf16.mxu0 %v436_v22 }
  0x2a   :  { %252 = vmatmul.mubr.bf16.gmra.mrb[4].mxu0 %v438_v23 }
  0xe1   :  { %v411_v24 = vpop.f32.mrb[0].mxu1 }
  0xe2   :  { %v294_v25 = vpop.f32.mrb[1].mxu1 }
  0xe3   :  { %v412_v26 = vpop.f32.mrb[2].mxu1 }
  0xe4   :  { %v297_v27 = vpop.f32.mrb[3].mxu1 }
  0xf5   :  { %v389_v28 = vpop.f32.mrb[0].mxu0 }
  0xf6   :  { %v390_v29 = vpop.f32.mrb[1].mxu0 }
  0xf7   :  { %v391_v31 = vadd.f32 %v390_v29, %v389_v28  ;;  %v392_v32 = vpop.f32.mrb[2].mxu0 }
  0xf8   :  { %v393_v33 = vpop.f32.mrb[3].mxu0 }
  0xf9   :  { %v394_v34 = vadd.f32 %v393_v33, %v392_v32  ;;  %v246_v35 = vadd.f32 %v391_v31, %v338_v30 }
  0xfb   :  { %v295_v36 = vadd.f32 %v294_v25, %v246_v35  ;;  %v249_v37 = vadd.f32 %v394_v34, %v338_v30 }
  0xfd   :  { %v309_v38 = vmax.f32 %v295_v36, 0.0  ;;  %v298_v39 = vadd.f32 %v297_v27, %v249_v37  ;;  %v395_v40 = vpop.f32.mrb[4].mxu0 }
  0xfe   :  { %v396_v41 = vpop.f32.mrb[5].mxu0 }
  0xff   :  { %v369_v42 = vpack.c.bf16 %v309_v38, %v309_v38  ;;  %v310_v43 = vmax.f32 %v298_v39, 0.0  ;;  %v397_v44 = vadd.f32 %v396_v41, %v395_v40  ;;  %v398_v45 = vpop.f32.mrb[6].mxu0 }
 0x100   :  { %v399_v46 = vpop.f32.mrb[7].mxu0 }
 0x101   :  { %330 = vst.msk [vmem:[%s553_s3] sm:$0xf] %vm329_vm1, %v369_v42  ;;  %v370_v47 = vpack.c.bf16 %v310_v43, %v310_v43  ;;  %v254_v48 = vadd.f32 %v397_v44, %v338_v30  ;;  %v400_v49 = vadd.f32 %v399_v46, %v398_v45 }
 0x103   :  { %331 = vst.msk [vmem:[%s553_s3 + $0x4] sm:$0xf] %vm329_vm1, %v370_v47  ;;  %v303_v50 = vadd.f32 %v411_v24, %v254_v48  ;;  %v257_v51 = vadd.f32 %v400_v49, %v338_v30 }
 0x105   :  { %v311_v52 = vmax.f32 %v303_v50, 0.0  ;;  %v306_v53 = vadd.f32 %v412_v26, %v257_v51 }
 0x107   :  { %v371_v54 = vpack.c.bf16 %v311_v52, %v311_v52  ;;  %v312_v55 = vmax.f32 %v306_v53, 0.0 }
 0x109   :  { %332 = vst.msk [vmem:[%s553_s3 + $0x8] sm:$0xf] %vm329_vm1, %v371_v54  ;;  %v372_v56 = vpack.c.bf16 %v312_v55, %v312_v55 }
 0x10b   :  { %333 = vst.msk [vmem:[%s553_s3 + $0xc] sm:$0xf] %vm329_vm1, %v372_v56 }

// kernel: vqvae_forward.35
= control target key start
LH: loop header
LB: loop body
LE: loop exit
PB: predicated region body
PF: predicated region fallthrough
CT: control target
= control target key end

     0   :  { %vm47_vm0 = vcmask 130048   ;;  %vm135_vm1 = vcmask 257024   ;;  %s234_s1 = inlined_call_operand.vmem [shape: bf16[16,32], index: 1, kind: input, shape index: {}]   ;;  %s235_s0 = inlined_call_operand.vmem [shape: bf16[32,16], index: 0, kind: input, shape index: {}]   ;;  %s236_s3 = inlined_call_operand.vmem [shape: bf16[32,32], index: 3, kind: input, shape index: {}]   ;;  %s237_s2 = inlined_call_operand.vmem [shape: f32[1,32], index: 2, kind: input, shape index: {}]   ;;  %s238_s4 = inlined_call_operand.vmem [shape: bf16[32,32], index: 4, kind: output, shape index: {}]  }
   0x1   :  { %v176_v0 = vld [vmem:[%s234_s1] sm:$0xff]   ;;  %v178_v2 = vld [vmem:[%s235_s0 + $0x8] sm:$0xff]  }
   0x2   :  { %v177_v1 = vld [vmem:[%s235_s0] sm:$0xff]   ;;  %170 = vmatprep.subr.bf16.mxu0 %v176_v0  ;;  %v166_v3 = vld [vmem:[%s236_s3 + $0x8] sm:$0xff]  }
   0x3   :  { %171 = vmatpush3.bf16.msra.mxu0 %v176_v0  ;;  %172 = vmatprep.mubr.msk.bf16.mxu0 %vm47_vm0, %v177_v1  ;;  %v159_v4 = vld [vmem:[%s236_s3] sm:$0xff]   ;;  %v164_v6 = vunpack.c.l.bf16 %v166_v3  ;;  %v165_v11 = vunpack.c.h.bf16 %v166_v3 }
   0x4   :  { %v144_v5 = vld [vmem:[%s237_s2] ss:$0 sm:$0xff]  ;;  %v160_v8 = vunpack.c.l.bf16 %v159_v4  ;;  %v161_v14 = vunpack.c.h.bf16 %v159_v4 }
   0x6   :  { %173 = vmatmul.mubr.msk.bf16.vlgmr.msra.gmra.mrb[0].mxu0 %vm47_vm0, %v178_v2 }
  0xd9   :  { %v174_v7 = vpop.f32.mrb[0].mxu0 }
  0xda   :  { %v97_v9 = vadd.f32 %v174_v7, %v144_v5  ;;  %v88_v10 = vpop.f32.mrb[1].mxu0 }
  0xdb   :  { %v89_v12 = vadd.f32 %v144_v5, %v88_v10  ;;  %v175_v13 = vpop.f32.mrb[2].mxu0 }
  0xdc   :  { %v113_v15 = vadd.f32 %v164_v6, %v97_v9  ;;  %v100_v16 = vadd.f32 %v175_v13, %v144_v5  ;;  %v91_v17 = vpop.f32.mrb[3].mxu0 }
  0xdd   :  { %v111_v18 = vadd.f32 %v160_v8, %v89_v12  ;;  %v92_v19 = vadd.f32 %v144_v5, %v91_v17 }
  0xde   :  { %v117_v20 = vmax.f32 %v113_v15, 0.0  ;;  %v114_v21 = vadd.f32 %v165_v11, %v100_v16 }
  0xdf   :  { %v115_v22 = vmax.f32 %v111_v18, 0.0  ;;  %v112_v23 = vadd.f32 %v161_v14, %v92_v19 }
  0xe0   :  { %v156_v24 = vpack.c.bf16 %v117_v20, %v117_v20  ;;  %v118_v25 = vmax.f32 %v114_v21, 0.0 }
  0xe1   :  { %v154_v26 = vpack.c.bf16 %v115_v22, %v115_v22  ;;  %v116_v27 = vmax.f32 %v112_v23, 0.0 }
  0xe2   :  { %138 = vst.msk [vmem:[%s238_s4 + $0x8] sm:$0xf] %vm135_vm1, %v156_v24  ;;  %v157_v28 = vpack.c.bf16 %v118_v25, %v118_v25 }
  0xe3   :  { %136 = vst.msk [vmem:[%s238_s4] sm:$0xf] %vm135_vm1, %v154_v26  ;;  %v155_v29 = vpack.c.bf16 %v116_v27, %v116_v27 }
  0xe4   :  { %139 = vst.msk [vmem:[%s238_s4 + $0xc] sm:$0xf] %vm135_vm1, %v157_v28 }
  0xe5   :  { %137 = vst.msk [vmem:[%s238_s4 + $0x4] sm:$0xf] %vm135_vm1, %v155_v29 }

// kernel: vqvae_forward.34
= control target key start
LH: loop header
LB: loop body
LE: loop exit
PB: predicated region body
PF: predicated region fallthrough
CT: control target
= control target key end

     0   :  { %vm204_vm0 = vcmask 261120   ;;  %vm329_vm1 = vcmask 125952   ;;  %s550_s1 = inlined_call_operand.vmem [shape: bf16[288,16], index: 1, kind: input, shape index: {}]   ;;  %s551_s0 = inlined_call_operand.vmem [shape: bf16[32,288], index: 0, kind: input, shape index: {}]   ;;  %s552_s2 = inlined_call_operand.vmem [shape: f32[1,16], index: 2, kind: input, shape index: {}]   ;;  %s553_s3 = inlined_call_operand.vmem [shape: bf16[32,16], index: 3, kind: output, shape index: {}]  }
   0x1   :  { %v413_v0 = vld [vmem:[%s550_s1 + $0x40] sm:$0xff]   ;;  %v415_v2 = vld [vmem:[%s550_s1 + $0x48] sm:$0xff]   ;;  %v417_v4 = vld [vmem:[%s550_s1 + $0x50] sm:$0xff]  }
   0x2   :  { %v414_v1 = vld [vmem:[%s550_s1] sm:$0xff]   ;;  %373 = vmatprep.subr.bf16.mxu0 %v413_v0  ;;  %v416_v3 = vld [vmem:[%s550_s1 + $0x8] sm:$0xff]   ;;  %v418_v5 = vld [vmem:[%s550_s1 + $0x10] sm:$0xff]  }
   0x3   :  { %374 = vmatpush3.bf16.msra.mxu0 %v414_v1  ;;  %v419_v6 = vld [vmem:[%s550_s1 + $0x58] sm:$0xff]   ;;  %v421_v8 = vld [vmem:[%s550_s1 + $0x60] sm:$0xff]   ;;  %v423_v11 = vld [vmem:[%s550_s1 + $0x68] sm:$0xff]  }
   0x4   :  { %375 = vmatprep.subr.bf16.mxu0 %v415_v2  ;;  %v420_v7 = vld [vmem:[%s550_s1 + $0x18] sm:$0xff]   ;;  %v422_v9 = vld [vmem:[%s550_s1 + $0x20] sm:$0xff]   ;;  %v424_v12 = vld [vmem:[%s550_s1 + $0x28] sm:$0xff]  }
   0x5   :  { %v428_v10 = vld [vmem:[%s550_s1 + $0x80] sm:$0xff]   ;;  %v425_v13 = vld [vmem:[%s550_s1 + $0x70] sm:$0xff]   ;;  %v433_v15 = vld [vmem:[%s550_s1 + $0x88] sm:$0xff]  }
   0x6   :  { %405 = vmatprep.subr.bf16.mxu1 %v428_v10  ;;  %v432_v14 = vld [vmem:[%s551_s0 + $0x4] ss:$12 sps:$4 sm:$0xff]   ;;  %v434_v16 = vld [vmem:[%s551_s0 + $0x8] ss:$12 sps:$4 sm:$0xff]   ;;  %v435_v17 = vld [vmem:[%s551_s0 + $0x20] ss:$12 sps:$4 sm:$0xff]  }
   0x7   :  { %376 = vmatpush3.bf16.msra.mxu0 %v416_v3  ;;  %406 = vmatpush3.bf16.msra.mxu1 %v428_v10  ;;  %v426_v18 = vld [vmem:[%s550_s1 + $0x30] sm:$0xff]   ;;  %v427_v19 = vld [vmem:[%s550_s1 + $0x78] sm:$0xff]   ;;  %v430_v21 = vld [vmem:[%s551_s0] ss:$12 sps:$4 sm:$0xff]  }
   0x8   :  { %377 = vmatprep.subr.bf16.mxu0 %v417_v4  ;;  %243 = vmatprep.mubr.bf16.mxu0 %v432_v14  ;;  %v429_v20 = vld [vmem:[%s550_s1 + $0x38] sm:$0xff]   ;;  %v338_v30 = vld [vmem:[%s552_s2] ss:$0 sm:$0xff] }
   0x9   :  { %407 = vmatprep.subr.bf16.mxu1 %v433_v15  ;;  %409 = vmatprep.mubr.msk.bf16.mxu1 %vm204_vm0, %v434_v16  ;;  %v436_v22 = vld [vmem:[%s551_s0 + $0x1c] ss:$12 sps:$4 sm:$0xff]   ;;  %v438_v23 = vld [vmem:[%s551_s0 + $0x18] ss:$12 sps:$4 sm:$0xff]  }
   0xb   :  { %378 = vmatpush3.bf16.msra.mxu0 %v418_v5  ;;  %408 = vmatpush3.bf16.msra.mxu1 %v433_v15 }
   0xc   :  { %379 = vmatprep.subr.bf16.mxu0 %v419_v6 }
   0xe   :  { %410 = vmatmul.mubr.msk.bf16.vlgmr.msra.gmra.mrb[0].mxu1 %vm204_vm0, %v435_v17 }
   0xf   :  { %380 = vmatpush3.bf16.msra.mxu0 %v420_v7 }
  0x10   :  { %381 = vmatprep.subr.bf16.mxu0 %v421_v8 }
  0x13   :  { %382 = vmatpush3.bf16.msra.mxu0 %v422_v9 }
  0x14   :  { %383 = vmatprep.subr.bf16.mxu0 %v423_v11 }
  0x17   :  { %384 = vmatpush3.bf16.msra.mxu0 %v424_v12 }
  0x18   :  { %385 = vmatprep.subr.bf16.mxu0 %v425_v13 }
  0x1b   :  { %386 = vmatpush3.bf16.msra.mxu0 %v426_v18 }
  0x1c   :  { %387 = vmatprep.subr.bf16.mxu0 %v427_v19 }
  0x1f   :  { %388 = vmatpush3.bf16.msra.mxu0 %v429_v20 }
  0x22   :  { %244 = vmatmul.mubr.bf16.vlgmr.msra.gmra.mrb[0].mxu0 %v430_v21 }
  0x23   :  { %251 = vmatprep.mubr.bf16.mxu0 %v436_v22 }
  0x2a   :  { %252 = vmatmul.mubr.bf16.gmra.mrb[4].mxu0 %v438_v23 }
  0xe1   :  { %v411_v24 = vpop.f32.mrb[0].mxu1 }
  0xe2   :  { %v294_v25 = vpop.f32.mrb[1].mxu1 }
  0xe3   :  { %v412_v26 = vpop.f32.mrb[2].mxu1 }
  0xe4   :  { %v297_v27 = vpop.f32.mrb[3].mxu1 }
  0xf5   :  { %v389_v28 = vpop.f32.mrb[0].mxu0 }
  0xf6   :  { %v390_v29 = vpop.f32.mrb[1].mxu0 }
  0xf7   :  { %v391_v31 = vadd.f32 %v390_v29, %v389_v28  ;;  %v392_v32 = vpop.f32.mrb[2].mxu0 }
  0xf8   :  { %v393_v33 = vpop.f32.mrb[3].mxu0 }
  0xf9   :  { %v394_v34 = vadd.f32 %v393_v33, %v392_v32  ;;  %v246_v35 = vadd.f32 %v391_v31, %v338_v30 }
  0xfb   :  { %v295_v36 = vadd.f32 %v294_v25, %v246_v35  ;;  %v249_v37 = vadd.f32 %v394_v34, %v338_v30 }
  0xfd   :  { %v309_v38 = vmax.f32 %v295_v36, 0.0  ;;  %v298_v39 = vadd.f32 %v297_v27, %v249_v37  ;;  %v395_v40 = vpop.f32.mrb[4].mxu0 }
  0xfe   :  { %v396_v41 = vpop.f32.mrb[5].mxu0 }
  0xff   :  { %v369_v42 = vpack.c.bf16 %v309_v38, %v309_v38  ;;  %v310_v43 = vmax.f32 %v298_v39, 0.0  ;;  %v397_v44 = vadd.f32 %v396_v41, %v395_v40  ;;  %v398_v45 = vpop.f32.mrb[6].mxu0 }
 0x100   :  { %v399_v46 = vpop.f32.mrb[7].mxu0 }
 0x101   :  { %330 = vst.msk [vmem:[%s553_s3] sm:$0xf] %vm329_vm1, %v369_v42  ;;  %v370_v47 = vpack.c.bf16 %v310_v43, %v310_v43  ;;  %v254_v48 = vadd.f32 %v397_v44, %v338_v30  ;;  %v400_v49 = vadd.f32 %v399_v46, %v398_v45 }
 0x103   :  { %331 = vst.msk [vmem:[%s553_s3 + $0x4] sm:$0xf] %vm329_vm1, %v370_v47  ;;  %v303_v50 = vadd.f32 %v411_v24, %v254_v48  ;;  %v257_v51 = vadd.f32 %v400_v49, %v338_v30 }
 0x105   :  { %v311_v52 = vmax.f32 %v303_v50, 0.0  ;;  %v306_v53 = vadd.f32 %v412_v26, %v257_v51 }
 0x107   :  { %v371_v54 = vpack.c.bf16 %v311_v52, %v311_v52  ;;  %v312_v55 = vmax.f32 %v306_v53, 0.0 }
 0x109   :  { %332 = vst.msk [vmem:[%s553_s3 + $0x8] sm:$0xf] %vm329_vm1, %v371_v54  ;;  %v372_v56 = vpack.c.bf16 %v312_v55, %v312_v55 }
 0x10b   :  { %333 = vst.msk [vmem:[%s553_s3 + $0xc] sm:$0xf] %vm329_vm1, %v372_v56 }

// kernel: vqvae_forward.38
= control target key start
LH: loop header
LB: loop body
LE: loop exit
PB: predicated region body
PF: predicated region fallthrough
CT: control target
= control target key end

     0   :  { %vm394_vm0 = vcmask 125952   ;;  %s661_s1 = inlined_call_operand.vmem [shape: bf16[512,16], index: 1, kind: input, shape index: {}]   ;;  %s662_s0 = inlined_call_operand.vmem [shape: bf16[16,512], index: 0, kind: input, shape index: {}]   ;;  %s663_s2 = inlined_call_operand.vmem [shape: f32[1,16], index: 2, kind: input, shape index: {}]   ;;  %s664_s3 = inlined_call_operand.vmem [shape: bf16[16,16], index: 3, kind: output, shape index: {}]  }
   0x1   :  { %v486_v0 = vld [vmem:[%s661_s1 + $0x40] sm:$0xff]   ;;  %v490_v4 = vld [vmem:[%s661_s1 + $0x48] sm:$0xff]   ;;  %v494_v8 = vld [vmem:[%s661_s1 + $0x50] sm:$0xff]  }
   0x2   :  { %v487_v1 = vld [vmem:[%s661_s1 + $0xc0] sm:$0xff]   ;;  %442 = vmatprep.subr.bf16.mxu0 %v486_v0  ;;  %v491_v5 = vld [vmem:[%s661_s1 + $0xc8] sm:$0xff]   ;;  %v495_v9 = vld [vmem:[%s661_s1 + $0xd0] sm:$0xff]  }
   0x3   :  { %v488_v2 = vld [vmem:[%s661_s1] sm:$0xff]   ;;  %464 = vmatprep.subr.bf16.mxu1 %v487_v1  ;;  %v492_v6 = vld [vmem:[%s661_s1 + $0x8] sm:$0xff]   ;;  %v496_v10 = vld [vmem:[%s661_s1 + $0x10] sm:$0xff]  }
   0x4   :  { %v489_v3 = vld [vmem:[%s661_s1 + $0x80] sm:$0xff]   ;;  %443 = vmatpush3.bf16.msra.mxu0 %v488_v2  ;;  %v493_v7 = vld [vmem:[%s661_s1 + $0x88] sm:$0xff]   ;;  %v497_v11 = vld [vmem:[%s661_s1 + $0x90] sm:$0xff]  }
   0x5   :  { %465 = vmatpush3.bf16.msra.mxu1 %v489_v3  ;;  %444 = vmatprep.subr.bf16.mxu0 %v490_v4  ;;  %v498_v12 = vld [vmem:[%s661_s1 + $0x58] sm:$0xff]   ;;  %v502_v16 = vld [vmem:[%s661_s1 + $0x60] sm:$0xff]   ;;  %v506_v20 = vld [vmem:[%s661_s1 + $0x68] sm:$0xff]  }
   0x6   :  { %466 = vmatprep.subr.bf16.mxu1 %v491_v5  ;;  %v499_v13 = vld [vmem:[%s661_s1 + $0xd8] sm:$0xff]   ;;  %v503_v17 = vld [vmem:[%s661_s1 + $0xe0] sm:$0xff]   ;;  %v507_v21 = vld [vmem:[%s661_s1 + $0xe8] sm:$0xff]  }
   0x7   :  { %v500_v14 = vld [vmem:[%s661_s1 + $0x18] sm:$0xff]   ;;  %v504_v18 = vld [vmem:[%s661_s1 + $0x20] sm:$0xff]   ;;  %v508_v22 = vld [vmem:[%s661_s1 + $0x28] sm:$0xff]  }
   0x8   :  { %445 = vmatpush3.bf16.msra.mxu0 %v492_v6  ;;  %v501_v15 = vld [vmem:[%s661_s1 + $0x98] sm:$0xff]   ;;  %v505_v19 = vld [vmem:[%s661_s1 + $0xa0] sm:$0xff]   ;;  %v509_v23 = vld [vmem:[%s661_s1 + $0xa8] sm:$0xff]  }
   0x9   :  { %467 = vmatpush3.bf16.msra.mxu1 %v493_v7  ;;  %446 = vmatprep.subr.bf16.mxu0 %v494_v8  ;;  %v510_v24 = vld [vmem:[%s661_s1 + $0x70] sm:$0xff]   ;;  %v514_v28 = vld [vmem:[%s661_s1 + $0x78] sm:$0xff]   ;;  %v401_v38 = vld [vmem:[%s663_s2] ss:$0 sm:$0xff] }
   0xa   :  { %468 = vmatprep.subr.bf16.mxu1 %v495_v9  ;;  %v511_v25 = vld [vmem:[%s661_s1 + $0xf0] sm:$0xff]   ;;  %v515_v29 = vld [vmem:[%s661_s1 + $0xf8] sm:$0xff]  }
   0xb   :  { %v512_v26 = vld [vmem:[%s661_s1 + $0x30] sm:$0xff]   ;;  %v516_v30 = vld [vmem:[%s661_s1 + $0x38] sm:$0xff]  }
   0xc   :  { %447 = vmatpush3.bf16.msra.mxu0 %v496_v10  ;;  %v513_v27 = vld [vmem:[%s661_s1 + $0xb0] sm:$0xff]   ;;  %v517_v31 = vld [vmem:[%s661_s1 + $0xb8] sm:$0xff]  }
   0xd   :  { %469 = vmatpush3.bf16.msra.mxu1 %v497_v11  ;;  %448 = vmatprep.subr.bf16.mxu0 %v498_v12  ;;  %v518_v32 = vld [vmem:[%s662_s0] ss:$16 sps:$4 sm:$0xff]   ;;  %v520_v33 = vld [vmem:[%s662_s0 + $0x4] ss:$16 sps:$4 sm:$0xff]   ;;  %v521_v34 = vld [vmem:[%s662_s0 + $0x8] ss:$16 sps:$4 sm:$0xff]  }
   0xe   :  { %470 = vmatprep.subr.bf16.mxu1 %v499_v13  ;;  %v523_v35 = vld [vmem:[%s662_s0 + $0xc] ss:$16 sps:$4 sm:$0xff]   ;;  %334 = vmatprep.mubr.bf16.mxu0 %v520_v33 }
   0xf   :  { %375 = vmatprep.mubr.bf16.mxu1 %v523_v35 }
  0x10   :  { %449 = vmatpush3.bf16.msra.mxu0 %v500_v14 }
  0x11   :  { %471 = vmatpush3.bf16.msra.mxu1 %v501_v15  ;;  %450 = vmatprep.subr.bf16.mxu0 %v502_v16 }
  0x12   :  { %472 = vmatprep.subr.bf16.mxu1 %v503_v17 }
  0x14   :  { %451 = vmatpush3.bf16.msra.mxu0 %v504_v18 }
  0x15   :  { %473 = vmatpush3.bf16.msra.mxu1 %v505_v19  ;;  %452 = vmatprep.subr.bf16.mxu0 %v506_v20 }
  0x16   :  { %474 = vmatprep.subr.bf16.mxu1 %v507_v21 }
  0x18   :  { %453 = vmatpush3.bf16.msra.mxu0 %v508_v22 }
  0x19   :  { %475 = vmatpush3.bf16.msra.mxu1 %v509_v23  ;;  %454 = vmatprep.subr.bf16.mxu0 %v510_v24 }
  0x1a   :  { %476 = vmatprep.subr.bf16.mxu1 %v511_v25 }
  0x1c   :  { %455 = vmatpush3.bf16.msra.mxu0 %v512_v26 }
  0x1d   :  { %477 = vmatpush3.bf16.msra.mxu1 %v513_v27  ;;  %456 = vmatprep.subr.bf16.mxu0 %v514_v28 }
  0x1e   :  { %478 = vmatprep.subr.bf16.mxu1 %v515_v29 }
  0x20   :  { %457 = vmatpush3.bf16.msra.mxu0 %v516_v30 }
  0x21   :  { %479 = vmatpush3.bf16.msra.mxu1 %v517_v31 }
  0x23   :  { %335 = vmatmul.mubr.bf16.vlgmr.msra.gmra.mrb[0].mxu0 %v518_v32 }
  0x24   :  { %376 = vmatmul.mubr.bf16.vlgmr.msra.gmra.mrb[0].mxu1 %v521_v34 }
  0xf6   :  { %v458_v36 = vpop.f32.mrb[0].mxu0 }
  0xf7   :  { %v480_v37 = vpop.f32.mrb[0].mxu1  ;;  %v459_v39 = vpop.f32.mrb[1].mxu0 }
  0xf8   :  { %v460_v40 = vadd.f32 %v459_v39, %v458_v36  ;;  %v481_v41 = vpop.f32.mrb[1].mxu1  ;;  %v461_v42 = vpop.f32.mrb[2].mxu0 }
  0xf9   :  { %v482_v43 = vadd.f32 %v481_v41, %v480_v37  ;;  %v483_v44 = vpop.f32.mrb[2].mxu1  ;;  %v462_v45 = vpop.f32.mrb[3].mxu0 }
  0xfa   :  { %v337_v46 = vadd.f32 %v460_v40, %v401_v38  ;;  %v463_v47 = vadd.f32 %v462_v45, %v461_v42  ;;  %v484_v48 = vpop.f32.mrb[3].mxu1 }
  0xfb   :  { %v485_v49 = vadd.f32 %v484_v48, %v483_v44 }
  0xfc   :  { %v378_v50 = vadd.f32 %v482_v43, %v337_v46  ;;  %v340_v51 = vadd.f32 %v463_v47, %v401_v38 }
  0xfe   :  { %v384_v52 = vmax.f32 %v378_v50, 0.0  ;;  %v381_v53 = vadd.f32 %v485_v49, %v340_v51 }
 0x100   :  { %v440_v54 = vpack.c.bf16 %v384_v52, %v384_v52  ;;  %v385_v55 = vmax.f32 %v381_v53, 0.0 }
 0x102   :  { %395 = vst.msk [vmem:[%s664_s3] sm:$0xf] %vm394_vm0, %v440_v54  ;;  %v441_v56 = vpack.c.bf16 %v385_v55, %v385_v55 }
 0x104   :  { %396 = vst.msk [vmem:[%s664_s3 + $0x4] sm:$0xf] %vm394_vm0, %v441_v56 }

// kernel: vqvae_forward.39
= control target key start
LH: loop header
LB: loop body
LE: loop exit
PB: predicated region body
PF: predicated region fallthrough
CT: control target
= control target key end

     0   :  { %v197_v0 = vmov 0   ;;  %vm105_vm0 = vcmask 130048   ;;  %vm160_vm1 = vcmask 257024   ;;  %s260_s1 = inlined_call_operand.vmem [shape: bf16[144,32], index: 1, kind: input, shape index: {}]   ;;  %s261_s0 = inlined_call_operand.vmem [shape: bf16[16,144], index: 0, kind: input, shape index: {}]   ;;  %s262_s2 = inlined_call_operand.vmem [shape: f32[1,32], index: 2, kind: input, shape index: {}]   ;;  %s263_s3 = inlined_call_operand.vmem [shape: bf16[16,32], index: 3, kind: output, shape index: {}]  }
   0x1   :  { %109 = vmatprep.subr.bf16.mxu0 %v197_v0  ;;  %v185_v1 = vld [vmem:[%s260_s1] sm:$0xff]   ;;  %v186_v2 = vld [vmem:[%s260_s1 + $0x8] sm:$0xff]   ;;  %v187_v3 = vld [vmem:[%s260_s1 + $0x10] sm:$0xff]  }
   0x2   :  { %110 = vmatpush1.bf16.msra.mxu0 %v185_v1  ;;  %v188_v4 = vld [vmem:[%s260_s1 + $0x18] sm:$0xff]   ;;  %v196_v5 = vld [vmem:[%s261_s0 + $0x4] ss:$8 sps:$4 sm:$0xff]   ;;  %v191_v8 = vld [vmem:[%s260_s1 + $0x30] sm:$0xff]  }
   0x3   :  { %111 = vmatprep.subr.bf16.mxu0 %v197_v0  ;;  %179 = vmatprep.mubr.msk.bf16.mxu0 %vm105_vm0, %v196_v5  ;;  %v189_v6 = vld [vmem:[%s260_s1 + $0x20] sm:$0xff]   ;;  %v190_v7 = vld [vmem:[%s260_s1 + $0x28] sm:$0xff]   ;;  %v192_v9 = vld [vmem:[%s260_s1 + $0x38] sm:$0xff]  }
   0x4   :  { %v193_v10 = vld [vmem:[%s260_s1 + $0x40] sm:$0xff]  }
   0x5   :  { %v194_v11 = vld [vmem:[%s261_s0] ss:$8 sps:$4 sm:$0xff]  }
   0x6   :  { %112 = vmatpush1.bf16.msra.mxu0 %v186_v2  ;;  %v167_v12 = vld [vmem:[%s262_s2] ss:$0 sm:$0xff] }
   0x7   :  { %113 = vmatprep.subr.bf16.mxu0 %v197_v0 }
   0xa   :  { %114 = vmatpush1.bf16.msra.mxu0 %v187_v3 }
   0xb   :  { %115 = vmatprep.subr.bf16.mxu0 %v197_v0 }
   0xe   :  { %116 = vmatpush1.bf16.msra.mxu0 %v188_v4 }
   0xf   :  { %117 = vmatprep.subr.bf16.mxu0 %v197_v0 }
  0x12   :  { %118 = vmatpush1.bf16.msra.mxu0 %v189_v6 }
  0x13   :  { %119 = vmatprep.subr.bf16.mxu0 %v197_v0 }
  0x16   :  { %120 = vmatpush1.bf16.msra.mxu0 %v190_v7 }
  0x17   :  { %121 = vmatprep.subr.bf16.mxu0 %v197_v0 }
  0x1a   :  { %122 = vmatpush1.bf16.msra.mxu0 %v191_v8 }
  0x1b   :  { %123 = vmatprep.subr.bf16.mxu0 %v197_v0 }
  0x1e   :  { %124 = vmatpush1.bf16.msra.mxu0 %v192_v9 }
  0x1f   :  { %125 = vmatprep.subr.bf16.mxu0 %v197_v0 }
  0x22   :  { %126 = vmatpush1.bf16.msra.mxu0 %v193_v10 }
  0x25   :  { %142 = vmatmul.mubr.bf16.vlgmr.msra.gmra.mrb[0].mxu0 %v194_v11 }
  0xf8   :  { %v143_v13 = vpop.f32.mrb[0].mxu0 }
  0xf9   :  { %v144_v14 = vadd.f32 %v167_v12, %v143_v13  ;;  %v145_v15 = vpop.f32.mrb[1].mxu0 }
  0xfa   :  { %v146_v16 = vpop.f32.mrb[2].mxu0 }
  0xfb   :  { %v150_v17 = vmax.f32 %v144_v14, 0.0  ;;  %v147_v18 = vadd.f32 %v167_v12, %v146_v16  ;;  %v148_v19 = vpop.f32.mrb[3].mxu0 }
  0xfd   :  { %v182_v20 = vpack.c.bf16 %v150_v17, %v150_v17  ;;  %v151_v21 = vmax.f32 %v147_v18, 0.0 }
  0xff   :  { %161 = vst.msk [vmem:[%s263_s3] sm:$0xf] %vm160_vm1, %v182_v20  ;;  %v183_v22 = vpack.c.bf16 %v151_v21, %v151_v21 }
 0x101   :  { %162 = vst.msk [vmem:[%s263_s3 + $0x4] sm:$0xf] %vm160_vm1, %v183_v22 }

// kernel: vqvae_forward.41
= control target key start
LH: loop header
LB: loop body
LE: loop exit
PB: predicated region body
PF: predicated region fallthrough
CT: control target
= control target key end

     0   :  { %v132_v0 = vmov 0.0   ;;  %vm133_vm0 = vmmov 0   ;;  %vm40_vm1 = vcmask 130048   ;;  %vm101_vm2 = vcmask 257024   ;;  %s177_s1 = inlined_call_operand.vmem [shape: bf16[16,32], index: 1, kind: input, shape index: {}]   ;;  %s178_s0 = inlined_call_operand.vmem [shape: bf16[16,16], index: 0, kind: input, shape index: {}]   ;;  %s179_s3 = inlined_call_operand.vmem [shape: bf16[16,32], index: 3, kind: input, shape index: {}]   ;;  %s180_s2 = inlined_call_operand.vmem [shape: f32[1,32], index: 2, kind: input, shape index: {}]   ;;  %s181_s4 = inlined_call_operand.vmem [shape: bf16[16,32], index: 4, kind: output, shape index: {}]  }
   0x1   :  { %122 = vmatprep.subr.bf16.mxu0 %v132_v0  ;;  %v130_v1 = vld [vmem:[%s177_s1] sm:$0xff]   ;;  %124 = vmatprep.mubr.msk.bf16.mxu0 %vm133_vm0, %v132_v0 }
   0x2   :  { %v131_v2 = vld [vmem:[%s178_s0] sm:$0xff]   ;;  %123 = vmatpush3.bf16.msra.mxu0 %v130_v1 }
   0x3   :  { %v117_v3 = vld [vmem:[%s179_s3] sm:$0xff]  }
   0x4   :  { %v108_v4 = vld [vmem:[%s180_s2] ss:$0 sm:$0xff]  ;;  %v118_v5 = vunpack.c.l.bf16 %v117_v3  ;;  %v119_v9 = vunpack.c.h.bf16 %v117_v3 }
   0x5   :  { %125 = vmatmul.mubr.msk.bf16.vlgmr.msra.gmra.mrb[0].mxu0 %vm40_vm1, %v131_v2 }
  0xd8   :  { %v78_v6 = vpop.f32.mrb[0].mxu0 }
  0xd9   :  { %v79_v7 = vadd.f32 %v108_v4, %v78_v6  ;;  %v126_v8 = vpop.f32.mrb[1].mxu0 }
  0xda   :  { %v81_v10 = vpop.f32.mrb[2].mxu0 }
  0xdb   :  { %v89_v11 = vadd.f32 %v118_v5, %v79_v7  ;;  %v82_v12 = vadd.f32 %v108_v4, %v81_v10  ;;  %v127_v13 = vpop.f32.mrb[3].mxu0 }
  0xdd   :  { %v91_v14 = vmax.f32 %v89_v11, 0.0  ;;  %v90_v15 = vadd.f32 %v119_v9, %v82_v12 }
  0xdf   :  { %v114_v16 = vpack.c.bf16 %v91_v14, %v91_v14  ;;  %v92_v17 = vmax.f32 %v90_v15, 0.0 }
  0xe1   :  { %102 = vst.msk [vmem:[%s181_s4] sm:$0xf] %vm101_vm2, %v114_v16  ;;  %v115_v18 = vpack.c.bf16 %v92_v17, %v92_v17 }
  0xe3   :  { %103 = vst.msk [vmem:[%s181_s4 + $0x4] sm:$0xf] %vm101_vm2, %v115_v18 }

// kernel: vqvae_forward.40
= control target key start
LH: loop header
LB: loop body
LE: loop exit
PB: predicated region body
PF: predicated region fallthrough
CT: control target
= control target key end

     0   :  { %v372_v1 = vmov 0.0   ;;  %vm373_vm0 = vmmov 0   ;;  %vm185_vm1 = vcmask 261120   ;;  %vm281_vm2 = vcmask 125952   ;;  %s466_s1 = inlined_call_operand.vmem [shape: bf16[288,16], index: 1, kind: input, shape index: {}]   ;;  %s467_s0 = inlined_call_operand.vmem [shape: bf16[16,288], index: 0, kind: input, shape index: {}]   ;;  %s468_s2 = inlined_call_operand.vmem [shape: f32[1,16], index: 2, kind: input, shape index: {}]   ;;  %s469_s3 = inlined_call_operand.vmem [shape: bf16[16,16], index: 3, kind: output, shape index: {}]  }
   0x1   :  { %v350_v0 = vld [vmem:[%s466_s1 + $0x40] sm:$0xff]   ;;  %340 = vmatprep.subr.bf16.mxu1 %v372_v1  ;;  %344 = vmatprep.mubr.msk.bf16.mxu1 %vm373_vm0, %v372_v1  ;;  %v352_v3 = vld [vmem:[%s466_s1 + $0x48] sm:$0xff]   ;;  %v354_v5 = vld [vmem:[%s466_s1 + $0x50] sm:$0xff]  }
   0x2   :  { %v351_v2 = vld [vmem:[%s466_s1] sm:$0xff]   ;;  %315 = vmatprep.subr.bf16.mxu0 %v350_v0  ;;  %v353_v4 = vld [vmem:[%s466_s1 + $0x8] sm:$0xff]   ;;  %v355_v6 = vld [vmem:[%s466_s1 + $0x10] sm:$0xff]  }
   0x3   :  { %316 = vmatpush3.bf16.msra.mxu0 %v351_v2  ;;  %v356_v7 = vld [vmem:[%s466_s1 + $0x58] sm:$0xff]   ;;  %v358_v9 = vld [vmem:[%s466_s1 + $0x60] sm:$0xff]   ;;  %v360_v12 = vld [vmem:[%s466_s1 + $0x68] sm:$0xff]  }
   0x4   :  { %317 = vmatprep.subr.bf16.mxu0 %v352_v3  ;;  %v357_v8 = vld [vmem:[%s466_s1 + $0x18] sm:$0xff]   ;;  %v364_v10 = vld [vmem:[%s466_s1 + $0x80] sm:$0xff]   ;;  %v361_v13 = vld [vmem:[%s466_s1 + $0x28] sm:$0xff]  }
   0x5   :  { %v359_v11 = vld [vmem:[%s466_s1 + $0x20] sm:$0xff]   ;;  %341 = vmatpush3.bf16.msra.mxu1 %v364_v10  ;;  %v370_v15 = vld [vmem:[%s466_s1 + $0x88] sm:$0xff]   ;;  %v362_v16 = vld [vmem:[%s466_s1 + $0x70] sm:$0xff]  }
   0x6   :  { %342 = vmatprep.subr.bf16.mxu1 %v372_v1  ;;  %v369_v14 = vld [vmem:[%s467_s0 + $0x4] ss:$12 sps:$4 sm:$0xff]   ;;  %v371_v17 = vld [vmem:[%s467_s0 + $0x8] ss:$12 sps:$4 sm:$0xff]   ;;  %v365_v19 = vld [vmem:[%s466_s1 + $0x78] sm:$0xff]  }
   0x7   :  { %318 = vmatpush3.bf16.msra.mxu0 %v353_v4  ;;  %221 = vmatprep.mubr.bf16.mxu0 %v369_v14  ;;  %v363_v18 = vld [vmem:[%s466_s1 + $0x30] sm:$0xff]   ;;  %v366_v20 = vld [vmem:[%s466_s1 + $0x38] sm:$0xff]   ;;  %v367_v21 = vld [vmem:[%s467_s0] ss:$12 sps:$4 sm:$0xff]  }
   0x8   :  { %319 = vmatprep.subr.bf16.mxu0 %v354_v5  ;;  %v288_v28 = vld [vmem:[%s468_s2] ss:$0 sm:$0xff] }
   0x9   :  { %343 = vmatpush3.bf16.msra.mxu1 %v370_v15 }
   0xb   :  { %320 = vmatpush3.bf16.msra.mxu0 %v355_v6 }
   0xc   :  { %321 = vmatprep.subr.bf16.mxu0 %v356_v7  ;;  %345 = vmatmul.mubr.msk.bf16.vlgmr.msra.gmra.mrb[0].mxu1 %vm185_vm1, %v371_v17 }
   0xf   :  { %322 = vmatpush3.bf16.msra.mxu0 %v357_v8 }
  0x10   :  { %323 = vmatprep.subr.bf16.mxu0 %v358_v9 }
  0x13   :  { %324 = vmatpush3.bf16.msra.mxu0 %v359_v11 }
  0x14   :  { %325 = vmatprep.subr.bf16.mxu0 %v360_v12 }
  0x17   :  { %326 = vmatpush3.bf16.msra.mxu0 %v361_v13 }
  0x18   :  { %327 = vmatprep.subr.bf16.mxu0 %v362_v16 }
  0x1b   :  { %328 = vmatpush3.bf16.msra.mxu0 %v363_v18 }
  0x1c   :  { %329 = vmatprep.subr.bf16.mxu0 %v365_v19 }
  0x1f   :  { %330 = vmatpush3.bf16.msra.mxu0 %v366_v20 }
  0x22   :  { %222 = vmatmul.mubr.bf16.vlgmr.msra.gmra.mrb[0].mxu0 %v367_v21 }
  0xdf   :  { %v264_v22 = vpop.f32.mrb[0].mxu1 }
  0xe0   :  { %v346_v23 = vpop.f32.mrb[1].mxu1 }
  0xe1   :  { %v267_v24 = vpop.f32.mrb[2].mxu1 }
  0xe2   :  { %v347_v25 = vpop.f32.mrb[3].mxu1 }
  0xf5   :  { %v331_v26 = vpop.f32.mrb[0].mxu0 }
  0xf6   :  { %v332_v27 = vpop.f32.mrb[1].mxu0 }
  0xf7   :  { %v333_v29 = vadd.f32 %v332_v27, %v331_v26  ;;  %v334_v30 = vpop.f32.mrb[2].mxu0 }
  0xf8   :  { %v335_v31 = vpop.f32.mrb[3].mxu0 }
  0xf9   :  { %v224_v32 = vadd.f32 %v333_v29, %v288_v28  ;;  %v336_v33 = vadd.f32 %v335_v31, %v334_v30 }
  0xfb   :  { %v265_v34 = vadd.f32 %v264_v22, %v224_v32  ;;  %v227_v35 = vadd.f32 %v336_v33, %v288_v28 }
  0xfd   :  { %v271_v36 = vmax.f32 %v265_v34, 0.0  ;;  %v268_v37 = vadd.f32 %v267_v24, %v227_v35 }
  0xff   :  { %v313_v38 = vpack.c.bf16 %v271_v36, %v271_v36  ;;  %v272_v39 = vmax.f32 %v268_v37, 0.0 }
 0x101   :  { %282 = vst.msk [vmem:[%s469_s3] sm:$0xf] %vm281_vm2, %v313_v38  ;;  %v314_v40 = vpack.c.bf16 %v272_v39, %v272_v39 }
 0x103   :  { %283 = vst.msk [vmem:[%s469_s3 + $0x4] sm:$0xf] %vm281_vm2, %v314_v40 }

// kernel: vqvae_forward.44
= control target key start
LH: loop header
LB: loop body
LE: loop exit
PB: predicated region body
PF: predicated region fallthrough
CT: control target
= control target key end

     0   :  { %v118_v0 = vmov 0.0   ;;  %vm119_vm0 = vmmov 0   ;;  %vm45_vm1 = vcmask 261120   ;;  %vm90_vm2 = vcmask 130048   ;;  %s158_s1 = inlined_call_operand.vmem [shape: bf16[32,16], index: 1, kind: input, shape index: {}]   ;;  %s159_s0 = inlined_call_operand.vmem [shape: bf16[16,32], index: 0, kind: input, shape index: {}]   ;;  %s160_s2 = inlined_call_operand.vmem [shape: f32[1,16], index: 2, kind: input, shape index: {}]   ;;  %s161_s3 = inlined_call_operand.vmem [shape: f32[16,16], index: 3, kind: output, shape index: {}]  }
   0x1   :  { %105 = vmatprep.subr.bf16.mxu0 %v118_v0  ;;  %v115_v1 = vld [vmem:[%s158_s1] sm:$0xff]   ;;  %109 = vmatprep.mubr.msk.bf16.mxu0 %vm119_vm0, %v118_v0  ;;  %v116_v2 = vld [vmem:[%s158_s1 + $0x8] sm:$0xff]  }
   0x2   :  { %106 = vmatpush3.bf16.msra.mxu0 %v115_v1  ;;  %v117_v3 = vld [vmem:[%s159_s0] sm:$0xff]  }
   0x3   :  { %107 = vmatprep.subr.bf16.mxu0 %v118_v0  ;;  %v97_v4 = vld [vmem:[%s160_s2] ss:$0 sm:$0xff] }
   0x6   :  { %108 = vmatpush3.bf16.msra.mxu0 %v116_v2 }
   0x9   :  { %110 = vmatmul.mubr.msk.bf16.vlgmr.msra.gmra.mrb[0].mxu0 %vm45_vm1, %v117_v3 }
  0xdc   :  { %v83_v5 = vpop.f32.mrb[0].mxu0 }
  0xdd   :  { %v84_v6 = vadd.f32 %v97_v4, %v83_v5  ;;  %v111_v7 = vpop.f32.mrb[1].mxu0 }
  0xde   :  { %v86_v8 = vpop.f32.mrb[2].mxu0 }
  0xdf   :  { %91 = vst.msk [vmem:[%s161_s3] sm:$0xff] %vm90_vm2, %v84_v6  ;;  %v87_v9 = vadd.f32 %v97_v4, %v86_v8  ;;  %v112_v10 = vpop.f32.mrb[3].mxu0 }
  0xe1   :  { %92 = vst.msk [vmem:[%s161_s3 + $0x8] sm:$0xff] %vm90_vm2, %v87_v9 }

// kernel: vqvae_forward.45
= control target key start
LH: loop header
LB: loop body
LE: loop exit
PB: predicated region body
PF: predicated region fallthrough
CT: control target
= control target key end

     0   :  { %vm23_vm0 = vcmask 130048   ;;  %s574_s0 = inlined_call_operand.vmem [shape: f32[16,16], index: 0, kind: input, shape index: {}]   ;;  %s575_s1 = inlined_call_operand.vmem [shape: f32[32,16], index: 1, kind: input, shape index: {}]   ;;  %s576_s2 = inlined_call_operand.vmem [shape: bf16[16,16], index: 2, kind: output, shape index: {0}]   ;;  %s577_s3 = inlined_call_operand.hbm [shape: s32[16,1], index: 3, kind: output, shape index: {1}]   ;;  %s578_s4 = inlined_call_operand.vmem [shape: f32[16,1], index: 4, kind: output, shape index: {2}]  }
   0x1   :  { %v17_v0 = vld [vmem:[%s575_s1] sm:$0xff]  ;;  %v18_v1 = vld [vmem:[%s575_s1 + $0x8] sm:$0xff]  ;;  %v19_v2 = vld [vmem:[%s575_s1 + $0x10] sm:$0xff] }
   0x2   :  { %v30_v3 = vmul.f32 %v17_v0, %v17_v0  ;;  %v31_v4 = vmul.f32 %v18_v1, %v18_v1  ;;  %v409_v5 = vpack.c.bf16 %v18_v1, %v17_v0  ;;  %v32_v6 = vmul.f32 %v19_v2, %v19_v2  ;;  %vm497_vm1 = vmpackc.low %vm23_vm0, %vm23_vm0  ;;  %v20_v8 = vld [vmem:[%s575_s1 + $0x18] sm:$0xff]  ;;  %v507_v9 = vld [vmem:[%s574_s0] sm:$0xff] }
   0x3   :  { %v33_v10 = vmul.f32 %v20_v8, %v20_v8  ;;  %v415_v11 = vpack.c.bf16 %v20_v8, %v19_v2  ;;  %395 = vmatprep.mubr.msk.f32.mxu0 %vm23_vm0, %v507_v9 }
   0x4   :  { %10 = vsyncpa [#allocation3], 0  ;;  %v34_v12 = vsel %vm23_vm0, %v30_v3, 0.0  ;;  %v40_v13 = vsel %vm23_vm0, %v32_v6, 0.0  ;;  %411 = vmatprep.subr.msk.bf16.mxu0 %vm497_vm1, %v409_v5  ;;  %422 = vmatprep.subr.bf16.mxu1 %v409_v5  ;;  %v518_v14 = vld [vmem:[%s574_s0 + $0x8] sm:$0xff]  ;;  %v37_v15 = vsel %vm23_vm0, %v31_v4, 0.0  ;;  %v21_v17 = vmul.f32 %v507_v9, %v507_v9 }
   0x5   :  { %35 = vadd.xlane.f32.xlu0 %v34_v12  ;;  %41 = vadd.xlane.f32.xlu1 %v40_v13  ;;  %v43_v16 = vsel %vm23_vm0, %v33_v10, 0.0  ;;  %v22_v18 = vmul.f32 %v518_v14, %v518_v14  ;;  %v175_v27 = vlaneseq  ;;  %vm181_vm2 = vcmask 261120   ;;  %s458_s29 = smov [#allocation2]  }
   0x6   :  { %414 = vmatpush3.bf16.xpose.msk.msra.mxu0 %vm497_vm1, %v409_v5  ;;  %424 = vmatpush3.bf16.msra.mxu1 %v409_v5  ;;  %v24_v19 = vsel %vm23_vm0, %v21_v17, 0.0  ;;  %vm322_vm7 = vcmask 7168   ;;  %v457_v6 = vmov 0.0   ;;  %vm319_vm10 = vcmask 125952   ;;  %s344_s30 = sshll.u32 %s458_s29, 4  ;;  %s345_s30 = int_to_ptr.vmem [resolvable:$true] %s344_s30 }
   0x7   :  { %417 = vmatprep.subr.msk.bf16.mxu0 %vm497_vm1, %v415_v11  ;;  %426 = vmatprep.subr.bf16.mxu1 %v415_v11  ;;  %v27_v20 = vsel %vm23_vm0, %v22_v18, 0.0  ;;  %v176_v28 = vshrl.u32 %v175_v27, 7  ;;  %v189_v42 = vand.u32 127, %v175_v27  ;;  %s433_s5 = scalar_lea.vmem %s345_s30, 256  ;;  %p438_p1 = scmp.lt.s32.totalorder %s345_s30, %s345_s30 }
   0x8   :  { %p434_p0 = scmp.ne.s32.totalorder %s345_s30, %s433_s5  ;;  %p439_p2 = scmp.lt.s32.totalorder %s433_s5, %s433_s5 }
   0x9   :  { %38 = vadd.xlane.f32.xlu0 %v37_v15  ;;  %44 = vadd.xlane.f32.xlu1 %v43_v16  ;;  %v177_v32 = vsub.s32 0, %v176_v28 }
   0xa   :  { %428 = vmatpush3.bf16.msra.mxu1 %v415_v11  ;;  %p440_p3 = por %p439_p2, %p438_p1 }
   0xc   :  { %p441_p4 = pnand %p440_p3, %p434_p0 }
   0xd   :  { %25 = vadd.xlane.f32.xlu0 %v24_v19  ;;  %28 = vadd.xlane.f32.xlu1 %v27_v20 }
   0xe   :  { %420 = vmatpush3.bf16.xpose.msk.msra.mxu0 %vm497_vm1, %v415_v11 }
  0x15   :  { %396 = vmatmul.mubr.msk.f32.vlgmr.msra.gmra.mrb[0].mxu0 %vm23_vm0, %v518_v14 }
  0x92   :  { %v36_v21 = vpop.xlane.xlu0 %35  ;;  %v42_v23 = vpop.xlane.xlu1 %41 }
  0x93   :  { %143 = vxpose.xlu0.b32.start [1/4] (short) (narrow) %v36_v21, 8 }
  0x96   :  { %v39_v22 = vpop.xlane.xlu0 %38  ;;  %v45_v24 = vpop.xlane.xlu1 %44 }
  0x97   :  { %144 = vxpose.xlu0.b32.cont [2/4] (short) (narrow) %v39_v22, 8 }
  0x9a   :  { %v26_v29 = vpop.xlane.xlu0 %25  ;;  %v29_v33 = vpop.xlane.xlu1 %28 }
  0x9b   :  { %145 = vxpose.xlu0.b32.cont [3/4] (short) (narrow) %v42_v23, 8 }
  0x9f   :  { %146 = vxpose.xlu0.b32.end [4/4] (short) (narrow) %v45_v24, 8 }
  0xe8   :  { %v397_v25 = vpop.f32.mrb[0].mxu0 }
  0xe9   :  { %v130_v26 = vpop.f32.mrb[1].mxu0  ;;  %v140_v30 = vmul.f32 2.0, %v397_v25 }
  0xea   :  { %v139_v31 = vmul.f32 2.0, %v130_v26 }
  0xeb   :  { %v142_v36 = vsub.f32 %v29_v33, %v140_v30 }
  0xec   :  { %v141_v35 = vsub.f32 %v26_v29, %v139_v31 }
 0x113   :  { %v159_v34 = vpop.trf.xlu0 }
 0x114   :  { %v178_v37 = vrot.slane %v159_v34, %v177_v32 }
 0x116   :  { %v179_v38 = vadd.f32 %v178_v37, %v141_v35  ;;  %v180_v40 = vadd.f32 %v178_v37, %v142_v36 }
 0x118   :  { %v182_v39 = vsel %vm181_vm2, %v179_v38, inf  ;;  %v185_v41 = vsel %vm181_vm2, %v180_v40, inf }
 0x119   :  { %183 = vmin.xlane.f32.xlu1 %v182_v39 }
 0x11d   :  { %186 = vmin.xlane.f32.xlu1 %v185_v41 }
 0x1a6   :  { %v184_v43 = vpop.xlane.xlu1 %183 }
 0x1a7   :  { %vm190_vm3 = vcmp.le.f32.partialorder %v179_v38, %v184_v43 }
 0x1a8   :  { %v192_v44 = vsel %vm190_vm3, %v189_v42, 1073741824 }
 0x1a9   :  { %v194_v45 = vsel %vm181_vm2, %v192_v44, 2147483647 }
 0x1aa   :  { %v187_v46 = vpop.xlane.xlu1 %186  ;;  %v196_v47 = vshra.s32 %v194_v45, 16  ;;  %v195_v53 = vand.u32 65535, %v194_v45 }
 0x1ab   :  { %vm191_vm4 = vcmp.le.f32.partialorder %v180_v40, %v187_v46 }
 0x1ac   :  { %v193_v48 = vsel %vm191_vm4, %v189_v42, 1073741824  ;;  %v198_v49 = vcvt.s32.f32 %v196_v47  ;;  %v197_v55 = vcvt.s32.f32 %v195_v53 }
 0x1ad   :  { %v209_v50 = vsel %vm181_vm2, %v193_v48, 2147483647 }
 0x1ae   :  { %199 = vmin.xlane.f32.xlu1 %v198_v49  ;;  %v211_v51 = vshra.s32 %v209_v50, 16  ;;  %v210_v56 = vand.u32 65535, %v209_v50 }
 0x1b0   :  { %v213_v52 = vcvt.s32.f32 %v211_v51  ;;  %v212_v59 = vcvt.s32.f32 %v210_v56 }
 0x1b2   :  { %214 = vmin.xlane.f32.xlu1 %v213_v52 }
 0x23b   :  { %v200_v54 = vpop.xlane.xlu1 %199 }
 0x23c   :  { %vm201_vm5 = vcmp.eq.f32.partialorder %v198_v49, %v200_v54  ;;  %v206_v61 = vcvt.f32.s32 %v200_v54 }
 0x23d   :  { %v202_v57 = vsel %vm201_vm5, %v197_v55, inf }
 0x23e   :  { %203 = vmin.xlane.f32.xlu1 %v202_v57  ;;  %v207_v63 = vshll.u32 %v206_v61, 16 }
 0x23f   :  { %v215_v58 = vpop.xlane.xlu1 %214 }
 0x240   :  { %vm216_vm6 = vcmp.eq.f32.partialorder %v213_v52, %v215_v58  ;;  %v221_v0 = vcvt.f32.s32 %v215_v58 }
 0x241   :  { %v217_v60 = vsel %vm216_vm6, %v212_v59, inf }
 0x242   :  { %218 = vmin.xlane.f32.xlu1 %v217_v60  ;;  %v222_v4 = vshll.u32 %v221_v0, 16 }
 0x2cb   :  { %v204_v62 = vpop.xlane.xlu1 %203 }
 0x2cc   :  { %v205_v1 = vcvt.f32.s32 %v204_v62 }
 0x2ce   :  { %v208_v2 = vadd.s32 %v207_v63, %v205_v1 }
 0x2cf   :  { %v219_v3 = vpop.xlane.xlu1 %218 }
 0x2d0   :  { %323 = vst.msk [vmem:[#allocation2] sm:$0xff] %vm322_vm7, %v208_v2  ;;  %v220_v5 = vcvt.f32.s32 %v219_v3  ;;  %vm224_vm8 = vcmp.eq.s32.totalorder %v189_v42, %v208_v2 }
 0x2d1   :  { %v367_v7 = vsel %vm224_vm8, 1.0, %v457_v6 }
 0x2d2   :  { %v223_v8 = vadd.s32 %v222_v4, %v220_v5  ;;  %406 = vmatprep.mubr.msk.f32.mxu1 %vm181_vm2, %v367_v7 }
 0x2d4   :  { %324 = vst.msk [vmem:[#allocation2 + $0x8] sm:$0xff] %vm322_vm7, %v223_v8  ;;  %vm225_vm9 = vcmp.eq.s32.totalorder %v189_v42, %v223_v8 }
 0x2d5   :  { %v368_v10 = vsel %vm225_vm9, 1.0, %v457_v6 }
 0x2d6   :  { %407 = vmatmul.mubr.msk.f32.vlgmr.msra.gmra.mrb[0].mxu1 %vm181_vm2, %v368_v10 }
 0x3a9   :  { %v408_v11 = vpop.f32.mrb[0].mxu1 }
 0x3aa   :  { %v374_v12 = vpack.c.bf16 %v408_v11, %v408_v11  ;;  %v302_v13 = vpop.f32.mrb[1].mxu1  ;;  %v326_v15 = vsub.f32 %v408_v11, %v518_v14 }
 0x3ab   :  { %v373_v16 = vpack.c.bf16 %v302_v13, %v302_v13  ;;  %v325_v17 = vsub.f32 %v302_v13, %v507_v9 }
 0x3ac   :  { %321 = vst.msk [vmem:[%s576_s2 + $0x4] sm:$0xf] %vm319_vm10, %v374_v12  ;;  %v328_v19 = vmul.f32 %v326_v15, %v326_v15 }
 0x3ad   :  { %320 = vst.msk [vmem:[%s576_s2] sm:$0xf] %vm319_vm10, %v373_v16  ;;  %v327_v18 = vmul.f32 %v325_v17, %v325_v17 }
 0x3ae   :  { %v332_v21 = vsel %vm23_vm0, %v328_v19, 0.0 }
 0x3af   :  { %v329_v20 = vsel %vm23_vm0, %v327_v18, 0.0 }
 0x3b0   :  { %330 = vadd.xlane.f32.xlu1 %v329_v20 }
 0x3b4   :  { %333 = vadd.xlane.f32.xlu1 %v332_v21 }
 0x3b5   :  { %444 = shalt.err (!%p441_p4)
}
 0x3b6   :  { %s445_s7 = scalar_lea.hbm %s577_s3, 256 }
 0x3b7   :  { %p446_p5 = scmp.ne.s32.totalorder %s577_s3, %s445_s7  ;;  %p449_p6 = scmp.lt.u32.totalorder %s445_s7, %s577_s3 }
 0x3b9   :  { %p451_p7 = pnand %p449_p6, %p446_p5 }
 0x3bb   :  { %454 = shalt.err (!%p451_p7)
}
 0x3bc   :  { %s459_s12 = smov 128   ;;  %s460_s13 = smov 8  }
 0x3bd   :  { %350 = dma.vmem_to_hbm [thread:$0]  %s345_s30, 256, %s577_s3, [#allocation3], %s459_s12, %s459_s12, %s460_s13  }
 0x43d   :  { %v331_v9 = vpop.xlane.xlu1 %330 }
 0x43e   :  { %335 = vst.msk [vmem:[%s578_s4] sm:$0xff] %vm322_vm7, %v331_v9 }
 0x441   :  { %v334_v14 = vpop.xlane.xlu1 %333 }
 0x442   :  { %336 = vst.msk [vmem:[%s578_s4 + $0x8] sm:$0xff] %vm322_vm7, %v334_v14 }
 0x443   :  { %455 = dma.done.wait [#allocation3], 256  }
 0x444   :  { %456 = vsyncadd [#allocation3], 4294967040 }
 0x445   :  { %360 = vsyncpa [#allocation3], 1 }

// kernel: vqvae_forward.51
= control target key start
LH: loop header
LB: loop body
LE: loop exit
PB: predicated region body
PF: predicated region fallthrough
CT: control target
= control target key end

     0   :  { %v370_v1 = vmov 0.0   ;;  %vm371_vm0 = vmmov 0   ;;  %vm185_vm1 = vcmask 261120   ;;  %vm279_vm2 = vcmask 519168   ;;  %s464_s1 = inlined_call_operand.vmem [shape: bf16[288,64], index: 1, kind: input, shape index: {}]   ;;  %s465_s0 = inlined_call_operand.vmem [shape: bf16[16,288], index: 0, kind: input, shape index: {}]   ;;  %s466_s2 = inlined_call_operand.vmem [shape: f32[1,64], index: 2, kind: input, shape index: {}]   ;;  %s467_s3 = inlined_call_operand.vmem [shape: bf16[16,64], index: 3, kind: output, shape index: {}]  }
   0x1   :  { %v348_v0 = vld [vmem:[%s464_s1 + $0x40] sm:$0xff]   ;;  %338 = vmatprep.subr.bf16.mxu1 %v370_v1  ;;  %342 = vmatprep.mubr.msk.bf16.mxu1 %vm371_vm0, %v370_v1  ;;  %v350_v3 = vld [vmem:[%s464_s1 + $0x48] sm:$0xff]   ;;  %v352_v5 = vld [vmem:[%s464_s1 + $0x50] sm:$0xff]  }
   0x2   :  { %v349_v2 = vld [vmem:[%s464_s1] sm:$0xff]   ;;  %313 = vmatprep.subr.bf16.mxu0 %v348_v0  ;;  %v351_v4 = vld [vmem:[%s464_s1 + $0x8] sm:$0xff]   ;;  %v353_v6 = vld [vmem:[%s464_s1 + $0x10] sm:$0xff]  }
   0x3   :  { %314 = vmatpush3.bf16.msra.mxu0 %v349_v2  ;;  %v354_v7 = vld [vmem:[%s464_s1 + $0x58] sm:$0xff]   ;;  %v356_v9 = vld [vmem:[%s464_s1 + $0x60] sm:$0xff]   ;;  %v358_v12 = vld [vmem:[%s464_s1 + $0x68] sm:$0xff]  }
   0x4   :  { %315 = vmatprep.subr.bf16.mxu0 %v350_v3  ;;  %v355_v8 = vld [vmem:[%s464_s1 + $0x18] sm:$0xff]   ;;  %v362_v10 = vld [vmem:[%s464_s1 + $0x80] sm:$0xff]   ;;  %v359_v13 = vld [vmem:[%s464_s1 + $0x28] sm:$0xff]  }
   0x5   :  { %v357_v11 = vld [vmem:[%s464_s1 + $0x20] sm:$0xff]   ;;  %339 = vmatpush3.bf16.msra.mxu1 %v362_v10  ;;  %v368_v15 = vld [vmem:[%s464_s1 + $0x88] sm:$0xff]   ;;  %v360_v16 = vld [vmem:[%s464_s1 + $0x70] sm:$0xff]  }
   0x6   :  { %340 = vmatprep.subr.bf16.mxu1 %v370_v1  ;;  %v367_v14 = vld [vmem:[%s465_s0 + $0x4] ss:$12 sps:$4 sm:$0xff]   ;;  %v369_v17 = vld [vmem:[%s465_s0 + $0x8] ss:$12 sps:$4 sm:$0xff]   ;;  %v363_v19 = vld [vmem:[%s464_s1 + $0x78] sm:$0xff]  }
   0x7   :  { %316 = vmatpush3.bf16.msra.mxu0 %v351_v4  ;;  %221 = vmatprep.mubr.bf16.mxu0 %v367_v14  ;;  %v361_v18 = vld [vmem:[%s464_s1 + $0x30] sm:$0xff]   ;;  %v364_v20 = vld [vmem:[%s464_s1 + $0x38] sm:$0xff]   ;;  %v365_v21 = vld [vmem:[%s465_s0] ss:$12 sps:$4 sm:$0xff]  }
   0x8   :  { %317 = vmatprep.subr.bf16.mxu0 %v352_v5  ;;  %v286_v28 = vld [vmem:[%s466_s2] ss:$0 sm:$0xff] }
   0x9   :  { %341 = vmatpush3.bf16.msra.mxu1 %v368_v15 }
   0xb   :  { %318 = vmatpush3.bf16.msra.mxu0 %v353_v6 }
   0xc   :  { %319 = vmatprep.subr.bf16.mxu0 %v354_v7  ;;  %343 = vmatmul.mubr.msk.bf16.vlgmr.msra.gmra.mrb[0].mxu1 %vm185_vm1, %v369_v17 }
   0xf   :  { %320 = vmatpush3.bf16.msra.mxu0 %v355_v8 }
  0x10   :  { %321 = vmatprep.subr.bf16.mxu0 %v356_v9 }
  0x13   :  { %322 = vmatpush3.bf16.msra.mxu0 %v357_v11 }
  0x14   :  { %323 = vmatprep.subr.bf16.mxu0 %v358_v12 }
  0x17   :  { %324 = vmatpush3.bf16.msra.mxu0 %v359_v13 }
  0x18   :  { %325 = vmatprep.subr.bf16.mxu0 %v360_v16 }
  0x1b   :  { %326 = vmatpush3.bf16.msra.mxu0 %v361_v18 }
  0x1c   :  { %327 = vmatprep.subr.bf16.mxu0 %v363_v19 }
  0x1f   :  { %328 = vmatpush3.bf16.msra.mxu0 %v364_v20 }
  0x22   :  { %222 = vmatmul.mubr.bf16.vlgmr.msra.gmra.mrb[0].mxu0 %v365_v21 }
  0xdf   :  { %v264_v22 = vpop.f32.mrb[0].mxu1 }
  0xe0   :  { %v344_v23 = vpop.f32.mrb[1].mxu1 }
  0xe1   :  { %v267_v24 = vpop.f32.mrb[2].mxu1 }
  0xe2   :  { %v345_v25 = vpop.f32.mrb[3].mxu1 }
  0xf5   :  { %v329_v26 = vpop.f32.mrb[0].mxu0 }
  0xf6   :  { %v330_v27 = vpop.f32.mrb[1].mxu0 }
  0xf7   :  { %v331_v29 = vadd.f32 %v330_v27, %v329_v26  ;;  %v332_v30 = vpop.f32.mrb[2].mxu0 }
  0xf8   :  { %v333_v31 = vpop.f32.mrb[3].mxu0 }
  0xf9   :  { %v224_v32 = vadd.f32 %v331_v29, %v286_v28  ;;  %v334_v33 = vadd.f32 %v333_v31, %v332_v30 }
  0xfb   :  { %v265_v34 = vadd.f32 %v264_v22, %v224_v32  ;;  %v227_v35 = vadd.f32 %v334_v33, %v286_v28 }
  0xfd   :  { %v311_v36 = vpack.c.bf16 %v265_v34, %v265_v34  ;;  %v268_v37 = vadd.f32 %v267_v24, %v227_v35 }
  0xff   :  { %280 = vst.msk [vmem:[%s467_s3] sm:$0xf] %vm279_vm2, %v311_v36  ;;  %v312_v38 = vpack.c.bf16 %v268_v37, %v268_v37 }
 0x101   :  { %281 = vst.msk [vmem:[%s467_s3 + $0x4] sm:$0xf] %vm279_vm2, %v312_v38 }

// kernel: vqvae_forward.52
= control target key start
LH: loop header
LB: loop body
LE: loop exit
PB: predicated region body
PF: predicated region fallthrough
CT: control target
= control target key end

     0   :  { %vm129_vm0 = vcmask 130048   ;;  %vm57_vm1 = vcmask 261120   ;;  %s320_s3 = inlined_call_operand.vmem [shape: bf16[32,16], index: 3, kind: input, shape index: {}]   ;;  %s321_s2 = inlined_call_operand.vmem [shape: bf16[16,16], index: 2, kind: input, shape index: {}]   ;;  %s322_s0 = inlined_call_operand.vmem [shape: bf16[32,16], index: 0, kind: input, shape index: {}]   ;;  %s323_s1 = inlined_call_operand.vmem [shape: bf16[32,32], index: 1, kind: input, shape index: {}]   ;;  %s324_s4 = inlined_call_operand.vmem [shape: f32[1,16], index: 4, kind: input, shape index: {}]   ;;  %s325_s5 = inlined_call_operand.vmem [shape: f32[32,16], index: 5, kind: output, shape index: {}]  }
   0x1   :  { %v241_v0 = vld [vmem:[%s320_s3] sm:$0xff]   ;;  %v243_v2 = vld [vmem:[%s320_s3 + $0x8] sm:$0xff]  }
   0x2   :  { %v242_v1 = vld [vmem:[%s321_s2] sm:$0xff]   ;;  %223 = vmatprep.subr.bf16.mxu1 %v241_v0  ;;  %v245_v4 = vld [vmem:[%s322_s0 + $0x8] sm:$0xff]  }
   0x3   :  { %224 = vmatpush3.bf16.msra.mxu1 %v241_v0  ;;  %231 = vmatprep.subr.bf16.mxu0 %v242_v1  ;;  %v244_v3 = vld [vmem:[%s322_s0] sm:$0xff]   ;;  %v247_v6 = vld [vmem:[%s323_s1 + $0x8] sm:$0xff]  }
   0x4   :  { %232 = vmatpush3.bf16.msra.mxu0 %v242_v1  ;;  %225 = vmatprep.subr.bf16.mxu1 %v243_v2  ;;  %v246_v5 = vld [vmem:[%s323_s1] sm:$0xff]  }
   0x5   :  { %233 = vmatprep.mubr.msk.bf16.mxu0 %vm129_vm0, %v244_v3  ;;  %227 = vmatprep.mubr.msk.bf16.mxu1 %vm57_vm1, %v246_v5  ;;  %v215_v11 = vld [vmem:[%s324_s4] ss:$0 sm:$0xff] }
   0x7   :  { %226 = vmatpush3.bf16.msra.mxu1 %v243_v2  ;;  %234 = vmatmul.mubr.msk.bf16.vlgmr.msra.gmra.mrb[0].mxu0 %vm129_vm0, %v245_v4 }
   0xa   :  { %228 = vmatmul.mubr.msk.bf16.vlgmr.msra.gmra.mrb[0].mxu1 %vm57_vm1, %v247_v6 }
  0xda   :  { %v235_v7 = vpop.f32.mrb[0].mxu0 }
  0xdb   :  { %v170_v8 = vpop.f32.mrb[1].mxu0 }
  0xdc   :  { %v236_v9 = vpop.f32.mrb[2].mxu0 }
  0xdd   :  { %v229_v10 = vpop.f32.mrb[0].mxu1  ;;  %v173_v12 = vpop.f32.mrb[3].mxu0 }
  0xde   :  { %v179_v13 = vadd.f32 %v235_v7, %v229_v10  ;;  %v98_v14 = vpop.f32.mrb[1].mxu1 }
  0xdf   :  { %v171_v15 = vadd.f32 %v170_v8, %v98_v14  ;;  %v230_v16 = vpop.f32.mrb[2].mxu1 }
  0xe0   :  { %v194_v17 = vadd.f32 %v215_v11, %v179_v13  ;;  %v182_v18 = vadd.f32 %v236_v9, %v230_v16  ;;  %v101_v19 = vpop.f32.mrb[3].mxu1 }
  0xe1   :  { %v192_v20 = vadd.f32 %v215_v11, %v171_v15  ;;  %v174_v21 = vadd.f32 %v173_v12, %v101_v19 }
  0xe2   :  { %198 = vst.msk [vmem:[%s325_s5 + $0x10] sm:$0xff] %vm129_vm0, %v194_v17  ;;  %v195_v22 = vadd.f32 %v215_v11, %v182_v18 }
  0xe3   :  { %196 = vst.msk [vmem:[%s325_s5] sm:$0xff] %vm129_vm0, %v192_v20  ;;  %v193_v23 = vadd.f32 %v215_v11, %v174_v21 }
  0xe4   :  { %199 = vst.msk [vmem:[%s325_s5 + $0x18] sm:$0xff] %vm129_vm0, %v195_v22 }
  0xe5   :  { %197 = vst.msk [vmem:[%s325_s5 + $0x8] sm:$0xff] %vm129_vm0, %v193_v23 }

// kernel: vqvae_forward.53
= control target key start
LH: loop header
LB: loop body
LE: loop exit
PB: predicated region body
PF: predicated region fallthrough
CT: control target
= control target key end

     0   :  { %vm27_vm0 = vcmask 130048   ;;  %s772_s0 = inlined_call_operand.vmem [shape: f32[32,16], index: 0, kind: input, shape index: {}]   ;;  %s773_s1 = inlined_call_operand.vmem [shape: f32[32,16], index: 1, kind: input, shape index: {}]   ;;  %s774_s2 = inlined_call_operand.vmem [shape: bf16[32,16], index: 2, kind: output, shape index: {0}]   ;;  %s775_s3 = inlined_call_operand.hbm [shape: s32[32,1], index: 3, kind: output, shape index: {1}]   ;;  %s776_s4 = inlined_call_operand.vmem [shape: f32[32,1], index: 4, kind: output, shape index: {2}]  }
   0x1   :  { %v19_v0 = vld [vmem:[%s773_s1] sm:$0xff]  ;;  %v20_v1 = vld [vmem:[%s773_s1 + $0x8] sm:$0xff]  ;;  %v21_v2 = vld [vmem:[%s773_s1 + $0x10] sm:$0xff] }
   0x2   :  { %v40_v3 = vmul.f32 %v19_v0, %v19_v0  ;;  %v547_v4 = vpack.c.bf16 %v20_v1, %v19_v0  ;;  %vm635_vm1 = vmpackc.low %vm27_vm0, %vm27_vm0  ;;  %v41_v6 = vmul.f32 %v20_v1, %v20_v1  ;;  %v42_v7 = vmul.f32 %v21_v2, %v21_v2  ;;  %v22_v8 = vld [vmem:[%s773_s1 + $0x18] sm:$0xff]  ;;  %v645_v9 = vld [vmem:[%s772_s0] sm:$0xff] }
   0x3   :  { %v43_v10 = vmul.f32 %v22_v8, %v22_v8  ;;  %v553_v11 = vpack.c.bf16 %v22_v8, %v21_v2  ;;  %527 = vmatprep.mubr.msk.f32.mxu0 %vm27_vm0, %v645_v9 }
   0x4   :  { %v44_v12 = vsel %vm27_vm0, %v40_v3, 0.0  ;;  %549 = vmatprep.subr.msk.bf16.mxu0 %vm635_vm1, %v547_v4  ;;  %v50_v13 = vsel %vm27_vm0, %v42_v7, 0.0  ;;  %560 = vmatprep.subr.bf16.mxu1 %v547_v4 }
   0x5   :  { %10 = vsyncpa [#allocation3], 0  ;;  %45 = vadd.xlane.f32.xlu0 %v44_v12  ;;  %552 = vmatpush3.bf16.xpose.msk.msra.mxu0 %vm635_vm1, %v547_v4  ;;  %v47_v14 = vsel %vm27_vm0, %v41_v6, 0.0  ;;  %v661_v15 = vld [vmem:[%s772_s0 + $0x8] sm:$0xff]  ;;  %v23_v16 = vmul.f32 %v645_v9, %v645_v9  ;;  %v53_v17 = vsel %vm27_vm0, %v43_v10, 0.0  ;;  %v671_v19 = vld [vmem:[%s772_s0 + $0x10] sm:$0xff]  ;;  %v205_v35 = vlaneseq }
   0x6   :  { %51 = vadd.xlane.f32.xlu1 %v50_v13  ;;  %555 = vmatprep.subr.msk.bf16.mxu0 %vm635_vm1, %v553_v11  ;;  %v24_v18 = vmul.f32 %v661_v15, %v661_v15  ;;  %v676_v20 = vld [vmem:[%s772_s0 + $0x18] sm:$0xff]  ;;  %v25_v22 = vmul.f32 %v671_v19, %v671_v19  ;;  %vm213_vm2 = vcmask 261120   ;;  %vm426_vm11 = vcmask 7168   ;;  %s596_s11 = smov [#allocation2]  }
   0x7   :  { %562 = vmatpush3.bf16.msra.mxu1 %v547_v4  ;;  %v28_v21 = vsel %vm27_vm0, %v23_v16, 0.0  ;;  %v26_v24 = vmul.f32 %v676_v20, %v676_v20  ;;  %v206_v37 = vshrl.u32 %v205_v35, 7  ;;  %v698_v60 = vand.u32 127, %v205_v35  ;;  %s462_s12 = sshll.u32 %s596_s11, 4  ;;  %s463_s12 = int_to_ptr.vmem [resolvable:$true] %s462_s12 }
   0x8   :  { %564 = vmatprep.subr.bf16.mxu1 %v553_v11  ;;  %v31_v23 = vsel %vm27_vm0, %v24_v18, 0.0  ;;  %v34_v25 = vsel %vm27_vm0, %v25_v22, 0.0  ;;  %s571_s13 = scalar_lea.vmem %s463_s12, 512  ;;  %p576_p1 = scmp.lt.s32.totalorder %s463_s12, %s463_s12 }
   0x9   :  { %48 = vadd.xlane.f32.xlu0 %v47_v14  ;;  %v37_v26 = vsel %vm27_vm0, %v26_v24, 0.0  ;;  %v207_v40 = vsub.s32 0, %v206_v37  ;;  %p572_p0 = scmp.ne.s32.totalorder %s463_s12, %s571_s13  ;;  %p577_p2 = scmp.lt.s32.totalorder %s571_s13, %s571_s13 }
   0xa   :  { %54 = vadd.xlane.f32.xlu1 %v53_v17 }
   0xb   :  { %566 = vmatpush3.bf16.msra.mxu1 %v553_v11  ;;  %p578_p3 = por %p577_p2, %p576_p1 }
   0xd   :  { %558 = vmatpush3.bf16.xpose.msk.msra.mxu0 %vm635_vm1, %v553_v11  ;;  %29 = vadd.xlane.f32.xlu0 %v28_v21  ;;  %vm421_vm1 = vcmask 125952   ;;  %p579_p4 = pnand %p578_p3, %p572_p0 }
   0xe   :  { %32 = vadd.xlane.f32.xlu1 %v31_v23 }
  0x11   :  { %35 = vadd.xlane.f32.xlu0 %v34_v25 }
  0x12   :  { %38 = vadd.xlane.f32.xlu1 %v37_v26 }
  0x14   :  { %528 = vmatmul.mubr.msk.f32.vlgmr.msra.gmra.mrb[0].mxu0 %vm27_vm0, %v661_v15 }
  0x15   :  { %530 = vmatprep.mubr.msk.f32.mxu0 %vm27_vm0, %v671_v19 }
  0x18   :  { %531 = vmatmul.mubr.msk.f32.gmra.mrb[2].mxu0 %vm27_vm0, %v676_v20 }
  0x92   :  { %v46_v27 = vpop.xlane.xlu0 %45 }
  0x93   :  { %173 = vxpose.xlu0.b32.start [1/4] (short) (narrow) %v46_v27, 8  ;;  %v52_v29 = vpop.xlane.xlu1 %51 }
  0x96   :  { %v49_v28 = vpop.xlane.xlu0 %48 }
  0x97   :  { %174 = vxpose.xlu0.b32.cont [2/4] (short) (narrow) %v49_v28, 8  ;;  %v55_v30 = vpop.xlane.xlu1 %54 }
  0x9a   :  { %v30_v36 = vpop.xlane.xlu0 %29 }
  0x9b   :  { %175 = vxpose.xlu0.b32.cont [3/4] (short) (narrow) %v52_v29, 8  ;;  %v33_v41 = vpop.xlane.xlu1 %32 }
  0x9e   :  { %v36_v39 = vpop.xlane.xlu0 %35 }
  0x9f   :  { %176 = vxpose.xlu0.b32.end [4/4] (short) (narrow) %v55_v30, 8  ;;  %v39_v52 = vpop.xlane.xlu1 %38 }
  0xe7   :  { %v529_v31 = vpop.f32.mrb[0].mxu0 }
  0xe8   :  { %v146_v32 = vpop.f32.mrb[1].mxu0  ;;  %v166_v38 = vmul.f32 2.0, %v529_v31 }
  0xe9   :  { %v165_v42 = vmul.f32 2.0, %v146_v32 }
  0xea   :  { %v170_v43 = vsub.f32 %v33_v41, %v166_v38 }
  0xeb   :  { %v532_v33 = vpop.f32.mrb[2].mxu0  ;;  %v169_v46 = vsub.f32 %v30_v36, %v165_v42 }
  0xec   :  { %v156_v34 = vpop.f32.mrb[3].mxu0  ;;  %v168_v49 = vmul.f32 2.0, %v532_v33 }
  0xed   :  { %v167_v47 = vmul.f32 2.0, %v156_v34 }
  0xee   :  { %v172_v54 = vsub.f32 %v39_v52, %v168_v49  ;;  %v595_v52 = vmov 0.0  }
  0xef   :  { %v171_v53 = vsub.f32 %v36_v39, %v167_v47 }
 0x113   :  { %v189_v44 = vpop.trf.xlu0 }
 0x114   :  { %v208_v45 = vrot.slane %v189_v44, %v207_v40 }
 0x116   :  { %v210_v48 = vadd.f32 %v208_v45, %v170_v43  ;;  %v209_v51 = vadd.f32 %v208_v45, %v169_v46  ;;  %v211_v56 = vadd.f32 %v208_v45, %v171_v53  ;;  %v212_v58 = vadd.f32 %v208_v45, %v172_v54 }
 0x118   :  { %v217_v50 = vsel %vm213_vm2, %v210_v48, inf  ;;  %v214_v55 = vsel %vm213_vm2, %v209_v51, inf  ;;  %v220_v57 = vsel %vm213_vm2, %v211_v56, inf  ;;  %v223_v59 = vsel %vm213_vm2, %v212_v58, inf }
 0x119   :  { %218 = vmin.xlane.f32.xlu1 %v217_v50 }
 0x11d   :  { %215 = vmin.xlane.f32.xlu1 %v214_v55 }
 0x121   :  { %221 = vmin.xlane.f32.xlu1 %v220_v57 }
 0x125   :  { %224 = vmin.xlane.f32.xlu1 %v223_v59 }
 0x1a6   :  { %v219_v61 = vpop.xlane.xlu1 %218 }
 0x1a7   :  { %vm229_vm3 = vcmp.le.f32.partialorder %v210_v48, %v219_v61 }
 0x1a8   :  { %v233_v62 = vsel %vm229_vm3, %v698_v60, 1073741824 }
 0x1a9   :  { %v251_v63 = vsel %vm213_vm2, %v233_v62, 2147483647 }
 0x1aa   :  { %v216_v0 = vpop.xlane.xlu1 %215  ;;  %v253_v1 = vshra.s32 %v251_v63, 16  ;;  %v252_v21 = vand.u32 65535, %v251_v63 }
 0x1ab   :  { %vm228_vm4 = vcmp.le.f32.partialorder %v209_v51, %v216_v0 }
 0x1ac   :  { %v232_v2 = vsel %vm228_vm4, %v698_v60, 1073741824  ;;  %v255_v3 = vcvt.s32.f32 %v253_v1  ;;  %v254_v23 = vcvt.s32.f32 %v252_v21 }
 0x1ad   :  { %v236_v4 = vsel %vm213_vm2, %v232_v2, 2147483647 }
 0x1ae   :  { %256 = vmin.xlane.f32.xlu1 %v255_v3  ;;  %v222_v5 = vpop.xlane.xlu1 %221  ;;  %v238_v6 = vshra.s32 %v236_v4, 16  ;;  %v237_v24 = vand.u32 65535, %v236_v4 }
 0x1af   :  { %vm230_vm5 = vcmp.le.f32.partialorder %v211_v56, %v222_v5 }
 0x1b0   :  { %v234_v7 = vsel %vm230_vm5, %v698_v60, 1073741824  ;;  %v240_v8 = vcvt.s32.f32 %v238_v6  ;;  %v239_v27 = vcvt.s32.f32 %v237_v24 }
 0x1b1   :  { %v266_v10 = vsel %vm213_vm2, %v234_v7, 2147483647 }
 0x1b2   :  { %241 = vmin.xlane.f32.xlu1 %v240_v8  ;;  %v225_v11 = vpop.xlane.xlu1 %224  ;;  %v268_v12 = vshra.s32 %v266_v10, 16  ;;  %v267_v28 = vand.u32 65535, %v266_v10 }
 0x1b3   :  { %vm231_vm6 = vcmp.le.f32.partialorder %v212_v58, %v225_v11 }
 0x1b4   :  { %v235_v13 = vsel %vm231_vm6, %v698_v60, 1073741824  ;;  %v270_v14 = vcvt.s32.f32 %v268_v12  ;;  %v269_v31 = vcvt.s32.f32 %v267_v28 }
 0x1b5   :  { %v281_v16 = vsel %vm213_vm2, %v235_v13, 2147483647 }
 0x1b6   :  { %271 = vmin.xlane.f32.xlu1 %v270_v14  ;;  %v283_v17 = vshra.s32 %v281_v16, 16  ;;  %v282_v32 = vand.u32 65535, %v281_v16 }
 0x1b8   :  { %v285_v18 = vcvt.s32.f32 %v283_v17  ;;  %v284_v35 = vcvt.s32.f32 %v282_v32 }
 0x1ba   :  { %286 = vmin.xlane.f32.xlu1 %v285_v18 }
 0x23b   :  { %v257_v22 = vpop.xlane.xlu1 %256 }
 0x23c   :  { %vm258_vm7 = vcmp.eq.f32.partialorder %v255_v3, %v257_v22  ;;  %v263_v37 = vcvt.f32.s32 %v257_v22 }
 0x23d   :  { %v259_v25 = vsel %vm258_vm7, %v254_v23, inf }
 0x23e   :  { %260 = vmin.xlane.f32.xlu1 %v259_v25  ;;  %v264_v39 = vshll.u32 %v263_v37, 16 }
 0x23f   :  { %v242_v26 = vpop.xlane.xlu1 %241 }
 0x240   :  { %vm243_vm8 = vcmp.eq.f32.partialorder %v240_v8, %v242_v26  ;;  %v248_v40 = vcvt.f32.s32 %v242_v26 }
 0x241   :  { %v244_v29 = vsel %vm243_vm8, %v239_v27, inf }
 0x242   :  { %245 = vmin.xlane.f32.xlu1 %v244_v29  ;;  %v249_v44 = vshll.u32 %v248_v40, 16 }
 0x243   :  { %v272_v30 = vpop.xlane.xlu1 %271 }
 0x244   :  { %vm273_vm9 = vcmp.eq.f32.partialorder %v270_v14, %v272_v30  ;;  %v278_v45 = vcvt.f32.s32 %v272_v30 }
 0x245   :  { %v274_v33 = vsel %vm273_vm9, %v269_v31, inf }
 0x246   :  { %275 = vmin.xlane.f32.xlu1 %v274_v33  ;;  %v279_v49 = vshll.u32 %v278_v45, 16 }
 0x247   :  { %v287_v34 = vpop.xlane.xlu1 %286 }
 0x248   :  { %vm288_vm10 = vcmp.eq.f32.partialorder %v285_v18, %v287_v34  ;;  %v293_v50 = vcvt.f32.s32 %v287_v34 }
 0x249   :  { %v289_v36 = vsel %vm288_vm10, %v284_v35, inf }
 0x24a   :  { %290 = vmin.xlane.f32.xlu1 %v289_v36  ;;  %v294_v57 = vshll.u32 %v293_v50, 16 }
 0x2cb   :  { %v261_v38 = vpop.xlane.xlu1 %260 }
 0x2cc   :  { %v262_v41 = vcvt.f32.s32 %v261_v38 }
 0x2ce   :  { %v265_v42 = vadd.s32 %v264_v39, %v262_v41 }
 0x2cf   :  { %v246_v43 = vpop.xlane.xlu1 %245 }
 0x2d0   :  { %428 = vst.msk [vmem:[#allocation2 + $0x8] sm:$0xff] %vm426_vm11, %v265_v42  ;;  %v247_v46 = vcvt.f32.s32 %v246_v43  ;;  %vm297_vm12 = vcmp.eq.s32.totalorder %v698_v60, %v265_v42 }
 0x2d1   :  { %v488_v55 = vsel %vm297_vm12, 1.0, %v595_v52 }
 0x2d2   :  { %v250_v47 = vadd.s32 %v249_v44, %v247_v46 }
 0x2d3   :  { %v276_v48 = vpop.xlane.xlu1 %275 }
 0x2d4   :  { %427 = vst.msk [vmem:[#allocation2] sm:$0xff] %vm426_vm11, %v250_v47  ;;  %v277_v51 = vcvt.f32.s32 %v276_v48  ;;  %vm296_vm13 = vcmp.eq.s32.totalorder %v698_v60, %v250_v47 }
 0x2d5   :  { %v487_v53 = vsel %vm296_vm13, 1.0, %v595_v52 }
 0x2d6   :  { %v280_v54 = vadd.s32 %v279_v49, %v277_v51  ;;  %541 = vmatprep.mubr.msk.f32.mxu1 %vm213_vm2, %v487_v53 }
 0x2d7   :  { %542 = vmatmul.mubr.msk.f32.vlgmr.msra.gmra.mrb[0].mxu1 %vm213_vm2, %v488_v55  ;;  %v291_v56 = vpop.xlane.xlu1 %290 }
 0x2d8   :  { %429 = vst.msk [vmem:[#allocation2 + $0x10] sm:$0xff] %vm426_vm11, %v280_v54  ;;  %v292_v58 = vcvt.f32.s32 %v291_v56  ;;  %vm298_vm14 = vcmp.eq.s32.totalorder %v698_v60, %v280_v54 }
 0x2d9   :  { %v489_v59 = vsel %vm298_vm14, 1.0, %v595_v52 }
 0x2da   :  { %v295_v61 = vadd.s32 %v294_v57, %v292_v58  ;;  %544 = vmatprep.mubr.msk.f32.mxu1 %vm213_vm2, %v489_v59 }
 0x2dc   :  { %430 = vst.msk [vmem:[#allocation2 + $0x18] sm:$0xff] %vm426_vm11, %v295_v61  ;;  %vm299_vm15 = vcmp.eq.s32.totalorder %v698_v60, %v295_v61 }
 0x2dd   :  { %v490_v62 = vsel %vm299_vm15, 1.0, %v595_v52 }
 0x2de   :  { %545 = vmatmul.mubr.msk.f32.gmra.mrb[2].mxu1 %vm213_vm2, %v490_v62 }
 0x3aa   :  { %v543_v63 = vpop.f32.mrb[0].mxu1 }
 0x3ab   :  { %v500_v0 = vpack.c.bf16 %v543_v63, %v543_v63  ;;  %v432_v1 = vsub.f32 %v543_v63, %v661_v15  ;;  %v386_v2 = vpop.f32.mrb[1].mxu1 }
 0x3ac   :  { %v499_v3 = vpack.c.bf16 %v386_v2, %v386_v2  ;;  %v431_v4 = vsub.f32 %v386_v2, %v645_v9 }
 0x3ad   :  { %423 = vst.msk [vmem:[%s774_s2 + $0x4] sm:$0xf] %vm421_vm1, %v500_v0  ;;  %v436_v5 = vmul.f32 %v432_v1, %v432_v1 }
 0x3ae   :  { %422 = vst.msk [vmem:[%s774_s2] sm:$0xf] %vm421_vm1, %v499_v3  ;;  %v435_v60 = vmul.f32 %v431_v4, %v431_v4 }
 0x3af   :  { %v442_v6 = vsel %vm27_vm0, %v436_v5, 0.0 }
 0x3b0   :  { %443 = vadd.xlane.f32.xlu1 %v442_v6  ;;  %v439_v12 = vsel %vm27_vm0, %v435_v60, 0.0 }
 0x3b1   :  { %v546_v15 = vpop.f32.mrb[2].mxu1 }
 0x3b2   :  { %v502_v7 = vpack.c.bf16 %v546_v15, %v546_v15  ;;  %v434_v8 = vsub.f32 %v546_v15, %v676_v20  ;;  %v396_v9 = vpop.f32.mrb[3].mxu1 }
 0x3b3   :  { %v501_v10 = vpack.c.bf16 %v396_v9, %v396_v9  ;;  %v433_v11 = vsub.f32 %v396_v9, %v671_v19 }
 0x3b4   :  { %425 = vst.msk [vmem:[%s774_s2 + $0xc] sm:$0xf] %vm421_vm1, %v502_v7  ;;  %v438_v13 = vmul.f32 %v434_v8, %v434_v8  ;;  %440 = vadd.xlane.f32.xlu1 %v439_v12 }
 0x3b5   :  { %424 = vst.msk [vmem:[%s774_s2 + $0x8] sm:$0xf] %vm421_vm1, %v501_v10  ;;  %v437_v14 = vmul.f32 %v433_v11, %v433_v11 }
 0x3b6   :  { %v448_v20 = vsel %vm27_vm0, %v438_v13, 0.0 }
 0x3b7   :  { %449 = vadd.xlane.f32.xlu0 %v448_v20  ;;  %v445_v19 = vsel %vm27_vm0, %v437_v14, 0.0 }
 0x3b8   :  { %446 = vadd.xlane.f32.xlu1 %v445_v19 }
 0x3b9   :  { %582 = shalt.err (!%p579_p4)
}
 0x3ba   :  { %s583_s2 = scalar_lea.hbm %s775_s3, 512 }
 0x3bb   :  { %p584_p5 = scmp.ne.s32.totalorder %s775_s3, %s583_s2  ;;  %p587_p6 = scmp.lt.u32.totalorder %s583_s2, %s775_s3 }
 0x3bd   :  { %p589_p7 = pnand %p587_p6, %p584_p5 }
 0x3bf   :  { %592 = shalt.err (!%p589_p7)
}
 0x3c0   :  { %s597_s20 = smov 128   ;;  %s598_s21 = smov 8  }
 0x3c1   :  { %468 = dma.vmem_to_hbm [thread:$0]  %s463_s12, 512, %s775_s3, [#allocation3], %s597_s20, %s597_s20, %s598_s21  }
 0x43d   :  { %v444_v16 = vpop.xlane.xlu1 %443 }
 0x43e   :  { %452 = vst.msk [vmem:[%s776_s4 + $0x8] sm:$0xff] %vm426_vm11, %v444_v16 }
 0x441   :  { %v441_v17 = vpop.xlane.xlu1 %440 }
 0x442   :  { %451 = vst.msk [vmem:[%s776_s4] sm:$0xff] %vm426_vm11, %v441_v17 }
 0x444   :  { %v450_v18 = vpop.xlane.xlu0 %449 }
 0x445   :  { %454 = vst.msk [vmem:[%s776_s4 + $0x18] sm:$0xff] %vm426_vm11, %v450_v18  ;;  %v447_v21 = vpop.xlane.xlu1 %446 }
 0x446   :  { %453 = vst.msk [vmem:[%s776_s4 + $0x10] sm:$0xff] %vm426_vm11, %v447_v21 }
 0x447   :  { %593 = dma.done.wait [#allocation3], 512  }
 0x448   :  { %594 = vsyncadd [#allocation3], 4294966784 }
 0x449   :  { %478 = vsyncpa [#allocation3], 1 }

// kernel: vqvae_forward.54
= control target key start
LH: loop header
LB: loop body
LE: loop exit
PB: predicated region body
PF: predicated region fallthrough
CT: control target
= control target key end

     0   :  { %v195_v0 = vmov 0   ;;  %vm105_vm0 = vcmask 130048   ;;  %vm158_vm1 = vcmask 519168   ;;  %s258_s1 = inlined_call_operand.vmem [shape: bf16[144,64], index: 1, kind: input, shape index: {}]   ;;  %s259_s0 = inlined_call_operand.vmem [shape: bf16[16,144], index: 0, kind: input, shape index: {}]   ;;  %s260_s2 = inlined_call_operand.vmem [shape: f32[1,64], index: 2, kind: input, shape index: {}]   ;;  %s261_s3 = inlined_call_operand.vmem [shape: bf16[16,64], index: 3, kind: output, shape index: {}]  }
   0x1   :  { %109 = vmatprep.subr.bf16.mxu0 %v195_v0  ;;  %v183_v1 = vld [vmem:[%s258_s1] sm:$0xff]   ;;  %v184_v2 = vld [vmem:[%s258_s1 + $0x8] sm:$0xff]   ;;  %v185_v3 = vld [vmem:[%s258_s1 + $0x10] sm:$0xff]  }
   0x2   :  { %110 = vmatpush1.bf16.msra.mxu0 %v183_v1  ;;  %v186_v4 = vld [vmem:[%s258_s1 + $0x18] sm:$0xff]   ;;  %v194_v5 = vld [vmem:[%s259_s0 + $0x4] ss:$8 sps:$4 sm:$0xff]   ;;  %v189_v8 = vld [vmem:[%s258_s1 + $0x30] sm:$0xff]  }
   0x3   :  { %111 = vmatprep.subr.bf16.mxu0 %v195_v0  ;;  %177 = vmatprep.mubr.msk.bf16.mxu0 %vm105_vm0, %v194_v5  ;;  %v187_v6 = vld [vmem:[%s258_s1 + $0x20] sm:$0xff]   ;;  %v188_v7 = vld [vmem:[%s258_s1 + $0x28] sm:$0xff]   ;;  %v190_v9 = vld [vmem:[%s258_s1 + $0x38] sm:$0xff]  }
   0x4   :  { %v191_v10 = vld [vmem:[%s258_s1 + $0x40] sm:$0xff]  }
   0x5   :  { %v192_v11 = vld [vmem:[%s259_s0] ss:$8 sps:$4 sm:$0xff]  }
   0x6   :  { %112 = vmatpush1.bf16.msra.mxu0 %v184_v2  ;;  %v165_v12 = vld [vmem:[%s260_s2] ss:$0 sm:$0xff] }
   0x7   :  { %113 = vmatprep.subr.bf16.mxu0 %v195_v0 }
   0xa   :  { %114 = vmatpush1.bf16.msra.mxu0 %v185_v3 }
   0xb   :  { %115 = vmatprep.subr.bf16.mxu0 %v195_v0 }
   0xe   :  { %116 = vmatpush1.bf16.msra.mxu0 %v186_v4 }
   0xf   :  { %117 = vmatprep.subr.bf16.mxu0 %v195_v0 }
  0x12   :  { %118 = vmatpush1.bf16.msra.mxu0 %v187_v6 }
  0x13   :  { %119 = vmatprep.subr.bf16.mxu0 %v195_v0 }
  0x16   :  { %120 = vmatpush1.bf16.msra.mxu0 %v188_v7 }
  0x17   :  { %121 = vmatprep.subr.bf16.mxu0 %v195_v0 }
  0x1a   :  { %122 = vmatpush1.bf16.msra.mxu0 %v189_v8 }
  0x1b   :  { %123 = vmatprep.subr.bf16.mxu0 %v195_v0 }
  0x1e   :  { %124 = vmatpush1.bf16.msra.mxu0 %v190_v9 }
  0x1f   :  { %125 = vmatprep.subr.bf16.mxu0 %v195_v0 }
  0x22   :  { %126 = vmatpush1.bf16.msra.mxu0 %v191_v10 }
  0x25   :  { %142 = vmatmul.mubr.bf16.vlgmr.msra.gmra.mrb[0].mxu0 %v192_v11 }
  0xf8   :  { %v143_v13 = vpop.f32.mrb[0].mxu0 }
  0xf9   :  { %v144_v14 = vadd.f32 %v165_v12, %v143_v13  ;;  %v145_v15 = vpop.f32.mrb[1].mxu0 }
  0xfa   :  { %v146_v16 = vpop.f32.mrb[2].mxu0 }
  0xfb   :  { %v180_v17 = vpack.c.bf16 %v144_v14, %v144_v14  ;;  %v147_v18 = vadd.f32 %v165_v12, %v146_v16  ;;  %v148_v19 = vpop.f32.mrb[3].mxu0 }
  0xfd   :  { %159 = vst.msk [vmem:[%s261_s3] sm:$0xf] %vm158_vm1, %v180_v17  ;;  %v181_v20 = vpack.c.bf16 %v147_v18, %v147_v18 }
  0xff   :  { %160 = vst.msk [vmem:[%s261_s3 + $0x4] sm:$0xf] %vm158_vm1, %v181_v20 }

// kernel: vqvae_forward.60
= control target key start
LH: loop header
LB: loop body
LE: loop exit
PB: predicated region body
PF: predicated region fallthrough
CT: control target
= control target key end

     0   :  { %vm204_vm0 = vcmask 261120   ;;  %vm329_vm1 = vcmask 519168   ;;  %s550_s1 = inlined_call_operand.vmem [shape: bf16[288,64], index: 1, kind: input, shape index: {}]   ;;  %s551_s0 = inlined_call_operand.vmem [shape: bf16[32,288], index: 0, kind: input, shape index: {}]   ;;  %s552_s2 = inlined_call_operand.vmem [shape: f32[1,64], index: 2, kind: input, shape index: {}]   ;;  %s553_s3 = inlined_call_operand.vmem [shape: bf16[32,64], index: 3, kind: output, shape index: {}]  }
   0x1   :  { %v413_v0 = vld [vmem:[%s550_s1 + $0x40] sm:$0xff]   ;;  %v415_v2 = vld [vmem:[%s550_s1 + $0x48] sm:$0xff]   ;;  %v417_v4 = vld [vmem:[%s550_s1 + $0x50] sm:$0xff]  }
   0x2   :  { %v414_v1 = vld [vmem:[%s550_s1] sm:$0xff]   ;;  %373 = vmatprep.subr.bf16.mxu0 %v413_v0  ;;  %v416_v3 = vld [vmem:[%s550_s1 + $0x8] sm:$0xff]   ;;  %v418_v5 = vld [vmem:[%s550_s1 + $0x10] sm:$0xff]  }
   0x3   :  { %374 = vmatpush3.bf16.msra.mxu0 %v414_v1  ;;  %v419_v6 = vld [vmem:[%s550_s1 + $0x58] sm:$0xff]   ;;  %v421_v8 = vld [vmem:[%s550_s1 + $0x60] sm:$0xff]   ;;  %v423_v11 = vld [vmem:[%s550_s1 + $0x68] sm:$0xff]  }
   0x4   :  { %375 = vmatprep.subr.bf16.mxu0 %v415_v2  ;;  %v420_v7 = vld [vmem:[%s550_s1 + $0x18] sm:$0xff]   ;;  %v422_v9 = vld [vmem:[%s550_s1 + $0x20] sm:$0xff]   ;;  %v424_v12 = vld [vmem:[%s550_s1 + $0x28] sm:$0xff]  }
   0x5   :  { %v428_v10 = vld [vmem:[%s550_s1 + $0x80] sm:$0xff]   ;;  %v425_v13 = vld [vmem:[%s550_s1 + $0x70] sm:$0xff]   ;;  %v433_v15 = vld [vmem:[%s550_s1 + $0x88] sm:$0xff]  }
   0x6   :  { %405 = vmatprep.subr.bf16.mxu1 %v428_v10  ;;  %v432_v14 = vld [vmem:[%s551_s0 + $0x4] ss:$12 sps:$4 sm:$0xff]   ;;  %v434_v16 = vld [vmem:[%s551_s0 + $0x8] ss:$12 sps:$4 sm:$0xff]   ;;  %v435_v17 = vld [vmem:[%s551_s0 + $0x20] ss:$12 sps:$4 sm:$0xff]  }
   0x7   :  { %376 = vmatpush3.bf16.msra.mxu0 %v416_v3  ;;  %406 = vmatpush3.bf16.msra.mxu1 %v428_v10  ;;  %v426_v18 = vld [vmem:[%s550_s1 + $0x30] sm:$0xff]   ;;  %v427_v19 = vld [vmem:[%s550_s1 + $0x78] sm:$0xff]   ;;  %v430_v21 = vld [vmem:[%s551_s0] ss:$12 sps:$4 sm:$0xff]  }
   0x8   :  { %377 = vmatprep.subr.bf16.mxu0 %v417_v4  ;;  %243 = vmatprep.mubr.bf16.mxu0 %v432_v14  ;;  %v429_v20 = vld [vmem:[%s550_s1 + $0x38] sm:$0xff]   ;;  %v338_v30 = vld [vmem:[%s552_s2] ss:$0 sm:$0xff] }
   0x9   :  { %407 = vmatprep.subr.bf16.mxu1 %v433_v15  ;;  %409 = vmatprep.mubr.msk.bf16.mxu1 %vm204_vm0, %v434_v16  ;;  %v436_v22 = vld [vmem:[%s551_s0 + $0x1c] ss:$12 sps:$4 sm:$0xff]   ;;  %v438_v23 = vld [vmem:[%s551_s0 + $0x18] ss:$12 sps:$4 sm:$0xff]  }
   0xb   :  { %378 = vmatpush3.bf16.msra.mxu0 %v418_v5  ;;  %408 = vmatpush3.bf16.msra.mxu1 %v433_v15 }
   0xc   :  { %379 = vmatprep.subr.bf16.mxu0 %v419_v6 }
   0xe   :  { %410 = vmatmul.mubr.msk.bf16.vlgmr.msra.gmra.mrb[0].mxu1 %vm204_vm0, %v435_v17 }
   0xf   :  { %380 = vmatpush3.bf16.msra.mxu0 %v420_v7 }
  0x10   :  { %381 = vmatprep.subr.bf16.mxu0 %v421_v8 }
  0x13   :  { %382 = vmatpush3.bf16.msra.mxu0 %v422_v9 }
  0x14   :  { %383 = vmatprep.subr.bf16.mxu0 %v423_v11 }
  0x17   :  { %384 = vmatpush3.bf16.msra.mxu0 %v424_v12 }
  0x18   :  { %385 = vmatprep.subr.bf16.mxu0 %v425_v13 }
  0x1b   :  { %386 = vmatpush3.bf16.msra.mxu0 %v426_v18 }
  0x1c   :  { %387 = vmatprep.subr.bf16.mxu0 %v427_v19 }
  0x1f   :  { %388 = vmatpush3.bf16.msra.mxu0 %v429_v20 }
  0x22   :  { %244 = vmatmul.mubr.bf16.vlgmr.msra.gmra.mrb[0].mxu0 %v430_v21 }
  0x23   :  { %251 = vmatprep.mubr.bf16.mxu0 %v436_v22 }
  0x2a   :  { %252 = vmatmul.mubr.bf16.gmra.mrb[4].mxu0 %v438_v23 }
  0xe1   :  { %v411_v24 = vpop.f32.mrb[0].mxu1 }
  0xe2   :  { %v294_v25 = vpop.f32.mrb[1].mxu1 }
  0xe3   :  { %v412_v26 = vpop.f32.mrb[2].mxu1 }
  0xe4   :  { %v297_v27 = vpop.f32.mrb[3].mxu1 }
  0xf5   :  { %v389_v28 = vpop.f32.mrb[0].mxu0 }
  0xf6   :  { %v390_v29 = vpop.f32.mrb[1].mxu0 }
  0xf7   :  { %v391_v31 = vadd.f32 %v390_v29, %v389_v28  ;;  %v392_v32 = vpop.f32.mrb[2].mxu0 }
  0xf8   :  { %v393_v33 = vpop.f32.mrb[3].mxu0 }
  0xf9   :  { %v394_v34 = vadd.f32 %v393_v33, %v392_v32  ;;  %v246_v35 = vadd.f32 %v391_v31, %v338_v30 }
  0xfb   :  { %v295_v36 = vadd.f32 %v294_v25, %v246_v35  ;;  %v249_v37 = vadd.f32 %v394_v34, %v338_v30 }
  0xfd   :  { %v309_v38 = vmax.f32 %v295_v36, 0.0  ;;  %v298_v39 = vadd.f32 %v297_v27, %v249_v37  ;;  %v395_v40 = vpop.f32.mrb[4].mxu0 }
  0xfe   :  { %v396_v41 = vpop.f32.mrb[5].mxu0 }
  0xff   :  { %v369_v42 = vpack.c.bf16 %v309_v38, %v309_v38  ;;  %v310_v43 = vmax.f32 %v298_v39, 0.0  ;;  %v397_v44 = vadd.f32 %v396_v41, %v395_v40  ;;  %v398_v45 = vpop.f32.mrb[6].mxu0 }
 0x100   :  { %v399_v46 = vpop.f32.mrb[7].mxu0 }
 0x101   :  { %330 = vst.msk [vmem:[%s553_s3] sm:$0xf] %vm329_vm1, %v369_v42  ;;  %v370_v47 = vpack.c.bf16 %v310_v43, %v310_v43  ;;  %v254_v48 = vadd.f32 %v397_v44, %v338_v30  ;;  %v400_v49 = vadd.f32 %v399_v46, %v398_v45 }
 0x103   :  { %331 = vst.msk [vmem:[%s553_s3 + $0x4] sm:$0xf] %vm329_vm1, %v370_v47  ;;  %v303_v50 = vadd.f32 %v411_v24, %v254_v48  ;;  %v257_v51 = vadd.f32 %v400_v49, %v338_v30 }
 0x105   :  { %v311_v52 = vmax.f32 %v303_v50, 0.0  ;;  %v306_v53 = vadd.f32 %v412_v26, %v257_v51 }
 0x107   :  { %v371_v54 = vpack.c.bf16 %v311_v52, %v311_v52  ;;  %v312_v55 = vmax.f32 %v306_v53, 0.0 }
 0x109   :  { %332 = vst.msk [vmem:[%s553_s3 + $0x8] sm:$0xf] %vm329_vm1, %v371_v54  ;;  %v372_v56 = vpack.c.bf16 %v312_v55, %v312_v55 }
 0x10b   :  { %333 = vst.msk [vmem:[%s553_s3 + $0xc] sm:$0xf] %vm329_vm1, %v372_v56 }

// kernel: vqvae_forward.55
= control target key start
LH: loop header
LB: loop body
LE: loop exit
PB: predicated region body
PF: predicated region fallthrough
CT: control target
= control target key end

     0   :  { %v430_v0 = vmov 0   ;;  %vm137_vm0 = vcmask 130048   ;;  %vm351_vm1 = vcmask 257024   ;;  %s562_s3 = inlined_call_operand.vmem [shape: bf16[144,32], index: 3, kind: input, shape index: {}]   ;;  %s563_s2 = inlined_call_operand.vmem [shape: bf16[144,32], index: 2, kind: input, shape index: {}]   ;;  %s564_s1 = inlined_call_operand.vmem [shape: bf16[32,144], index: 1, kind: input, shape index: {}]   ;;  %s565_s0 = inlined_call_operand.vmem [shape: bf16[32,144], index: 0, kind: input, shape index: {}]   ;;  %s566_s4 = inlined_call_operand.vmem [shape: f32[1,32], index: 4, kind: input, shape index: {}]   ;;  %s567_s5 = inlined_call_operand.vmem [shape: bf16[32,32], index: 5, kind: output, shape index: {}]  }
   0x1   :  { %144 = vmatprep.subr.bf16.mxu0 %v430_v0  ;;  %271 = vmatprep.subr.bf16.mxu1 %v430_v0  ;;  %v400_v1 = vld [vmem:[%s562_s3] sm:$0xff]   ;;  %v402_v3 = vld [vmem:[%s562_s3 + $0x8] sm:$0xff]   ;;  %v404_v5 = vld [vmem:[%s562_s3 + $0x10] sm:$0xff]  }
   0x2   :  { %v401_v2 = vld [vmem:[%s563_s2] sm:$0xff]   ;;  %145 = vmatpush1.bf16.msra.mxu0 %v400_v1  ;;  %v403_v4 = vld [vmem:[%s563_s2 + $0x8] sm:$0xff]   ;;  %v405_v6 = vld [vmem:[%s563_s2 + $0x10] sm:$0xff]  }
   0x3   :  { %272 = vmatpush1.bf16.msra.mxu1 %v401_v2  ;;  %146 = vmatprep.subr.bf16.mxu0 %v430_v0  ;;  %v406_v7 = vld [vmem:[%s562_s3 + $0x18] sm:$0xff]   ;;  %v408_v9 = vld [vmem:[%s562_s3 + $0x20] sm:$0xff]   ;;  %v410_v11 = vld [vmem:[%s562_s3 + $0x28] sm:$0xff]  }
   0x4   :  { %273 = vmatprep.subr.bf16.mxu1 %v430_v0  ;;  %v407_v8 = vld [vmem:[%s563_s2 + $0x18] sm:$0xff]   ;;  %v409_v10 = vld [vmem:[%s563_s2 + $0x20] sm:$0xff]   ;;  %v411_v12 = vld [vmem:[%s563_s2 + $0x28] sm:$0xff]  }
   0x5   :  { %v420_v13 = vld [vmem:[%s564_s1 + $0x4] ss:$8 sps:$4 sm:$0xff]   ;;  %v412_v15 = vld [vmem:[%s562_s3 + $0x30] sm:$0xff]   ;;  %v414_v17 = vld [vmem:[%s562_s3 + $0x38] sm:$0xff]  }
   0x6   :  { %147 = vmatpush1.bf16.msra.mxu0 %v402_v3  ;;  %v423_v14 = vld [vmem:[%s565_s0 + $0x4] ss:$8 sps:$4 sm:$0xff]   ;;  %373 = vmatprep.mubr.msk.bf16.mxu0 %vm137_vm0, %v420_v13  ;;  %v413_v16 = vld [vmem:[%s563_s2 + $0x30] sm:$0xff]   ;;  %v415_v18 = vld [vmem:[%s563_s2 + $0x38] sm:$0xff]  }
   0x7   :  { %274 = vmatpush1.bf16.msra.mxu1 %v403_v4  ;;  %148 = vmatprep.subr.bf16.mxu0 %v430_v0  ;;  %v416_v19 = vld [vmem:[%s562_s3 + $0x40] sm:$0xff]   ;;  %v424_v23 = vld [vmem:[%s564_s1 + $0x14] ss:$8 sps:$4 sm:$0xff]   ;;  %v428_v25 = vld [vmem:[%s564_s1 + $0x10] ss:$8 sps:$4 sm:$0xff]  }
   0x8   :  { %275 = vmatprep.subr.bf16.mxu1 %v430_v0  ;;  %388 = vmatprep.mubr.msk.bf16.mxu1 %vm137_vm0, %v423_v14  ;;  %v417_v20 = vld [vmem:[%s563_s2 + $0x40] sm:$0xff]   ;;  %v426_v24 = vld [vmem:[%s565_s0 + $0x14] ss:$8 sps:$4 sm:$0xff]   ;;  %v429_v26 = vld [vmem:[%s565_s0 + $0x10] ss:$8 sps:$4 sm:$0xff]  }
   0x9   :  { %v418_v21 = vld [vmem:[%s564_s1] ss:$8 sps:$4 sm:$0xff]  }
   0xa   :  { %149 = vmatpush1.bf16.msra.mxu0 %v404_v5  ;;  %v421_v22 = vld [vmem:[%s565_s0] ss:$8 sps:$4 sm:$0xff]  }
   0xb   :  { %276 = vmatpush1.bf16.msra.mxu1 %v405_v6  ;;  %150 = vmatprep.subr.bf16.mxu0 %v430_v0  ;;  %v390_v29 = vld [vmem:[%s566_s4] ss:$0 sm:$0xff] }
   0xc   :  { %277 = vmatprep.subr.bf16.mxu1 %v430_v0 }
   0xe   :  { %151 = vmatpush1.bf16.msra.mxu0 %v406_v7 }
   0xf   :  { %278 = vmatpush1.bf16.msra.mxu1 %v407_v8  ;;  %152 = vmatprep.subr.bf16.mxu0 %v430_v0 }
  0x10   :  { %279 = vmatprep.subr.bf16.mxu1 %v430_v0 }
  0x12   :  { %153 = vmatpush1.bf16.msra.mxu0 %v408_v9 }
  0x13   :  { %280 = vmatpush1.bf16.msra.mxu1 %v409_v10  ;;  %154 = vmatprep.subr.bf16.mxu0 %v430_v0 }
  0x14   :  { %281 = vmatprep.subr.bf16.mxu1 %v430_v0 }
  0x16   :  { %155 = vmatpush1.bf16.msra.mxu0 %v410_v11 }
  0x17   :  { %282 = vmatpush1.bf16.msra.mxu1 %v411_v12  ;;  %156 = vmatprep.subr.bf16.mxu0 %v430_v0 }
  0x18   :  { %283 = vmatprep.subr.bf16.mxu1 %v430_v0 }
  0x1a   :  { %157 = vmatpush1.bf16.msra.mxu0 %v412_v15 }
  0x1b   :  { %284 = vmatpush1.bf16.msra.mxu1 %v413_v16  ;;  %158 = vmatprep.subr.bf16.mxu0 %v430_v0 }
  0x1c   :  { %285 = vmatprep.subr.bf16.mxu1 %v430_v0 }
  0x1e   :  { %159 = vmatpush1.bf16.msra.mxu0 %v414_v17 }
  0x1f   :  { %286 = vmatpush1.bf16.msra.mxu1 %v415_v18  ;;  %160 = vmatprep.subr.bf16.mxu0 %v430_v0 }
  0x20   :  { %287 = vmatprep.subr.bf16.mxu1 %v430_v0 }
  0x22   :  { %161 = vmatpush1.bf16.msra.mxu0 %v416_v19 }
  0x23   :  { %288 = vmatpush1.bf16.msra.mxu1 %v417_v20 }
  0x25   :  { %177 = vmatmul.mubr.bf16.vlgmr.msra.gmra.mrb[0].mxu0 %v418_v21 }
  0x26   :  { %304 = vmatmul.mubr.bf16.vlgmr.msra.gmra.mrb[0].mxu1 %v421_v22  ;;  %374 = vmatprep.mubr.msk.bf16.mxu0 %vm137_vm0, %v424_v23 }
  0x27   :  { %389 = vmatprep.mubr.msk.bf16.mxu1 %vm137_vm0, %v426_v24 }
  0x2d   :  { %185 = vmatmul.mubr.bf16.gmra.mrb[4].mxu0 %v428_v25 }
  0x2e   :  { %312 = vmatmul.mubr.bf16.gmra.mrb[4].mxu1 %v429_v26 }
  0xf8   :  { %v178_v27 = vpop.f32.mrb[0].mxu0 }
  0xf9   :  { %v305_v28 = vpop.f32.mrb[0].mxu1  ;;  %v180_v30 = vpop.f32.mrb[1].mxu0 }
  0xfa   :  { %v306_v31 = vadd.f32 %v305_v28, %v178_v27  ;;  %v307_v32 = vpop.f32.mrb[1].mxu1  ;;  %v181_v33 = vpop.f32.mrb[2].mxu0 }
  0xfb   :  { %v308_v34 = vpop.f32.mrb[2].mxu1  ;;  %v183_v35 = vpop.f32.mrb[3].mxu0 }
  0xfc   :  { %v327_v36 = vadd.f32 %v390_v29, %v306_v31  ;;  %v309_v37 = vadd.f32 %v308_v34, %v181_v33  ;;  %v310_v38 = vpop.f32.mrb[3].mxu1 }
  0xfe   :  { %v331_v39 = vmax.f32 %v327_v36, 0.0  ;;  %v328_v40 = vadd.f32 %v390_v29, %v309_v37 }
 0x100   :  { %v395_v41 = vpack.c.bf16 %v331_v39, %v331_v39  ;;  %v332_v42 = vmax.f32 %v328_v40, 0.0  ;;  %v186_v43 = vpop.f32.mrb[4].mxu0 }
 0x101   :  { %v313_v44 = vpop.f32.mrb[4].mxu1  ;;  %v188_v45 = vpop.f32.mrb[5].mxu0 }
 0x102   :  { %352 = vst.msk [vmem:[%s567_s5] sm:$0xf] %vm351_vm1, %v395_v41  ;;  %v396_v46 = vpack.c.bf16 %v332_v42, %v332_v42  ;;  %v314_v47 = vadd.f32 %v313_v44, %v186_v43  ;;  %v315_v48 = vpop.f32.mrb[5].mxu1  ;;  %v189_v49 = vpop.f32.mrb[6].mxu0 }
 0x103   :  { %v316_v50 = vpop.f32.mrb[6].mxu1  ;;  %v191_v51 = vpop.f32.mrb[7].mxu0 }
 0x104   :  { %353 = vst.msk [vmem:[%s567_s5 + $0x4] sm:$0xf] %vm351_vm1, %v396_v46  ;;  %v329_v52 = vadd.f32 %v390_v29, %v314_v47  ;;  %v317_v53 = vadd.f32 %v316_v50, %v189_v49  ;;  %v318_v54 = vpop.f32.mrb[7].mxu1 }
 0x106   :  { %v333_v55 = vmax.f32 %v329_v52, 0.0  ;;  %v330_v56 = vadd.f32 %v390_v29, %v317_v53 }
 0x108   :  { %v397_v57 = vpack.c.bf16 %v333_v55, %v333_v55  ;;  %v334_v58 = vmax.f32 %v330_v56, 0.0 }
 0x10a   :  { %354 = vst.msk [vmem:[%s567_s5 + $0x8] sm:$0xf] %vm351_vm1, %v397_v57  ;;  %v398_v59 = vpack.c.bf16 %v334_v58, %v334_v58 }
 0x10c   :  { %355 = vst.msk [vmem:[%s567_s5 + $0xc] sm:$0xf] %vm351_vm1, %v398_v59 }

// kernel: vqvae_forward.61
= control target key start
LH: loop header
LB: loop body
LE: loop exit
PB: predicated region body
PF: predicated region fallthrough
CT: control target
= control target key end

     0   :  { %v523_v0 = vmov 0   ;;  %vm182_vm0 = vcmask 130048   ;;  %vm384_vm1 = vcmask 93184   ;;  %s712_s1 = inlined_call_operand.vmem [shape: bf16[144,12], index: 1, kind: input, shape index: {}]   ;;  %s713_s0 = inlined_call_operand.vmem [shape: bf16[128,144], index: 0, kind: input, shape index: {}]   ;;  %s714_s2 = inlined_call_operand.vmem [shape: f32[1,12], index: 2, kind: input, shape index: {}]   ;;  %s715_s3 = inlined_call_operand.vmem [shape: bf16[128,12], index: 3, kind: output, shape index: {}]  }
   0x1   :  { %207 = vmatprep.subr.bf16.mxu0 %v523_v0  ;;  %471 = vmatprep.subr.bf16.mxu1 %v523_v0  ;;  %v490_v1 = vld [vmem:[%s712_s1] sm:$0xff]   ;;  %v491_v2 = vld [vmem:[%s712_s1 + $0x8] sm:$0xff]   ;;  %v492_v3 = vld [vmem:[%s712_s1 + $0x10] sm:$0xff]  }
   0x2   :  { %208 = vmatpush1.bf16.msra.mxu0 %v490_v1  ;;  %480 = vmatpush1.bf16.msra.mxu1 %v490_v1  ;;  %v493_v4 = vld [vmem:[%s712_s1 + $0x18] sm:$0xff]   ;;  %v501_v5 = vld [vmem:[%s713_s0 + $0x4] ss:$8 sps:$4 sm:$0xff]   ;;  %v496_v9 = vld [vmem:[%s712_s1 + $0x30] sm:$0xff]  }
   0x3   :  { %209 = vmatprep.subr.bf16.mxu0 %v523_v0  ;;  %472 = vmatprep.subr.bf16.mxu1 %v523_v0  ;;  %v504_v6 = vld [vmem:[%s713_s0 + $0x44] ss:$8 sps:$4 sm:$0xff]   ;;  %v497_v10 = vld [vmem:[%s712_s1 + $0x38] sm:$0xff]   ;;  %v499_v12 = vld [vmem:[%s713_s0] ss:$8 sps:$4 sm:$0xff]  }
   0x4   :  { %431 = vmatprep.mubr.msk.bf16.mxu0 %vm182_vm0, %v501_v5  ;;  %435 = vmatprep.mubr.msk.bf16.mxu1 %vm182_vm0, %v504_v6  ;;  %v494_v7 = vld [vmem:[%s712_s1 + $0x20] sm:$0xff]   ;;  %v495_v8 = vld [vmem:[%s712_s1 + $0x28] sm:$0xff]   ;;  %v505_v14 = vld [vmem:[%s713_s0 + $0x14] ss:$8 sps:$4 sm:$0xff]  }
   0x5   :  { %v498_v11 = vld [vmem:[%s712_s1 + $0x40] sm:$0xff]   ;;  %v507_v15 = vld [vmem:[%s713_s0 + $0x54] ss:$8 sps:$4 sm:$0xff]   ;;  %v509_v16 = vld [vmem:[%s713_s0 + $0x10] ss:$8 sps:$4 sm:$0xff]  }
   0x6   :  { %210 = vmatpush1.bf16.msra.mxu0 %v491_v2  ;;  %481 = vmatpush1.bf16.msra.mxu1 %v491_v2  ;;  %v502_v13 = vld [vmem:[%s713_s0 + $0x40] ss:$8 sps:$4 sm:$0xff]   ;;  %v510_v17 = vld [vmem:[%s713_s0 + $0x50] ss:$8 sps:$4 sm:$0xff]   ;;  %v511_v18 = vld [vmem:[%s713_s0 + $0x24] ss:$8 sps:$4 sm:$0xff]  }
   0x7   :  { %211 = vmatprep.subr.bf16.mxu0 %v523_v0  ;;  %473 = vmatprep.subr.bf16.mxu1 %v523_v0  ;;  %v513_v19 = vld [vmem:[%s713_s0 + $0x64] ss:$8 sps:$4 sm:$0xff]   ;;  %v515_v20 = vld [vmem:[%s713_s0 + $0x20] ss:$8 sps:$4 sm:$0xff]   ;;  %v517_v22 = vld [vmem:[%s713_s0 + $0x34] ss:$8 sps:$4 sm:$0xff]  }
   0x8   :  { %v516_v21 = vld [vmem:[%s713_s0 + $0x60] ss:$8 sps:$4 sm:$0xff]   ;;  %v519_v23 = vld [vmem:[%s713_s0 + $0x74] ss:$8 sps:$4 sm:$0xff]   ;;  %v521_v24 = vld [vmem:[%s713_s0 + $0x30] ss:$8 sps:$4 sm:$0xff]  }
   0x9   :  { %v522_v25 = vld [vmem:[%s713_s0 + $0x70] ss:$8 sps:$4 sm:$0xff]   ;;  %v630_v26 = vld [vmem:[%s714_s2] ss:$0 sm:$0xff] }
   0xa   :  { %212 = vmatpush1.bf16.msra.mxu0 %v492_v3  ;;  %482 = vmatpush1.bf16.msra.mxu1 %v492_v3 }
   0xb   :  { %213 = vmatprep.subr.bf16.mxu0 %v523_v0  ;;  %474 = vmatprep.subr.bf16.mxu1 %v523_v0 }
   0xe   :  { %214 = vmatpush1.bf16.msra.mxu0 %v493_v4  ;;  %483 = vmatpush1.bf16.msra.mxu1 %v493_v4 }
   0xf   :  { %215 = vmatprep.subr.bf16.mxu0 %v523_v0  ;;  %475 = vmatprep.subr.bf16.mxu1 %v523_v0 }
  0x12   :  { %216 = vmatpush1.bf16.msra.mxu0 %v494_v7  ;;  %484 = vmatpush1.bf16.msra.mxu1 %v494_v7 }
  0x13   :  { %217 = vmatprep.subr.bf16.mxu0 %v523_v0  ;;  %476 = vmatprep.subr.bf16.mxu1 %v523_v0 }
  0x16   :  { %218 = vmatpush1.bf16.msra.mxu0 %v495_v8  ;;  %485 = vmatpush1.bf16.msra.mxu1 %v495_v8 }
  0x17   :  { %219 = vmatprep.subr.bf16.mxu0 %v523_v0  ;;  %477 = vmatprep.subr.bf16.mxu1 %v523_v0 }
  0x1a   :  { %220 = vmatpush1.bf16.msra.mxu0 %v496_v9  ;;  %486 = vmatpush1.bf16.msra.mxu1 %v496_v9 }
  0x1b   :  { %221 = vmatprep.subr.bf16.mxu0 %v523_v0  ;;  %478 = vmatprep.subr.bf16.mxu1 %v523_v0 }
  0x1e   :  { %222 = vmatpush1.bf16.msra.mxu0 %v497_v10  ;;  %487 = vmatpush1.bf16.msra.mxu1 %v497_v10 }
  0x1f   :  { %223 = vmatprep.subr.bf16.mxu0 %v523_v0  ;;  %479 = vmatprep.subr.bf16.mxu1 %v523_v0 }
  0x22   :  { %224 = vmatpush1.bf16.msra.mxu0 %v498_v11  ;;  %488 = vmatpush1.bf16.msra.mxu1 %v498_v11 }
  0x25   :  { %240 = vmatmul.mubr.bf16.vlgmr.msra.gmra.mrb[0].mxu0 %v499_v12  ;;  %272 = vmatmul.mubr.bf16.vlgmr.msra.gmra.mrb[0].mxu1 %v502_v13 }
  0x26   :  { %432 = vmatprep.mubr.msk.bf16.mxu0 %vm182_vm0, %v505_v14  ;;  %436 = vmatprep.mubr.msk.bf16.mxu1 %vm182_vm0, %v507_v15 }
  0x2d   :  { %248 = vmatmul.mubr.bf16.gmra.mrb[4].mxu0 %v509_v16  ;;  %280 = vmatmul.mubr.bf16.gmra.mrb[4].mxu1 %v510_v17 }
  0x2e   :  { %433 = vmatprep.mubr.msk.bf16.mxu0 %vm182_vm0, %v511_v18  ;;  %437 = vmatprep.mubr.msk.bf16.mxu1 %vm182_vm0, %v513_v19 }
  0x35   :  { %256 = vmatmul.mubr.bf16.gmra.mrb[8].mxu0 %v515_v20  ;;  %288 = vmatmul.mubr.bf16.gmra.mrb[8].mxu1 %v516_v21 }
  0x36   :  { %434 = vmatprep.mubr.msk.bf16.mxu0 %vm182_vm0, %v517_v22  ;;  %438 = vmatprep.mubr.msk.bf16.mxu1 %vm182_vm0, %v519_v23 }
  0x3d   :  { %264 = vmatmul.mubr.bf16.gmra.mrb[12].mxu0 %v521_v24  ;;  %296 = vmatmul.mubr.bf16.gmra.mrb[12].mxu1 %v522_v25 }
  0xf8   :  { %v241_v27 = vpop.f32.mrb[0].mxu0  ;;  %v273_v28 = vpop.f32.mrb[0].mxu1 }
  0xf9   :  { %v242_v29 = vadd.f32 %v630_v26, %v241_v27  ;;  %v274_v30 = vadd.f32 %v630_v26, %v273_v28  ;;  %v243_v31 = vpop.f32.mrb[1].mxu0  ;;  %v275_v32 = vpop.f32.mrb[1].mxu1 }
  0xfa   :  { %v244_v33 = vpop.f32.mrb[2].mxu0  ;;  %v276_v34 = vpop.f32.mrb[2].mxu1 }
  0xfb   :  { %v304_v35 = vmax.f32 %v242_v29, 0.0  ;;  %v312_v36 = vmax.f32 %v274_v30, 0.0  ;;  %v245_v37 = vadd.f32 %v630_v26, %v244_v33  ;;  %v277_v38 = vadd.f32 %v630_v26, %v276_v34  ;;  %v246_v39 = vpop.f32.mrb[3].mxu0  ;;  %v278_v40 = vpop.f32.mrb[3].mxu1 }
  0xfd   :  { %v455_v41 = vpack.c.bf16 %v304_v35, %v304_v35  ;;  %v463_v42 = vpack.c.bf16 %v312_v36, %v312_v36  ;;  %v305_v43 = vmax.f32 %v245_v37, 0.0  ;;  %v313_v44 = vmax.f32 %v277_v38, 0.0 }
  0xff   :  { %385 = vst.msk [vmem:[%s715_s3] sm:$0xf] %vm384_vm1, %v455_v41  ;;  %393 = vst.msk [vmem:[%s715_s3 + $0x20] sm:$0xf] %vm384_vm1, %v463_v42  ;;  %v456_v45 = vpack.c.bf16 %v305_v43, %v305_v43  ;;  %v464_v46 = vpack.c.bf16 %v313_v44, %v313_v44 }
 0x100   :  { %v249_v47 = vpop.f32.mrb[4].mxu0  ;;  %v281_v48 = vpop.f32.mrb[4].mxu1 }
 0x101   :  { %386 = vst.msk [vmem:[%s715_s3 + $0x4] sm:$0xf] %vm384_vm1, %v456_v45  ;;  %394 = vst.msk [vmem:[%s715_s3 + $0x24] sm:$0xf] %vm384_vm1, %v464_v46  ;;  %v250_v49 = vadd.f32 %v630_v26, %v249_v47  ;;  %v282_v50 = vadd.f32 %v630_v26, %v281_v48  ;;  %v251_v51 = vpop.f32.mrb[5].mxu0  ;;  %v283_v52 = vpop.f32.mrb[5].mxu1 }
 0x102   :  { %v252_v53 = vpop.f32.mrb[6].mxu0  ;;  %v284_v54 = vpop.f32.mrb[6].mxu1 }
 0x103   :  { %v306_v55 = vmax.f32 %v250_v49, 0.0  ;;  %v314_v56 = vmax.f32 %v282_v50, 0.0  ;;  %v253_v57 = vadd.f32 %v630_v26, %v252_v53  ;;  %v285_v58 = vadd.f32 %v630_v26, %v284_v54  ;;  %v254_v59 = vpop.f32.mrb[7].mxu0  ;;  %v286_v60 = vpop.f32.mrb[7].mxu1 }
 0x105   :  { %v457_v61 = vpack.c.bf16 %v306_v55, %v306_v55  ;;  %v465_v62 = vpack.c.bf16 %v314_v56, %v314_v56  ;;  %v307_v63 = vmax.f32 %v253_v57, 0.0  ;;  %v315_v0 = vmax.f32 %v285_v58, 0.0 }
 0x107   :  { %387 = vst.msk [vmem:[%s715_s3 + $0x8] sm:$0xf] %vm384_vm1, %v457_v61  ;;  %395 = vst.msk [vmem:[%s715_s3 + $0x28] sm:$0xf] %vm384_vm1, %v465_v62  ;;  %v458_v1 = vpack.c.bf16 %v307_v63, %v307_v63  ;;  %v466_v2 = vpack.c.bf16 %v315_v0, %v315_v0 }
 0x108   :  { %v257_v3 = vpop.f32.mrb[8].mxu0  ;;  %v289_v4 = vpop.f32.mrb[8].mxu1 }
 0x109   :  { %388 = vst.msk [vmem:[%s715_s3 + $0xc] sm:$0xf] %vm384_vm1, %v458_v1  ;;  %396 = vst.msk [vmem:[%s715_s3 + $0x2c] sm:$0xf] %vm384_vm1, %v466_v2  ;;  %v258_v5 = vadd.f32 %v630_v26, %v257_v3  ;;  %v290_v6 = vadd.f32 %v630_v26, %v289_v4  ;;  %v259_v7 = vpop.f32.mrb[9].mxu0  ;;  %v291_v8 = vpop.f32.mrb[9].mxu1 }
 0x10a   :  { %v260_v9 = vpop.f32.mrb[10].mxu0  ;;  %v292_v10 = vpop.f32.mrb[10].mxu1 }
 0x10b   :  { %v308_v11 = vmax.f32 %v258_v5, 0.0  ;;  %v316_v12 = vmax.f32 %v290_v6, 0.0  ;;  %v261_v13 = vadd.f32 %v630_v26, %v260_v9  ;;  %v293_v14 = vadd.f32 %v630_v26, %v292_v10  ;;  %v262_v15 = vpop.f32.mrb[11].mxu0  ;;  %v294_v16 = vpop.f32.mrb[11].mxu1 }
 0x10d   :  { %v459_v17 = vpack.c.bf16 %v308_v11, %v308_v11  ;;  %v467_v18 = vpack.c.bf16 %v316_v12, %v316_v12  ;;  %v309_v19 = vmax.f32 %v261_v13, 0.0  ;;  %v317_v20 = vmax.f32 %v293_v14, 0.0 }
 0x10f   :  { %389 = vst.msk [vmem:[%s715_s3 + $0x10] sm:$0xf] %vm384_vm1, %v459_v17  ;;  %397 = vst.msk [vmem:[%s715_s3 + $0x30] sm:$0xf] %vm384_vm1, %v467_v18  ;;  %v460_v21 = vpack.c.bf16 %v309_v19, %v309_v19  ;;  %v468_v22 = vpack.c.bf16 %v317_v20, %v317_v20 }
 0x110   :  { %v265_v23 = vpop.f32.mrb[12].mxu0  ;;  %v297_v24 = vpop.f32.mrb[12].mxu1 }
 0x111   :  { %390 = vst.msk [vmem:[%s715_s3 + $0x14] sm:$0xf] %vm384_vm1, %v460_v21  ;;  %398 = vst.msk [vmem:[%s715_s3 + $0x34] sm:$0xf] %vm384_vm1, %v468_v22  ;;  %v266_v25 = vadd.f32 %v630_v26, %v265_v23  ;;  %v298_v27 = vadd.f32 %v630_v26, %v297_v24  ;;  %v267_v28 = vpop.f32.mrb[13].mxu0  ;;  %v299_v29 = vpop.f32.mrb[13].mxu1 }
 0x112   :  { %v268_v30 = vpop.f32.mrb[14].mxu0  ;;  %v300_v31 = vpop.f32.mrb[14].mxu1 }
 0x113   :  { %v310_v32 = vmax.f32 %v266_v25, 0.0  ;;  %v318_v33 = vmax.f32 %v298_v27, 0.0  ;;  %v269_v34 = vadd.f32 %v630_v26, %v268_v30  ;;  %v301_v35 = vadd.f32 %v630_v26, %v300_v31  ;;  %v270_v36 = vpop.f32.mrb[15].mxu0  ;;  %v302_v37 = vpop.f32.mrb[15].mxu1 }
 0x115   :  { %v461_v38 = vpack.c.bf16 %v310_v32, %v310_v32  ;;  %v469_v39 = vpack.c.bf16 %v318_v33, %v318_v33  ;;  %v311_v40 = vmax.f32 %v269_v34, 0.0  ;;  %v319_v41 = vmax.f32 %v301_v35, 0.0 }
 0x117   :  { %391 = vst.msk [vmem:[%s715_s3 + $0x18] sm:$0xf] %vm384_vm1, %v461_v38  ;;  %399 = vst.msk [vmem:[%s715_s3 + $0x38] sm:$0xf] %vm384_vm1, %v469_v39  ;;  %v462_v42 = vpack.c.bf16 %v311_v40, %v311_v40  ;;  %v470_v43 = vpack.c.bf16 %v319_v41, %v319_v41 }
 0x119   :  { %392 = vst.msk [vmem:[%s715_s3 + $0x1c] sm:$0xf] %vm384_vm1, %v462_v42  ;;  %400 = vst.msk [vmem:[%s715_s3 + $0x3c] sm:$0xf] %vm384_vm1, %v470_v43 }

</bundles_post_ra>
